<compile_context>
chip_gen: v5e
topology: v5e:2x2
jax: 0.10.0
libtpu: 0.0.40
codegen_flags: <defaults>
</compile_context>

<pallas_src>
import functools

import jax
import jax.numpy as jnp
import numpy as np
from jax import lax
from jax.experimental import pallas as pl
from jax.experimental.pallas import tpu as pltpu

ALPHA = 0.1   # SReLU alpha (nn.Parameter init value)
BETA = 0.8    # SReLU beta  (nn.Parameter init value)


def _srelu(x, alpha, beta):
    # alpha*(x - relu(-x)) + relu(x) + beta*(x - relu(-beta*x)) * sigmoid(x)
    negative = alpha * (x - jnp.maximum(-x, 0.0))
    positive = jnp.maximum(x, 0.0)
    transition = beta * (x - jnp.maximum(-beta * x, 0.0)) * jax.nn.sigmoid(x)
    return negative + positive + transition


def rcab_kernel(x_ref, w1_ref, b1_ref, w2_ref, b2_ref,
                cw1_ref, cb1_ref, cw2t_ref, cb2_ref, ab_ref,
                o_ref, xpad_ref, *, H, W, C, K):
    p = K // 2
    HW = H * W

    x = x_ref[0]                                     # (C, H*W); also the residual

    # Column-edge masks for the horizontal reflection fix-up (a few cheap VPU ops).
    wpos = lax.broadcasted_iota(jnp.int32, (1, HW), 1) % W
    col_first = wpos == 0
    col_last = wpos == W - 1

    # Deterministic margins for the p spill lanes on either side that shifted loads may
    # touch (those values are always discarded by the jnp.where fix-up below).
    xpad_ref[...] = jnp.zeros_like(xpad_ref)

    def pad_rows(img):
        """Vertically reflection-pad `img` (C, H*W) into xpad_ref (row-major flattened).

        Lanes [p, p + (H+2p)*W) hold rows [-p, H+p) of the image (reflected at both
        ends).  All writes come straight from the already-loaded value (no read-back of
        the pad buffer); the bulk write is a single 256-lane store."""
        xpad_ref[:, p + p * W: p + p * W + HW] = img
        for i in range(1, p + 1):
            xpad_ref[:, p + (p - i) * W: p + (p - i + 1) * W] = img[:, i * W:(i + 1) * W]
            xpad_ref[:, p + (p + H - 1 + i) * W: p + (p + H + i) * W] = (
                img[:, (H - 1 - i) * W:(H - i) * W])

    def conv3x3(w_ref, b_ref):
        """Direct KxK conv on the VPU with a lane-dense (C_out, H*W) f32 accumulator.

        The 9 taps are shifted lane-window loads of xpad_ref (vertical reflection baked
        into the buffer); horizontal reflection at the two edge columns is fixed by one
        select per off-centre column offset.  Per tap and input channel a (C_out, 1)
        weight column is broadcast-FMA'd against the (1, H*W) tap row."""
        w = w_ref[...]                               # (C_out, K*K*C_in)
        acc = jnp.zeros((C, HW), jnp.float32)
        for kh in range(K):
            dy = kh - p
            base = p + (p + dy) * W
            r0 = xpad_ref[:, base: base + HW]               # dx = 0
            rneg = xpad_ref[:, base - 1: base - 1 + HW]     # dx = -1 (interior cols)
            rpos = xpad_ref[:, base + 1: base + 1 + HW]     # dx = +1 (interior cols)
            taps = (
                jnp.where(col_first, rpos, rneg),           # dx = -1; reflect at w == 0
                r0,                                         # dx =  0
                jnp.where(col_last, rneg, rpos),            # dx = +1; reflect at w == W-1
            )
            for kw in range(K):
                t = taps[kw]
                for ci in range(C):
                    idx = (kh * K + kw) * C + ci
                    acc = acc + w[:, idx:idx + 1] * t[ci:ci + 1, :]
        return acc + b_ref[...]                      # bias is (C_out, 1)

    # ---- body: conv1 -> ReLU -> conv2 (pad buffer reused) ----------------------------
    pad_rows(x)
    h1 = jnp.maximum(conv3x3(w1_ref, b1_ref), 0.0)   # (C, H*W)
    pad_rows(h1)
    out = conv3x3(w2_ref, b2_ref)                    # (C, H*W)

    # ---- CALayer: avg-pool (lane reduce) -> 1x1 -> SReLU -> 1x1 -> sigmoid ----------
    alpha = ab_ref[0]
    beta = ab_ref[1]
    y = jnp.sum(out, axis=1, keepdims=True) * (1.0 / float(HW))             # (C, 1)
    y1 = jnp.sum(cw1_ref[...] * y, axis=0, keepdims=True) + cb1_ref[...]    # (1, Cr)
    y1 = _srelu(y1, alpha, beta)
    y2 = jnp.sum(cw2t_ref[...] * y1, axis=1, keepdims=True) + cb2_ref[...]  # (C, 1)
    ca = jax.nn.sigmoid(y2)                                                 # (C, 1)

    # ---- residual + channel attention, stored lane-dense in flattened NCHW ----------
    o_ref[0] = (x + out * ca).astype(o_ref.dtype)


def rcab_forward(x_nchw, params, kernel_size=3, alpha=ALPHA, beta=BETA):
    """x_nchw: (N, C, H, W) float32 (PyTorch layout).  Returns (N, C, H, W)."""
    N, C, H, W = x_nchw.shape
    K = kernel_size
    p = K // 2
    HW = H * W
    if K != 3:
        # TODO(synk): generalize the horizontal reflection fix-up (extra selects per
        # |dx| > 1 column offset) for kernel_size > 3; the module is used with K = 3.
        raise NotImplementedError("direct-conv RCAB kernel supports kernel_size=3 only")
    w1, b1, w2, b2, cw1, cb1, cw2, cb2 = params
    Cr = cw1.shape[1]

    # Boundary glue (cheap wrapper-side XLA ops, no transposes of the activation):
    #   * activations flattened NCHW (N, C, H*W) -> lane-dense compute/output layout,
    #   * conv weights packed (C_out, K*K*C_in): w_p[co, (kh*K+kw)*C+ci] = w[kh,kw,ci,co],
    #   * biases / CA second 1x1 as (C, 1) columns so they broadcast over lanes.
    x_flat = x_nchw.reshape(N, C, HW)
    w1p = w1.reshape(K * K * C, C).T
    w2p = w2.reshape(K * K * C, C).T
    b1c = b1.reshape(C, 1)
    b2c = b2.reshape(C, 1)
    cw2t = cw2.T                       # (C, Cr)
    cb2c = cb2.reshape(C, 1)
    ab = jnp.array([alpha, beta], dtype=jnp.float32)

    def const_spec(shape):
        # Constant-index (weight/bias) inputs; block index never changes across the grid.
        return pl.BlockSpec(shape, lambda n, _nd=len(shape): (0,) * _nd)

    kernel = functools.partial(rcab_kernel, H=H, W=W, C=C, K=K)
    out_flat = pl.pallas_call(
        kernel,
        out_shape=jax.ShapeDtypeStruct((N, C, HW), x_nchw.dtype),
        grid=(N,),
        in_specs=[
            pl.BlockSpec((1, C, HW), lambda n: (n, 0, 0)),       # image, flattened NCHW
            const_spec((C, K * K * C)),    # body conv1 weight, (C_out, K*K*C_in)
            const_spec((C, 1)),            # body conv1 bias
            const_spec((C, K * K * C)),    # body conv2 weight
            const_spec((C, 1)),            # body conv2 bias
            const_spec((C, Cr)),           # CA 1x1 conv1 weight (C, Cr)
            const_spec((1, Cr)),           # CA 1x1 conv1 bias
            const_spec((C, Cr)),           # CA 1x1 conv2 weight, pre-transposed (C, Cr)
            const_spec((C, 1)),            # CA 1x1 conv2 bias
            pl.BlockSpec(memory_space=pltpu.MemorySpace.SMEM),   # SReLU (alpha, beta)
        ],
        out_specs=pl.BlockSpec((1, C, HW), lambda n: (n, 0, 0)),
        scratch_shapes=[
            # Vertically reflection-padded, flattened activation + p-lane margins on
            # each side for the shifted dx loads.  (4, 290) f32 ~= 12 KiB in VMEM.
            pltpu.VMEM((C, (H + 2 * p) * W + 2 * p), jnp.float32),
        ],
        # >= 2 parallel grid steps keeps both v7x TensorCores busy; costs ~0.35us of
        # per-step overhead per extra step on single-TC v5e/v6e.
        compiler_params=pltpu.CompilerParams(dimension_semantics=("parallel",)),
    )(x_flat, w1p, b1c, w2p, b2c, cw1, cb1, cw2t, cb2c, ab)
    return out_flat.reshape(N, C, H, W)


def rcab_reference_nchw(x_nchw, params, kernel_size=3, alpha=ALPHA, beta=BETA):
    """Pure-JAX reference (matches the PyTorch module with norm=False, downscale=False)."""
    w1, b1, w2, b2, cw1, cb1, cw2, cb2 = params
    p = kernel_size // 2
    x = jnp.transpose(x_nchw, (0, 2, 3, 1))   # NHWC

    def conv(a, w, b):
        ap = jnp.pad(a, ((0, 0), (p, p), (p, p), (0, 0)), mode="reflect")
        o = lax.conv_general_dilated(ap, w, (1, 1), "VALID",
                                     dimension_numbers=("NHWC", "HWIO", "NHWC"),
                                     precision=lax.Precision.HIGHEST)
        return o + b.reshape(1, 1, 1, -1)

    h1 = jnp.maximum(conv(x, w1, b1), 0.0)
    out = conv(h1, w2, b2)
    y = jnp.mean(out, axis=(1, 2))                                       # (N, C)
    y1 = _srelu(jnp.dot(y, cw1, precision=lax.Precision.HIGHEST) + cb1, alpha, beta)
    ca = jax.nn.sigmoid(jnp.dot(y1, cw2, precision=lax.Precision.HIGHEST) + cb2)
    res = x + out * ca[:, None, None, :]
    return jnp.transpose(res, (0, 3, 1, 2))


def make_params(key, channels, kernel_size, reduction):
    C, K = channels, kernel_size
    Cr = max(channels // reduction, 1)
    ks = jax.random.split(key, 8)
    s = 0.1
    w1 = s * jax.random.normal(ks[0], (K, K, C, C), jnp.float32)   # HWIO
    b1 = s * jax.random.normal(ks[1], (1, C), jnp.float32)
    w2 = s * jax.random.normal(ks[2], (K, K, C, C), jnp.float32)
    b2 = s * jax.random.normal(ks[3], (1, C), jnp.float32)
    cw1 = s * jax.random.normal(ks[4], (C, Cr), jnp.float32)
    cb1 = s * jax.random.normal(ks[5], (1, Cr), jnp.float32)
    cw2 = s * jax.random.normal(ks[6], (Cr, C), jnp.float32)
    cb2 = s * jax.random.normal(ks[7], (1, C), jnp.float32)
    return (w1, b1, w2, b2, cw1, cb1, cw2, cb2)


if __name__ == "__main__":
    key = jax.random.PRNGKey(0)
    kx, kp = jax.random.split(key)

    N, C, H, W = 2, 4, 16, 16          # in_feat = out_feat = 4
    kernel_size = 3
    reduction = 2                      # C // reduction = 2

    x_nchw = jax.random.normal(kx, (N, C, H, W), jnp.float32)   # PyTorch layout
    params = make_params(kp, C, kernel_size, reduction)

    out_nchw = rcab_forward(x_nchw, params, kernel_size)
    out_nchw = jax.block_until_ready(out_nchw)

    ref_nchw = rcab_reference_nchw(x_nchw, params, kernel_size)
    np.testing.assert_allclose(np.asarray(out_nchw), np.asarray(ref_nchw),
                               rtol=1e-4, atol=1e-4)
    print("KERNEL_OK")
</pallas_src>

<mosaic_0001>
module attributes {stable_mosaic.version = 11 : i64} {
  func.func @rcab_kernel(%arg0: i32, %arg1: memref<1x4x256xf32, #tpu.memory_space<vmem>>, %arg2: memref<4x36xf32, #tpu.memory_space<vmem>>, %arg3: memref<4x1xf32, #tpu.memory_space<vmem>>, %arg4: memref<4x36xf32, #tpu.memory_space<vmem>>, %arg5: memref<4x1xf32, #tpu.memory_space<vmem>>, %arg6: memref<4x2xf32, #tpu.memory_space<vmem>>, %arg7: memref<1x2xf32, #tpu.memory_space<vmem>>, %arg8: memref<4x2xf32, #tpu.memory_space<vmem>>, %arg9: memref<4x1xf32, #tpu.memory_space<vmem>>, %arg10: memref<2xf32, #tpu.memory_space<smem>>, %arg11: memref<1x4x256xf32, #tpu.memory_space<vmem>>, %arg12: memref<4x290xf32, #tpu.memory_space<vmem>>) attributes {dimension_semantics = [#tpu.dimension_semantics<parallel>], iteration_bounds = array<i64: 2>, scalar_prefetch = 0 : i64, scratch_operands = 1 : i64, tpu.core_type = #tpu.core_type<tc>, window_params = [{transform_indices = @transform_0, window_bounds = array<i64: 1, 4, 256>}, {pipeline_mode = #tpu.pipeline_mode<synchronous>, transform_indices = @transform_1, window_bounds = array<i64: 4, 36>}, {pipeline_mode = #tpu.pipeline_mode<synchronous>, transform_indices = @transform_2, window_bounds = array<i64: 4, 1>}, {pipeline_mode = #tpu.pipeline_mode<synchronous>, transform_indices = @transform_3, window_bounds = array<i64: 4, 36>}, {pipeline_mode = #tpu.pipeline_mode<synchronous>, transform_indices = @transform_4, window_bounds = array<i64: 4, 1>}, {pipeline_mode = #tpu.pipeline_mode<synchronous>, transform_indices = @transform_5, window_bounds = array<i64: 4, 2>}, {pipeline_mode = #tpu.pipeline_mode<synchronous>, transform_indices = @transform_6, window_bounds = array<i64: 1, 2>}, {pipeline_mode = #tpu.pipeline_mode<synchronous>, transform_indices = @transform_7, window_bounds = array<i64: 4, 2>}, {pipeline_mode = #tpu.pipeline_mode<synchronous>, transform_indices = @transform_8, window_bounds = array<i64: 4, 1>}, {transform_indices = @transform_9, window_bounds = array<i64: 2>}, {transform_indices = @transform_10, window_bounds = array<i64: 1, 4, 256>}]} {
    %c0 = arith.constant 0 : index
    %c0_0 = arith.constant 0 : index
    %c0_1 = arith.constant 0 : index
    %0 = vector.load %arg1[%c0, %c0_0, %c0_1] : memref<1x4x256xf32, #tpu.memory_space<vmem>>, vector<1x4x256xf32>
    %1 = vector.shape_cast %0 : vector<1x4x256xf32> to vector<4x256xf32>
    %2 = tpu.iota {dimensions = array<i32: 1>} : vector<1x256xi32>
    %c16_i32 = arith.constant 16 : i32
    %c0_i32 = arith.constant 0 : i32
    %3 = arith.cmpi eq, %c16_i32, %c0_i32 : i32
    %c1_i32 = arith.constant 1 : i32
    %4 = arith.select %3, %c1_i32, %c16_i32 : i32
    %5 = vector.broadcast %4 : i32 to vector<1x256xi32>
    %6 = arith.remsi %2, %5 : vector<1x256xi32>
    %c0_i32_2 = arith.constant 0 : i32
    %7 = vector.broadcast %c0_i32_2 : i32 to vector<1x256xi32>
    %8 = arith.cmpi ne, %6, %7 : vector<1x256xi32>
    %c0_i32_3 = arith.constant 0 : i32
    %9 = vector.broadcast %c0_i32_3 : i32 to vector<1x256xi32>
    %10 = arith.cmpi slt, %6, %9 : vector<1x256xi32>
    %c0_i32_4 = arith.constant 0 : i32
    %11 = arith.cmpi slt, %4, %c0_i32_4 : i32
    %12 = vector.broadcast %11 : i1 to vector<1x256xi1>
    %13 = vector.broadcast %12 : vector<1x256xi1> to vector<1x256xi1>
    %14 = arith.xori %10, %13 : vector<1x256xi1>
    %15 = arith.andi %14, %8 : vector<1x256xi1>
    %16 = vector.broadcast %4 : i32 to vector<1x256xi32>
    %17 = arith.addi %6, %16 : vector<1x256xi32>
    %18 = arith.select %15, %17, %6 : vector<1x256xi1>, vector<1x256xi32>
    %c0_i32_5 = arith.constant 0 : i32
    %19 = vector.broadcast %c0_i32_5 : i32 to vector<1x256xi32>
    %20 = arith.cmpi eq, %18, %19 : vector<1x256xi32>
    %c15_i32 = arith.constant 15 : i32
    %21 = vector.broadcast %c15_i32 : i32 to vector<1x256xi32>
    %22 = arith.cmpi eq, %18, %21 : vector<1x256xi32>
    %cst = arith.constant 0.000000e+00 : f32
    %23 = vector.broadcast %cst : f32 to vector<4x290xf32>
    %c0_6 = arith.constant 0 : index
    %c0_7 = arith.constant 0 : index
    %24 = vector.load %arg12[%c0_6, %c0_7] : memref<4x290xf32, #tpu.memory_space<vmem>>, vector<4x290xf32>
    tpu.vector_store %arg12[%c0_6, %c0_7], %23 {strides = array<i32>} : memref<4x290xf32, #tpu.memory_space<vmem>>, vector<4x290xf32>,
    %c0_8 = arith.constant 0 : index
    %c17 = arith.constant 17 : index
    %25 = vector.load %arg12[%c0_8, %c17] : memref<4x290xf32, #tpu.memory_space<vmem>>, vector<4x256xf32>
    tpu.vector_store %arg12[%c0_8, %c17], %1 {strides = array<i32>} : memref<4x290xf32, #tpu.memory_space<vmem>>, vector<4x256xf32>,
    %26 = vector.extract_strided_slice %1 {offsets = [0, 16], sizes = [4, 16], strides = [1, 1]} : vector<4x256xf32> to vector<4x16xf32>
    %c0_9 = arith.constant 0 : index
    %c1 = arith.constant 1 : index
    %27 = vector.load %arg12[%c0_9, %c1] : memref<4x290xf32, #tpu.memory_space<vmem>>, vector<4x16xf32>
    tpu.vector_store %arg12[%c0_9, %c1], %26 {strides = array<i32>} : memref<4x290xf32, #tpu.memory_space<vmem>>, vector<4x16xf32>,
    %28 = vector.extract_strided_slice %1 {offsets = [0, 224], sizes = [4, 16], strides = [1, 1]} : vector<4x256xf32> to vector<4x16xf32>
    %c0_10 = arith.constant 0 : index
    %c273 = arith.constant 273 : index
    %29 = vector.load %arg12[%c0_10, %c273] : memref<4x290xf32, #tpu.memory_space<vmem>>, vector<4x16xf32>
    tpu.vector_store %arg12[%c0_10, %c273], %28 {strides = array<i32>} : memref<4x290xf32, #tpu.memory_space<vmem>>, vector<4x16xf32>,
    %c0_11 = arith.constant 0 : index
    %c0_12 = arith.constant 0 : index
    %30 = vector.load %arg2[%c0_11, %c0_12] : memref<4x36xf32, #tpu.memory_space<vmem>>, vector<4x36xf32>
    %cst_13 = arith.constant 0.000000e+00 : f32
    %31 = vector.broadcast %cst_13 : f32 to vector<4x256xf32>
    %c0_14 = arith.constant 0 : index
    %c1_15 = arith.constant 1 : index
    %32 = vector.load %arg12[%c0_14, %c1_15] : memref<4x290xf32, #tpu.memory_space<vmem>>, vector<4x256xf32>
    %c0_16 = arith.constant 0 : index
    %c0_17 = arith.constant 0 : index
    %33 = vector.load %arg12[%c0_16, %c0_17] : memref<4x290xf32, #tpu.memory_space<vmem>>, vector<4x256xf32>
    %c0_18 = arith.constant 0 : index
    %c2 = arith.constant 2 : index
    %34 = vector.load %arg12[%c0_18, %c2] : memref<4x290xf32, #tpu.memory_space<vmem>>, vector<4x256xf32>
    %35 = vector.shape_cast %20 : vector<1x256xi1> to vector<1x256xi1>
    %36 = vector.broadcast %35 : vector<1x256xi1> to vector<4x256xi1>
    %37 = arith.select %36, %34, %33 : vector<4x256xi1>, vector<4x256xf32>
    %38 = vector.shape_cast %22 : vector<1x256xi1> to vector<1x256xi1>
    %39 = vector.broadcast %38 : vector<1x256xi1> to vector<4x256xi1>
    %40 = arith.select %39, %33, %34 : vector<4x256xi1>, vector<4x256xf32>
    %41 = vector.extract_strided_slice %30 {offsets = [0, 0], sizes = [4, 1], strides = [1, 1]} : vector<4x36xf32> to vector<4x1xf32>
    %42 = vector.extract_strided_slice %37 {offsets = [0, 0], sizes = [1, 256], strides = [1, 1]} : vector<4x256xf32> to vector<1x256xf32>
    %43 = vector.broadcast %41 : vector<4x1xf32> to vector<4x256xf32>
    %44 = vector.broadcast %42 : vector<1x256xf32> to vector<4x256xf32>
    %45 = arith.mulf %43, %44 : vector<4x256xf32>
    %46 = arith.addf %31, %45 : vector<4x256xf32>
    %47 = vector.extract_strided_slice %30 {offsets = [0, 1], sizes = [4, 1], strides = [1, 1]} : vector<4x36xf32> to vector<4x1xf32>
    %48 = vector.extract_strided_slice %37 {offsets = [1, 0], sizes = [1, 256], strides = [1, 1]} : vector<4x256xf32> to vector<1x256xf32>
    %49 = vector.broadcast %47 : vector<4x1xf32> to vector<4x256xf32>
    %50 = vector.broadcast %48 : vector<1x256xf32> to vector<4x256xf32>
    %51 = arith.mulf %49, %50 : vector<4x256xf32>
    %52 = arith.addf %46, %51 : vector<4x256xf32>
    %53 = vector.extract_strided_slice %30 {offsets = [0, 2], sizes = [4, 1], strides = [1, 1]} : vector<4x36xf32> to vector<4x1xf32>
    %54 = vector.extract_strided_slice %37 {offsets = [2, 0], sizes = [1, 256], strides = [1, 1]} : vector<4x256xf32> to vector<1x256xf32>
    %55 = vector.broadcast %53 : vector<4x1xf32> to vector<4x256xf32>
    %56 = vector.broadcast %54 : vector<1x256xf32> to vector<4x256xf32>
    %57 = arith.mulf %55, %56 : vector<4x256xf32>
    %58 = arith.addf %52, %57 : vector<4x256xf32>
    %59 = vector.extract_strided_slice %30 {offsets = [0, 3], sizes = [4, 1], strides = [1, 1]} : vector<4x36xf32> to vector<4x1xf32>
    %60 = vector.extract_strided_slice %37 {offsets = [3, 0], sizes = [1, 256], strides = [1, 1]} : vector<4x256xf32> to vector<1x256xf32>
    %61 = vector.broadcast %59 : vector<4x1xf32> to vector<4x256xf32>
    %62 = vector.broadcast %60 : vector<1x256xf32> to vector<4x256xf32>
    %63 = arith.mulf %61, %62 : vector<4x256xf32>
    %64 = arith.addf %58, %63 : vector<4x256xf32>
    %65 = vector.extract_strided_slice %30 {offsets = [0, 4], sizes = [4, 1], strides = [1, 1]} : vector<4x36xf32> to vector<4x1xf32>
    %66 = vector.extract_strided_slice %32 {offsets = [0, 0], sizes = [1, 256], strides = [1, 1]} : vector<4x256xf32> to vector<1x256xf32>
    %67 = vector.broadcast %65 : vector<4x1xf32> to vector<4x256xf32>
    %68 = vector.broadcast %66 : vector<1x256xf32> to vector<4x256xf32>
    %69 = arith.mulf %67, %68 : vector<4x256xf32>
    %70 = arith.addf %64, %69 : vector<4x256xf32>
    %71 = vector.extract_strided_slice %30 {offsets = [0, 5], sizes = [4, 1], strides = [1, 1]} : vector<4x36xf32> to vector<4x1xf32>
    %72 = vector.extract_strided_slice %32 {offsets = [1, 0], sizes = [1, 256], strides = [1, 1]} : vector<4x256xf32> to vector<1x256xf32>
    %73 = vector.broadcast %71 : vector<4x1xf32> to vector<4x256xf32>
    %74 = vector.broadcast %72 : vector<1x256xf32> to vector<4x256xf32>
    %75 = arith.mulf %73, %74 : vector<4x256xf32>
    %76 = arith.addf %70, %75 : vector<4x256xf32>
    %77 = vector.extract_strided_slice %30 {offsets = [0, 6], sizes = [4, 1], strides = [1, 1]} : vector<4x36xf32> to vector<4x1xf32>
    %78 = vector.extract_strided_slice %32 {offsets = [2, 0], sizes = [1, 256], strides = [1, 1]} : vector<4x256xf32> to vector<1x256xf32>
    %79 = vector.broadcast %77 : vector<4x1xf32> to vector<4x256xf32>
    %80 = vector.broadcast %78 : vector<1x256xf32> to vector<4x256xf32>
    %81 = arith.mulf %79, %80 : vector<4x256xf32>
    %82 = arith.addf %76, %81 : vector<4x256xf32>
    %83 = vector.extract_strided_slice %30 {offsets = [0, 7], sizes = [4, 1], strides = [1, 1]} : vector<4x36xf32> to vector<4x1xf32>
    %84 = vector.extract_strided_slice %32 {offsets = [3, 0], sizes = [1, 256], strides = [1, 1]} : vector<4x256xf32> to vector<1x256xf32>
    %85 = vector.broadcast %83 : vector<4x1xf32> to vector<4x256xf32>
    %86 = vector.broadcast %84 : vector<1x256xf32> to vector<4x256xf32>
    %87 = arith.mulf %85, %86 : vector<4x256xf32>
    %88 = arith.addf %82, %87 : vector<4x256xf32>
    %89 = vector.extract_strided_slice %30 {offsets = [0, 8], sizes = [4, 1], strides = [1, 1]} : vector<4x36xf32> to vector<4x1xf32>
    %90 = vector.extract_strided_slice %40 {offsets = [0, 0], sizes = [1, 256], strides = [1, 1]} : vector<4x256xf32> to vector<1x256xf32>
    %91 = vector.broadcast %89 : vector<4x1xf32> to vector<4x256xf32>
    %92 = vector.broadcast %90 : vector<1x256xf32> to vector<4x256xf32>
    %93 = arith.mulf %91, %92 : vector<4x256xf32>
    %94 = arith.addf %88, %93 : vector<4x256xf32>
    %95 = vector.extract_strided_slice %30 {offsets = [0, 9], sizes = [4, 1], strides = [1, 1]} : vector<4x36xf32> to vector<4x1xf32>
    %96 = vector.extract_strided_slice %40 {offsets = [1, 0], sizes = [1, 256], strides = [1, 1]} : vector<4x256xf32> to vector<1x256xf32>
    %97 = vector.broadcast %95 : vector<4x1xf32> to vector<4x256xf32>
    %98 = vector.broadcast %96 : vector<1x256xf32> to vector<4x256xf32>
    %99 = arith.mulf %97, %98 : vector<4x256xf32>
    %100 = arith.addf %94, %99 : vector<4x256xf32>
    %101 = vector.extract_strided_slice %30 {offsets = [0, 10], sizes = [4, 1], strides = [1, 1]} : vector<4x36xf32> to vector<4x1xf32>
    %102 = vector.extract_strided_slice %40 {offsets = [2, 0], sizes = [1, 256], strides = [1, 1]} : vector<4x256xf32> to vector<1x256xf32>
    %103 = vector.broadcast %101 : vector<4x1xf32> to vector<4x256xf32>
    %104 = vector.broadcast %102 : vector<1x256xf32> to vector<4x256xf32>
    %105 = arith.mulf %103, %104 : vector<4x256xf32>
    %106 = arith.addf %100, %105 : vector<4x256xf32>
    %107 = vector.extract_strided_slice %30 {offsets = [0, 11], sizes = [4, 1], strides = [1, 1]} : vector<4x36xf32> to vector<4x1xf32>
    %108 = vector.extract_strided_slice %40 {offsets = [3, 0], sizes = [1, 256], strides = [1, 1]} : vector<4x256xf32> to vector<1x256xf32>
    %109 = vector.broadcast %107 : vector<4x1xf32> to vector<4x256xf32>
    %110 = vector.broadcast %108 : vector<1x256xf32> to vector<4x256xf32>
    %111 = arith.mulf %109, %110 : vector<4x256xf32>
    %112 = arith.addf %106, %111 : vector<4x256xf32>
    %c0_19 = arith.constant 0 : index
    %c17_20 = arith.constant 17 : index
    %113 = vector.load %arg12[%c0_19, %c17_20] : memref<4x290xf32, #tpu.memory_space<vmem>>, vector<4x256xf32>
    %c0_21 = arith.constant 0 : index
    %c16 = arith.constant 16 : index
    %114 = vector.load %arg12[%c0_21, %c16] : memref<4x290xf32, #tpu.memory_space<vmem>>, vector<4x256xf32>
    %c0_22 = arith.constant 0 : index
    %c18 = arith.constant 18 : index
    %115 = vector.load %arg12[%c0_22, %c18] : memref<4x290xf32, #tpu.memory_space<vmem>>, vector<4x256xf32>
    %116 = vector.shape_cast %20 : vector<1x256xi1> to vector<1x256xi1>
    %117 = vector.broadcast %116 : vector<1x256xi1> to vector<4x256xi1>
    %118 = arith.select %117, %115, %114 : vector<4x256xi1>, vector<4x256xf32>
    %119 = vector.shape_cast %22 : vector<1x256xi1> to vector<1x256xi1>
    %120 = vector.broadcast %119 : vector<1x256xi1> to vector<4x256xi1>
    %121 = arith.select %120, %114, %115 : vector<4x256xi1>, vector<4x256xf32>
    %122 = vector.extract_strided_slice %30 {offsets = [0, 12], sizes = [4, 1], strides = [1, 1]} : vector<4x36xf32> to vector<4x1xf32>
    %123 = vector.extract_strided_slice %118 {offsets = [0, 0], sizes = [1, 256], strides = [1, 1]} : vector<4x256xf32> to vector<1x256xf32>
    %124 = vector.broadcast %122 : vector<4x1xf32> to vector<4x256xf32>
    %125 = vector.broadcast %123 : vector<1x256xf32> to vector<4x256xf32>
    %126 = arith.mulf %124, %125 : vector<4x256xf32>
    %127 = arith.addf %112, %126 : vector<4x256xf32>
    %128 = vector.extract_strided_slice %30 {offsets = [0, 13], sizes = [4, 1], strides = [1, 1]} : vector<4x36xf32> to vector<4x1xf32>
    %129 = vector.extract_strided_slice %118 {offsets = [1, 0], sizes = [1, 256], strides = [1, 1]} : vector<4x256xf32> to vector<1x256xf32>
    %130 = vector.broadcast %128 : vector<4x1xf32> to vector<4x256xf32>
    %131 = vector.broadcast %129 : vector<1x256xf32> to vector<4x256xf32>
    %132 = arith.mulf %130, %131 : vector<4x256xf32>
    %133 = arith.addf %127, %132 : vector<4x256xf32>
    %134 = vector.extract_strided_slice %30 {offsets = [0, 14], sizes = [4, 1], strides = [1, 1]} : vector<4x36xf32> to vector<4x1xf32>
    %135 = vector.extract_strided_slice %118 {offsets = [2, 0], sizes = [1, 256], strides = [1, 1]} : vector<4x256xf32> to vector<1x256xf32>
    %136 = vector.broadcast %134 : vector<4x1xf32> to vector<4x256xf32>
    %137 = vector.broadcast %135 : vector<1x256xf32> to vector<4x256xf32>
    %138 = arith.mulf %136, %137 : vector<4x256xf32>
    %139 = arith.addf %133, %138 : vector<4x256xf32>
    %140 = vector.extract_strided_slice %30 {offsets = [0, 15], sizes = [4, 1], strides = [1, 1]} : vector<4x36xf32> to vector<4x1xf32>
    %141 = vector.extract_strided_slice %118 {offsets = [3, 0], sizes = [1, 256], strides = [1, 1]} : vector<4x256xf32> to vector<1x256xf32>
    %142 = vector.broadcast %140 : vector<4x1xf32> to vector<4x256xf32>
    %143 = vector.broadcast %141 : vector<1x256xf32> to vector<4x256xf32>
    %144 = arith.mulf %142, %143 : vector<4x256xf32>
    %145 = arith.addf %139, %144 : vector<4x256xf32>
    %146 = vector.extract_strided_slice %30 {offsets = [0, 16], sizes = [4, 1], strides = [1, 1]} : vector<4x36xf32> to vector<4x1xf32>
    %147 = vector.extract_strided_slice %113 {offsets = [0, 0], sizes = [1, 256], strides = [1, 1]} : vector<4x256xf32> to vector<1x256xf32>
    %148 = vector.broadcast %146 : vector<4x1xf32> to vector<4x256xf32>
    %149 = vector.broadcast %147 : vector<1x256xf32> to vector<4x256xf32>
    %150 = arith.mulf %148, %149 : vector<4x256xf32>
    %151 = arith.addf %145, %150 : vector<4x256xf32>
    %152 = vector.extract_strided_slice %30 {offsets = [0, 17], sizes = [4, 1], strides = [1, 1]} : vector<4x36xf32> to vector<4x1xf32>
    %153 = vector.extract_strided_slice %113 {offsets = [1, 0], sizes = [1, 256], strides = [1, 1]} : vector<4x256xf32> to vector<1x256xf32>
    %154 = vector.broadcast %152 : vector<4x1xf32> to vector<4x256xf32>
    %155 = vector.broadcast %153 : vector<1x256xf32> to vector<4x256xf32>
    %156 = arith.mulf %154, %155 : vector<4x256xf32>
    %157 = arith.addf %151, %156 : vector<4x256xf32>
    %158 = vector.extract_strided_slice %30 {offsets = [0, 18], sizes = [4, 1], strides = [1, 1]} : vector<4x36xf32> to vector<4x1xf32>
    %159 = vector.extract_strided_slice %113 {offsets = [2, 0], sizes = [1, 256], strides = [1, 1]} : vector<4x256xf32> to vector<1x256xf32>
    %160 = vector.broadcast %158 : vector<4x1xf32> to vector<4x256xf32>
    %161 = vector.broadcast %159 : vector<1x256xf32> to vector<4x256xf32>
    %162 = arith.mulf %160, %161 : vector<4x256xf32>
    %163 = arith.addf %157, %162 : vector<4x256xf32>
    %164 = vector.extract_strided_slice %30 {offsets = [0, 19], sizes = [4, 1], strides = [1, 1]} : vector<4x36xf32> to vector<4x1xf32>
    %165 = vector.extract_strided_slice %113 {offsets = [3, 0], sizes = [1, 256], strides = [1, 1]} : vector<4x256xf32> to vector<1x256xf32>
    %166 = vector.broadcast %164 : vector<4x1xf32> to vector<4x256xf32>
    %167 = vector.broadcast %165 : vector<1x256xf32> to vector<4x256xf32>
    %168 = arith.mulf %166, %167 : vector<4x256xf32>
    %169 = arith.addf %163, %168 : vector<4x256xf32>
    %170 = vector.extract_strided_slice %30 {offsets = [0, 20], sizes = [4, 1], strides = [1, 1]} : vector<4x36xf32> to vector<4x1xf32>
    %171 = vector.extract_strided_slice %121 {offsets = [0, 0], sizes = [1, 256], strides = [1, 1]} : vector<4x256xf32> to vector<1x256xf32>
    %172 = vector.broadcast %170 : vector<4x1xf32> to vector<4x256xf32>
    %173 = vector.broadcast %171 : vector<1x256xf32> to vector<4x256xf32>
    %174 = arith.mulf %172, %173 : vector<4x256xf32>
    %175 = arith.addf %169, %174 : vector<4x256xf32>
    %176 = vector.extract_strided_slice %30 {offsets = [0, 21], sizes = [4, 1], strides = [1, 1]} : vector<4x36xf32> to vector<4x1xf32>
    %177 = vector.extract_strided_slice %121 {offsets = [1, 0], sizes = [1, 256], strides = [1, 1]} : vector<4x256xf32> to vector<1x256xf32>
    %178 = vector.broadcast %176 : vector<4x1xf32> to vector<4x256xf32>
    %179 = vector.broadcast %177 : vector<1x256xf32> to vector<4x256xf32>
    %180 = arith.mulf %178, %179 : vector<4x256xf32>
    %181 = arith.addf %175, %180 : vector<4x256xf32>
    %182 = vector.extract_strided_slice %30 {offsets = [0, 22], sizes = [4, 1], strides = [1, 1]} : vector<4x36xf32> to vector<4x1xf32>
    %183 = vector.extract_strided_slice %121 {offsets = [2, 0], sizes = [1, 256], strides = [1, 1]} : vector<4x256xf32> to vector<1x256xf32>
    %184 = vector.broadcast %182 : vector<4x1xf32> to vector<4x256xf32>
    %185 = vector.broadcast %183 : vector<1x256xf32> to vector<4x256xf32>
    %186 = arith.mulf %184, %185 : vector<4x256xf32>
    %187 = arith.addf %181, %186 : vector<4x256xf32>
    %188 = vector.extract_strided_slice %30 {offsets = [0, 23], sizes = [4, 1], strides = [1, 1]} : vector<4x36xf32> to vector<4x1xf32>
    %189 = vector.extract_strided_slice %121 {offsets = [3, 0], sizes = [1, 256], strides = [1, 1]} : vector<4x256xf32> to vector<1x256xf32>
    %190 = vector.broadcast %188 : vector<4x1xf32> to vector<4x256xf32>
    %191 = vector.broadcast %189 : vector<1x256xf32> to vector<4x256xf32>
    %192 = arith.mulf %190, %191 : vector<4x256xf32>
    %193 = arith.addf %187, %192 : vector<4x256xf32>
    %c0_23 = arith.constant 0 : index
    %c33 = arith.constant 33 : index
    %194 = vector.load %arg12[%c0_23, %c33] : memref<4x290xf32, #tpu.memory_space<vmem>>, vector<4x256xf32>
    %c0_24 = arith.constant 0 : index
    %c32 = arith.constant 32 : index
    %195 = vector.load %arg12[%c0_24, %c32] : memref<4x290xf32, #tpu.memory_space<vmem>>, vector<4x256xf32>
    %c0_25 = arith.constant 0 : index
    %c34 = arith.constant 34 : index
    %196 = vector.load %arg12[%c0_25, %c34] : memref<4x290xf32, #tpu.memory_space<vmem>>, vector<4x256xf32>
    %197 = vector.shape_cast %20 : vector<1x256xi1> to vector<1x256xi1>
    %198 = vector.broadcast %197 : vector<1x256xi1> to vector<4x256xi1>
    %199 = arith.select %198, %196, %195 : vector<4x256xi1>, vector<4x256xf32>
    %200 = vector.shape_cast %22 : vector<1x256xi1> to vector<1x256xi1>
    %201 = vector.broadcast %200 : vector<1x256xi1> to vector<4x256xi1>
    %202 = arith.select %201, %195, %196 : vector<4x256xi1>, vector<4x256xf32>
    %203 = vector.extract_strided_slice %30 {offsets = [0, 24], sizes = [4, 1], strides = [1, 1]} : vector<4x36xf32> to vector<4x1xf32>
    %204 = vector.extract_strided_slice %199 {offsets = [0, 0], sizes = [1, 256], strides = [1, 1]} : vector<4x256xf32> to vector<1x256xf32>
    %205 = vector.broadcast %203 : vector<4x1xf32> to vector<4x256xf32>
    %206 = vector.broadcast %204 : vector<1x256xf32> to vector<4x256xf32>
    %207 = arith.mulf %205, %206 : vector<4x256xf32>
    %208 = arith.addf %193, %207 : vector<4x256xf32>
    %209 = vector.extract_strided_slice %30 {offsets = [0, 25], sizes = [4, 1], strides = [1, 1]} : vector<4x36xf32> to vector<4x1xf32>
    %210 = vector.extract_strided_slice %199 {offsets = [1, 0], sizes = [1, 256], strides = [1, 1]} : vector<4x256xf32> to vector<1x256xf32>
    %211 = vector.broadcast %209 : vector<4x1xf32> to vector<4x256xf32>
    %212 = vector.broadcast %210 : vector<1x256xf32> to vector<4x256xf32>
    %213 = arith.mulf %211, %212 : vector<4x256xf32>
    %214 = arith.addf %208, %213 : vector<4x256xf32>
    %215 = vector.extract_strided_slice %30 {offsets = [0, 26], sizes = [4, 1], strides = [1, 1]} : vector<4x36xf32> to vector<4x1xf32>
    %216 = vector.extract_strided_slice %199 {offsets = [2, 0], sizes = [1, 256], strides = [1, 1]} : vector<4x256xf32> to vector<1x256xf32>
    %217 = vector.broadcast %215 : vector<4x1xf32> to vector<4x256xf32>
    %218 = vector.broadcast %216 : vector<1x256xf32> to vector<4x256xf32>
    %219 = arith.mulf %217, %218 : vector<4x256xf32>
    %220 = arith.addf %214, %219 : vector<4x256xf32>
    %221 = vector.extract_strided_slice %30 {offsets = [0, 27], sizes = [4, 1], strides = [1, 1]} : vector<4x36xf32> to vector<4x1xf32>
    %222 = vector.extract_strided_slice %199 {offsets = [3, 0], sizes = [1, 256], strides = [1, 1]} : vector<4x256xf32> to vector<1x256xf32>
    %223 = vector.broadcast %221 : vector<4x1xf32> to vector<4x256xf32>
    %224 = vector.broadcast %222 : vector<1x256xf32> to vector<4x256xf32>
    %225 = arith.mulf %223, %224 : vector<4x256xf32>
    %226 = arith.addf %220, %225 : vector<4x256xf32>
    %227 = vector.extract_strided_slice %30 {offsets = [0, 28], sizes = [4, 1], strides = [1, 1]} : vector<4x36xf32> to vector<4x1xf32>
    %228 = vector.extract_strided_slice %194 {offsets = [0, 0], sizes = [1, 256], strides = [1, 1]} : vector<4x256xf32> to vector<1x256xf32>
    %229 = vector.broadcast %227 : vector<4x1xf32> to vector<4x256xf32>
    %230 = vector.broadcast %228 : vector<1x256xf32> to vector<4x256xf32>
    %231 = arith.mulf %229, %230 : vector<4x256xf32>
    %232 = arith.addf %226, %231 : vector<4x256xf32>
    %233 = vector.extract_strided_slice %30 {offsets = [0, 29], sizes = [4, 1], strides = [1, 1]} : vector<4x36xf32> to vector<4x1xf32>
    %234 = vector.extract_strided_slice %194 {offsets = [1, 0], sizes = [1, 256], strides = [1, 1]} : vector<4x256xf32> to vector<1x256xf32>
    %235 = vector.broadcast %233 : vector<4x1xf32> to vector<4x256xf32>
    %236 = vector.broadcast %234 : vector<1x256xf32> to vector<4x256xf32>
    %237 = arith.mulf %235, %236 : vector<4x256xf32>
    %238 = arith.addf %232, %237 : vector<4x256xf32>
    %239 = vector.extract_strided_slice %30 {offsets = [0, 30], sizes = [4, 1], strides = [1, 1]} : vector<4x36xf32> to vector<4x1xf32>
    %240 = vector.extract_strided_slice %194 {offsets = [2, 0], sizes = [1, 256], strides = [1, 1]} : vector<4x256xf32> to vector<1x256xf32>
    %241 = vector.broadcast %239 : vector<4x1xf32> to vector<4x256xf32>
    %242 = vector.broadcast %240 : vector<1x256xf32> to vector<4x256xf32>
    %243 = arith.mulf %241, %242 : vector<4x256xf32>
    %244 = arith.addf %238, %243 : vector<4x256xf32>
    %245 = vector.extract_strided_slice %30 {offsets = [0, 31], sizes = [4, 1], strides = [1, 1]} : vector<4x36xf32> to vector<4x1xf32>
    %246 = vector.extract_strided_slice %194 {offsets = [3, 0], sizes = [1, 256], strides = [1, 1]} : vector<4x256xf32> to vector<1x256xf32>
    %247 = vector.broadcast %245 : vector<4x1xf32> to vector<4x256xf32>
    %248 = vector.broadcast %246 : vector<1x256xf32> to vector<4x256xf32>
    %249 = arith.mulf %247, %248 : vector<4x256xf32>
    %250 = arith.addf %244, %249 : vector<4x256xf32>
    %251 = vector.extract_strided_slice %30 {offsets = [0, 32], sizes = [4, 1], strides = [1, 1]} : vector<4x36xf32> to vector<4x1xf32>
    %252 = vector.extract_strided_slice %202 {offsets = [0, 0], sizes = [1, 256], strides = [1, 1]} : vector<4x256xf32> to vector<1x256xf32>
    %253 = vector.broadcast %251 : vector<4x1xf32> to vector<4x256xf32>
    %254 = vector.broadcast %252 : vector<1x256xf32> to vector<4x256xf32>
    %255 = arith.mulf %253, %254 : vector<4x256xf32>
    %256 = arith.addf %250, %255 : vector<4x256xf32>
    %257 = vector.extract_strided_slice %30 {offsets = [0, 33], sizes = [4, 1], strides = [1, 1]} : vector<4x36xf32> to vector<4x1xf32>
    %258 = vector.extract_strided_slice %202 {offsets = [1, 0], sizes = [1, 256], strides = [1, 1]} : vector<4x256xf32> to vector<1x256xf32>
    %259 = vector.broadcast %257 : vector<4x1xf32> to vector<4x256xf32>
    %260 = vector.broadcast %258 : vector<1x256xf32> to vector<4x256xf32>
    %261 = arith.mulf %259, %260 : vector<4x256xf32>
    %262 = arith.addf %256, %261 : vector<4x256xf32>
    %263 = vector.extract_strided_slice %30 {offsets = [0, 34], sizes = [4, 1], strides = [1, 1]} : vector<4x36xf32> to vector<4x1xf32>
    %264 = vector.extract_strided_slice %202 {offsets = [2, 0], sizes = [1, 256], strides = [1, 1]} : vector<4x256xf32> to vector<1x256xf32>
    %265 = vector.broadcast %263 : vector<4x1xf32> to vector<4x256xf32>
    %266 = vector.broadcast %264 : vector<1x256xf32> to vector<4x256xf32>
    %267 = arith.mulf %265, %266 : vector<4x256xf32>
    %268 = arith.addf %262, %267 : vector<4x256xf32>
    %269 = vector.extract_strided_slice %30 {offsets = [0, 35], sizes = [4, 1], strides = [1, 1]} : vector<4x36xf32> to vector<4x1xf32>
    %270 = vector.extract_strided_slice %202 {offsets = [3, 0], sizes = [1, 256], strides = [1, 1]} : vector<4x256xf32> to vector<1x256xf32>
    %271 = vector.broadcast %269 : vector<4x1xf32> to vector<4x256xf32>
    %272 = vector.broadcast %270 : vector<1x256xf32> to vector<4x256xf32>
    %273 = arith.mulf %271, %272 : vector<4x256xf32>
    %274 = arith.addf %268, %273 : vector<4x256xf32>
    %c0_26 = arith.constant 0 : index
    %c0_27 = arith.constant 0 : index
    %275 = vector.load %arg3[%c0_26, %c0_27] : memref<4x1xf32, #tpu.memory_space<vmem>>, vector<4x1xf32>
    %276 = vector.broadcast %275 : vector<4x1xf32> to vector<4x256xf32>
    %277 = arith.addf %274, %276 : vector<4x256xf32>
    %cst_28 = arith.constant 0.000000e+00 : f32
    %278 = vector.broadcast %cst_28 : f32 to vector<4x256xf32>
    %279 = arith.maximumf %277, %278 : vector<4x256xf32>
    %c0_29 = arith.constant 0 : index
    %c17_30 = arith.constant 17 : index
    %280 = vector.load %arg12[%c0_29, %c17_30] : memref<4x290xf32, #tpu.memory_space<vmem>>, vector<4x256xf32>
    tpu.vector_store %arg12[%c0_29, %c17_30], %279 {strides = array<i32>} : memref<4x290xf32, #tpu.memory_space<vmem>>, vector<4x256xf32>,
    %281 = vector.extract_strided_slice %279 {offsets = [0, 16], sizes = [4, 16], strides = [1, 1]} : vector<4x256xf32> to vector<4x16xf32>
    %c0_31 = arith.constant 0 : index
    %c1_32 = arith.constant 1 : index
    %282 = vector.load %arg12[%c0_31, %c1_32] : memref<4x290xf32, #tpu.memory_space<vmem>>, vector<4x16xf32>
    tpu.vector_store %arg12[%c0_31, %c1_32], %281 {strides = array<i32>} : memref<4x290xf32, #tpu.memory_space<vmem>>, vector<4x16xf32>,
    %283 = vector.extract_strided_slice %279 {offsets = [0, 224], sizes = [4, 16], strides = [1, 1]} : vector<4x256xf32> to vector<4x16xf32>
    %c0_33 = arith.constant 0 : index
    %c273_34 = arith.constant 273 : index
    %284 = vector.load %arg12[%c0_33, %c273_34] : memref<4x290xf32, #tpu.memory_space<vmem>>, vector<4x16xf32>
    tpu.vector_store %arg12[%c0_33, %c273_34], %283 {strides = array<i32>} : memref<4x290xf32, #tpu.memory_space<vmem>>, vector<4x16xf32>,
    %c0_35 = arith.constant 0 : index
    %c0_36 = arith.constant 0 : index
    %285 = vector.load %arg4[%c0_35, %c0_36] : memref<4x36xf32, #tpu.memory_space<vmem>>, vector<4x36xf32>
    %cst_37 = arith.constant 0.000000e+00 : f32
    %286 = vector.broadcast %cst_37 : f32 to vector<4x256xf32>
    %c0_38 = arith.constant 0 : index
    %c1_39 = arith.constant 1 : index
    %287 = vector.load %arg12[%c0_38, %c1_39] : memref<4x290xf32, #tpu.memory_space<vmem>>, vector<4x256xf32>
    %c0_40 = arith.constant 0 : index
    %c0_41 = arith.constant 0 : index
    %288 = vector.load %arg12[%c0_40, %c0_41] : memref<4x290xf32, #tpu.memory_space<vmem>>, vector<4x256xf32>
    %c0_42 = arith.constant 0 : index
    %c2_43 = arith.constant 2 : index
    %289 = vector.load %arg12[%c0_42, %c2_43] : memref<4x290xf32, #tpu.memory_space<vmem>>, vector<4x256xf32>
    %290 = vector.shape_cast %20 : vector<1x256xi1> to vector<1x256xi1>
    %291 = vector.broadcast %290 : vector<1x256xi1> to vector<4x256xi1>
    %292 = arith.select %291, %289, %288 : vector<4x256xi1>, vector<4x256xf32>
    %293 = vector.shape_cast %22 : vector<1x256xi1> to vector<1x256xi1>
    %294 = vector.broadcast %293 : vector<1x256xi1> to vector<4x256xi1>
    %295 = arith.select %294, %288, %289 : vector<4x256xi1>, vector<4x256xf32>
    %296 = vector.extract_strided_slice %285 {offsets = [0, 0], sizes = [4, 1], strides = [1, 1]} : vector<4x36xf32> to vector<4x1xf32>
    %297 = vector.extract_strided_slice %292 {offsets = [0, 0], sizes = [1, 256], strides = [1, 1]} : vector<4x256xf32> to vector<1x256xf32>
    %298 = vector.broadcast %296 : vector<4x1xf32> to vector<4x256xf32>
    %299 = vector.broadcast %297 : vector<1x256xf32> to vector<4x256xf32>
    %300 = arith.mulf %298, %299 : vector<4x256xf32>
    %301 = arith.addf %286, %300 : vector<4x256xf32>
    %302 = vector.extract_strided_slice %285 {offsets = [0, 1], sizes = [4, 1], strides = [1, 1]} : vector<4x36xf32> to vector<4x1xf32>
    %303 = vector.extract_strided_slice %292 {offsets = [1, 0], sizes = [1, 256], strides = [1, 1]} : vector<4x256xf32> to vector<1x256xf32>
    %304 = vector.broadcast %302 : vector<4x1xf32> to vector<4x256xf32>
    %305 = vector.broadcast %303 : vector<1x256xf32> to vector<4x256xf32>
    %306 = arith.mulf %304, %305 : vector<4x256xf32>
    %307 = arith.addf %301, %306 : vector<4x256xf32>
    %308 = vector.extract_strided_slice %285 {offsets = [0, 2], sizes = [4, 1], strides = [1, 1]} : vector<4x36xf32> to vector<4x1xf32>
    %309 = vector.extract_strided_slice %292 {offsets = [2, 0], sizes = [1, 256], strides = [1, 1]} : vector<4x256xf32> to vector<1x256xf32>
    %310 = vector.broadcast %308 : vector<4x1xf32> to vector<4x256xf32>
    %311 = vector.broadcast %309 : vector<1x256xf32> to vector<4x256xf32>
    %312 = arith.mulf %310, %311 : vector<4x256xf32>
    %313 = arith.addf %307, %312 : vector<4x256xf32>
    %314 = vector.extract_strided_slice %285 {offsets = [0, 3], sizes = [4, 1], strides = [1, 1]} : vector<4x36xf32> to vector<4x1xf32>
    %315 = vector.extract_strided_slice %292 {offsets = [3, 0], sizes = [1, 256], strides = [1, 1]} : vector<4x256xf32> to vector<1x256xf32>
    %316 = vector.broadcast %314 : vector<4x1xf32> to vector<4x256xf32>
    %317 = vector.broadcast %315 : vector<1x256xf32> to vector<4x256xf32>
    %318 = arith.mulf %316, %317 : vector<4x256xf32>
    %319 = arith.addf %313, %318 : vector<4x256xf32>
    %320 = vector.extract_strided_slice %285 {offsets = [0, 4], sizes = [4, 1], strides = [1, 1]} : vector<4x36xf32> to vector<4x1xf32>
    %321 = vector.extract_strided_slice %287 {offsets = [0, 0], sizes = [1, 256], strides = [1, 1]} : vector<4x256xf32> to vector<1x256xf32>
    %322 = vector.broadcast %320 : vector<4x1xf32> to vector<4x256xf32>
    %323 = vector.broadcast %321 : vector<1x256xf32> to vector<4x256xf32>
    %324 = arith.mulf %322, %323 : vector<4x256xf32>
    %325 = arith.addf %319, %324 : vector<4x256xf32>
    %326 = vector.extract_strided_slice %285 {offsets = [0, 5], sizes = [4, 1], strides = [1, 1]} : vector<4x36xf32> to vector<4x1xf32>
    %327 = vector.extract_strided_slice %287 {offsets = [1, 0], sizes = [1, 256], strides = [1, 1]} : vector<4x256xf32> to vector<1x256xf32>
    %328 = vector.broadcast %326 : vector<4x1xf32> to vector<4x256xf32>
    %329 = vector.broadcast %327 : vector<1x256xf32> to vector<4x256xf32>
    %330 = arith.mulf %328, %329 : vector<4x256xf32>
    %331 = arith.addf %325, %330 : vector<4x256xf32>
    %332 = vector.extract_strided_slice %285 {offsets = [0, 6], sizes = [4, 1], strides = [1, 1]} : vector<4x36xf32> to vector<4x1xf32>
    %333 = vector.extract_strided_slice %287 {offsets = [2, 0], sizes = [1, 256], strides = [1, 1]} : vector<4x256xf32> to vector<1x256xf32>
    %334 = vector.broadcast %332 : vector<4x1xf32> to vector<4x256xf32>
    %335 = vector.broadcast %333 : vector<1x256xf32> to vector<4x256xf32>
    %336 = arith.mulf %334, %335 : vector<4x256xf32>
    %337 = arith.addf %331, %336 : vector<4x256xf32>
    %338 = vector.extract_strided_slice %285 {offsets = [0, 7], sizes = [4, 1], strides = [1, 1]} : vector<4x36xf32> to vector<4x1xf32>
    %339 = vector.extract_strided_slice %287 {offsets = [3, 0], sizes = [1, 256], strides = [1, 1]} : vector<4x256xf32> to vector<1x256xf32>
    %340 = vector.broadcast %338 : vector<4x1xf32> to vector<4x256xf32>
    %341 = vector.broadcast %339 : vector<1x256xf32> to vector<4x256xf32>
    %342 = arith.mulf %340, %341 : vector<4x256xf32>
    %343 = arith.addf %337, %342 : vector<4x256xf32>
    %344 = vector.extract_strided_slice %285 {offsets = [0, 8], sizes = [4, 1], strides = [1, 1]} : vector<4x36xf32> to vector<4x1xf32>
    %345 = vector.extract_strided_slice %295 {offsets = [0, 0], sizes = [1, 256], strides = [1, 1]} : vector<4x256xf32> to vector<1x256xf32>
    %346 = vector.broadcast %344 : vector<4x1xf32> to vector<4x256xf32>
    %347 = vector.broadcast %345 : vector<1x256xf32> to vector<4x256xf32>
    %348 = arith.mulf %346, %347 : vector<4x256xf32>
    %349 = arith.addf %343, %348 : vector<4x256xf32>
    %350 = vector.extract_strided_slice %285 {offsets = [0, 9], sizes = [4, 1], strides = [1, 1]} : vector<4x36xf32> to vector<4x1xf32>
    %351 = vector.extract_strided_slice %295 {offsets = [1, 0], sizes = [1, 256], strides = [1, 1]} : vector<4x256xf32> to vector<1x256xf32>
    %352 = vector.broadcast %350 : vector<4x1xf32> to vector<4x256xf32>
    %353 = vector.broadcast %351 : vector<1x256xf32> to vector<4x256xf32>
    %354 = arith.mulf %352, %353 : vector<4x256xf32>
    %355 = arith.addf %349, %354 : vector<4x256xf32>
    %356 = vector.extract_strided_slice %285 {offsets = [0, 10], sizes = [4, 1], strides = [1, 1]} : vector<4x36xf32> to vector<4x1xf32>
    %357 = vector.extract_strided_slice %295 {offsets = [2, 0], sizes = [1, 256], strides = [1, 1]} : vector<4x256xf32> to vector<1x256xf32>
    %358 = vector.broadcast %356 : vector<4x1xf32> to vector<4x256xf32>
    %359 = vector.broadcast %357 : vector<1x256xf32> to vector<4x256xf32>
    %360 = arith.mulf %358, %359 : vector<4x256xf32>
    %361 = arith.addf %355, %360 : vector<4x256xf32>
    %362 = vector.extract_strided_slice %285 {offsets = [0, 11], sizes = [4, 1], strides = [1, 1]} : vector<4x36xf32> to vector<4x1xf32>
    %363 = vector.extract_strided_slice %295 {offsets = [3, 0], sizes = [1, 256], strides = [1, 1]} : vector<4x256xf32> to vector<1x256xf32>
    %364 = vector.broadcast %362 : vector<4x1xf32> to vector<4x256xf32>
    %365 = vector.broadcast %363 : vector<1x256xf32> to vector<4x256xf32>
    %366 = arith.mulf %364, %365 : vector<4x256xf32>
    %367 = arith.addf %361, %366 : vector<4x256xf32>
    %c0_44 = arith.constant 0 : index
    %c17_45 = arith.constant 17 : index
    %368 = vector.load %arg12[%c0_44, %c17_45] : memref<4x290xf32, #tpu.memory_space<vmem>>, vector<4x256xf32>
    %c0_46 = arith.constant 0 : index
    %c16_47 = arith.constant 16 : index
    %369 = vector.load %arg12[%c0_46, %c16_47] : memref<4x290xf32, #tpu.memory_space<vmem>>, vector<4x256xf32>
    %c0_48 = arith.constant 0 : index
    %c18_49 = arith.constant 18 : index
    %370 = vector.load %arg12[%c0_48, %c18_49] : memref<4x290xf32, #tpu.memory_space<vmem>>, vector<4x256xf32>
    %371 = vector.shape_cast %20 : vector<1x256xi1> to vector<1x256xi1>
    %372 = vector.broadcast %371 : vector<1x256xi1> to vector<4x256xi1>
    %373 = arith.select %372, %370, %369 : vector<4x256xi1>, vector<4x256xf32>
    %374 = vector.shape_cast %22 : vector<1x256xi1> to vector<1x256xi1>
    %375 = vector.broadcast %374 : vector<1x256xi1> to vector<4x256xi1>
    %376 = arith.select %375, %369, %370 : vector<4x256xi1>, vector<4x256xf32>
    %377 = vector.extract_strided_slice %285 {offsets = [0, 12], sizes = [4, 1], strides = [1, 1]} : vector<4x36xf32> to vector<4x1xf32>
    %378 = vector.extract_strided_slice %373 {offsets = [0, 0], sizes = [1, 256], strides = [1, 1]} : vector<4x256xf32> to vector<1x256xf32>
    %379 = vector.broadcast %377 : vector<4x1xf32> to vector<4x256xf32>
    %380 = vector.broadcast %378 : vector<1x256xf32> to vector<4x256xf32>
    %381 = arith.mulf %379, %380 : vector<4x256xf32>
    %382 = arith.addf %367, %381 : vector<4x256xf32>
    %383 = vector.extract_strided_slice %285 {offsets = [0, 13], sizes = [4, 1], strides = [1, 1]} : vector<4x36xf32> to vector<4x1xf32>
    %384 = vector.extract_strided_slice %373 {offsets = [1, 0], sizes = [1, 256], strides = [1, 1]} : vector<4x256xf32> to vector<1x256xf32>
    %385 = vector.broadcast %383 : vector<4x1xf32> to vector<4x256xf32>
    %386 = vector.broadcast %384 : vector<1x256xf32> to vector<4x256xf32>
    %387 = arith.mulf %385, %386 : vector<4x256xf32>
    %388 = arith.addf %382, %387 : vector<4x256xf32>
    %389 = vector.extract_strided_slice %285 {offsets = [0, 14], sizes = [4, 1], strides = [1, 1]} : vector<4x36xf32> to vector<4x1xf32>
    %390 = vector.extract_strided_slice %373 {offsets = [2, 0], sizes = [1, 256], strides = [1, 1]} : vector<4x256xf32> to vector<1x256xf32>
    %391 = vector.broadcast %389 : vector<4x1xf32> to vector<4x256xf32>
    %392 = vector.broadcast %390 : vector<1x256xf32> to vector<4x256xf32>
    %393 = arith.mulf %391, %392 : vector<4x256xf32>
    %394 = arith.addf %388, %393 : vector<4x256xf32>
    %395 = vector.extract_strided_slice %285 {offsets = [0, 15], sizes = [4, 1], strides = [1, 1]} : vector<4x36xf32> to vector<4x1xf32>
    %396 = vector.extract_strided_slice %373 {offsets = [3, 0], sizes = [1, 256], strides = [1, 1]} : vector<4x256xf32> to vector<1x256xf32>
    %397 = vector.broadcast %395 : vector<4x1xf32> to vector<4x256xf32>
    %398 = vector.broadcast %396 : vector<1x256xf32> to vector<4x256xf32>
    %399 = arith.mulf %397, %398 : vector<4x256xf32>
    %400 = arith.addf %394, %399 : vector<4x256xf32>
    %401 = vector.extract_strided_slice %285 {offsets = [0, 16], sizes = [4, 1], strides = [1, 1]} : vector<4x36xf32> to vector<4x1xf32>
    %402 = vector.extract_strided_slice %368 {offsets = [0, 0], sizes = [1, 256], strides = [1, 1]} : vector<4x256xf32> to vector<1x256xf32>
    %403 = vector.broadcast %401 : vector<4x1xf32> to vector<4x256xf32>
    %404 = vector.broadcast %402 : vector<1x256xf32> to vector<4x256xf32>
    %405 = arith.mulf %403, %404 : vector<4x256xf32>
    %406 = arith.addf %400, %405 : vector<4x256xf32>
    %407 = vector.extract_strided_slice %285 {offsets = [0, 17], sizes = [4, 1], strides = [1, 1]} : vector<4x36xf32> to vector<4x1xf32>
    %408 = vector.extract_strided_slice %368 {offsets = [1, 0], sizes = [1, 256], strides = [1, 1]} : vector<4x256xf32> to vector<1x256xf32>
    %409 = vector.broadcast %407 : vector<4x1xf32> to vector<4x256xf32>
    %410 = vector.broadcast %408 : vector<1x256xf32> to vector<4x256xf32>
    %411 = arith.mulf %409, %410 : vector<4x256xf32>
    %412 = arith.addf %406, %411 : vector<4x256xf32>
    %413 = vector.extract_strided_slice %285 {offsets = [0, 18], sizes = [4, 1], strides = [1, 1]} : vector<4x36xf32> to vector<4x1xf32>
    %414 = vector.extract_strided_slice %368 {offsets = [2, 0], sizes = [1, 256], strides = [1, 1]} : vector<4x256xf32> to vector<1x256xf32>
    %415 = vector.broadcast %413 : vector<4x1xf32> to vector<4x256xf32>
    %416 = vector.broadcast %414 : vector<1x256xf32> to vector<4x256xf32>
    %417 = arith.mulf %415, %416 : vector<4x256xf32>
    %418 = arith.addf %412, %417 : vector<4x256xf32>
    %419 = vector.extract_strided_slice %285 {offsets = [0, 19], sizes = [4, 1], strides = [1, 1]} : vector<4x36xf32> to vector<4x1xf32>
    %420 = vector.extract_strided_slice %368 {offsets = [3, 0], sizes = [1, 256], strides = [1, 1]} : vector<4x256xf32> to vector<1x256xf32>
    %421 = vector.broadcast %419 : vector<4x1xf32> to vector<4x256xf32>
    %422 = vector.broadcast %420 : vector<1x256xf32> to vector<4x256xf32>
    %423 = arith.mulf %421, %422 : vector<4x256xf32>
    %424 = arith.addf %418, %423 : vector<4x256xf32>
    %425 = vector.extract_strided_slice %285 {offsets = [0, 20], sizes = [4, 1], strides = [1, 1]} : vector<4x36xf32> to vector<4x1xf32>
    %426 = vector.extract_strided_slice %376 {offsets = [0, 0], sizes = [1, 256], strides = [1, 1]} : vector<4x256xf32> to vector<1x256xf32>
    %427 = vector.broadcast %425 : vector<4x1xf32> to vector<4x256xf32>
    %428 = vector.broadcast %426 : vector<1x256xf32> to vector<4x256xf32>
    %429 = arith.mulf %427, %428 : vector<4x256xf32>
    %430 = arith.addf %424, %429 : vector<4x256xf32>
    %431 = vector.extract_strided_slice %285 {offsets = [0, 21], sizes = [4, 1], strides = [1, 1]} : vector<4x36xf32> to vector<4x1xf32>
    %432 = vector.extract_strided_slice %376 {offsets = [1, 0], sizes = [1, 256], strides = [1, 1]} : vector<4x256xf32> to vector<1x256xf32>
    %433 = vector.broadcast %431 : vector<4x1xf32> to vector<4x256xf32>
    %434 = vector.broadcast %432 : vector<1x256xf32> to vector<4x256xf32>
    %435 = arith.mulf %433, %434 : vector<4x256xf32>
    %436 = arith.addf %430, %435 : vector<4x256xf32>
    %437 = vector.extract_strided_slice %285 {offsets = [0, 22], sizes = [4, 1], strides = [1, 1]} : vector<4x36xf32> to vector<4x1xf32>
    %438 = vector.extract_strided_slice %376 {offsets = [2, 0], sizes = [1, 256], strides = [1, 1]} : vector<4x256xf32> to vector<1x256xf32>
    %439 = vector.broadcast %437 : vector<4x1xf32> to vector<4x256xf32>
    %440 = vector.broadcast %438 : vector<1x256xf32> to vector<4x256xf32>
    %441 = arith.mulf %439, %440 : vector<4x256xf32>
    %442 = arith.addf %436, %441 : vector<4x256xf32>
    %443 = vector.extract_strided_slice %285 {offsets = [0, 23], sizes = [4, 1], strides = [1, 1]} : vector<4x36xf32> to vector<4x1xf32>
    %444 = vector.extract_strided_slice %376 {offsets = [3, 0], sizes = [1, 256], strides = [1, 1]} : vector<4x256xf32> to vector<1x256xf32>
    %445 = vector.broadcast %443 : vector<4x1xf32> to vector<4x256xf32>
    %446 = vector.broadcast %444 : vector<1x256xf32> to vector<4x256xf32>
    %447 = arith.mulf %445, %446 : vector<4x256xf32>
    %448 = arith.addf %442, %447 : vector<4x256xf32>
    %c0_50 = arith.constant 0 : index
    %c33_51 = arith.constant 33 : index
    %449 = vector.load %arg12[%c0_50, %c33_51] : memref<4x290xf32, #tpu.memory_space<vmem>>, vector<4x256xf32>
    %c0_52 = arith.constant 0 : index
    %c32_53 = arith.constant 32 : index
    %450 = vector.load %arg12[%c0_52, %c32_53] : memref<4x290xf32, #tpu.memory_space<vmem>>, vector<4x256xf32>
    %c0_54 = arith.constant 0 : index
    %c34_55 = arith.constant 34 : index
    %451 = vector.load %arg12[%c0_54, %c34_55] : memref<4x290xf32, #tpu.memory_space<vmem>>, vector<4x256xf32>
    %452 = vector.shape_cast %20 : vector<1x256xi1> to vector<1x256xi1>
    %453 = vector.broadcast %452 : vector<1x256xi1> to vector<4x256xi1>
    %454 = arith.select %453, %451, %450 : vector<4x256xi1>, vector<4x256xf32>
    %455 = vector.shape_cast %22 : vector<1x256xi1> to vector<1x256xi1>
    %456 = vector.broadcast %455 : vector<1x256xi1> to vector<4x256xi1>
    %457 = arith.select %456, %450, %451 : vector<4x256xi1>, vector<4x256xf32>
    %458 = vector.extract_strided_slice %285 {offsets = [0, 24], sizes = [4, 1], strides = [1, 1]} : vector<4x36xf32> to vector<4x1xf32>
    %459 = vector.extract_strided_slice %454 {offsets = [0, 0], sizes = [1, 256], strides = [1, 1]} : vector<4x256xf32> to vector<1x256xf32>
    %460 = vector.broadcast %458 : vector<4x1xf32> to vector<4x256xf32>
    %461 = vector.broadcast %459 : vector<1x256xf32> to vector<4x256xf32>
    %462 = arith.mulf %460, %461 : vector<4x256xf32>
    %463 = arith.addf %448, %462 : vector<4x256xf32>
    %464 = vector.extract_strided_slice %285 {offsets = [0, 25], sizes = [4, 1], strides = [1, 1]} : vector<4x36xf32> to vector<4x1xf32>
    %465 = vector.extract_strided_slice %454 {offsets = [1, 0], sizes = [1, 256], strides = [1, 1]} : vector<4x256xf32> to vector<1x256xf32>
    %466 = vector.broadcast %464 : vector<4x1xf32> to vector<4x256xf32>
    %467 = vector.broadcast %465 : vector<1x256xf32> to vector<4x256xf32>
    %468 = arith.mulf %466, %467 : vector<4x256xf32>
    %469 = arith.addf %463, %468 : vector<4x256xf32>
    %470 = vector.extract_strided_slice %285 {offsets = [0, 26], sizes = [4, 1], strides = [1, 1]} : vector<4x36xf32> to vector<4x1xf32>
    %471 = vector.extract_strided_slice %454 {offsets = [2, 0], sizes = [1, 256], strides = [1, 1]} : vector<4x256xf32> to vector<1x256xf32>
    %472 = vector.broadcast %470 : vector<4x1xf32> to vector<4x256xf32>
    %473 = vector.broadcast %471 : vector<1x256xf32> to vector<4x256xf32>
    %474 = arith.mulf %472, %473 : vector<4x256xf32>
    %475 = arith.addf %469, %474 : vector<4x256xf32>
    %476 = vector.extract_strided_slice %285 {offsets = [0, 27], sizes = [4, 1], strides = [1, 1]} : vector<4x36xf32> to vector<4x1xf32>
    %477 = vector.extract_strided_slice %454 {offsets = [3, 0], sizes = [1, 256], strides = [1, 1]} : vector<4x256xf32> to vector<1x256xf32>
    %478 = vector.broadcast %476 : vector<4x1xf32> to vector<4x256xf32>
    %479 = vector.broadcast %477 : vector<1x256xf32> to vector<4x256xf32>
    %480 = arith.mulf %478, %479 : vector<4x256xf32>
    %481 = arith.addf %475, %480 : vector<4x256xf32>
    %482 = vector.extract_strided_slice %285 {offsets = [0, 28], sizes = [4, 1], strides = [1, 1]} : vector<4x36xf32> to vector<4x1xf32>
    %483 = vector.extract_strided_slice %449 {offsets = [0, 0], sizes = [1, 256], strides = [1, 1]} : vector<4x256xf32> to vector<1x256xf32>
    %484 = vector.broadcast %482 : vector<4x1xf32> to vector<4x256xf32>
    %485 = vector.broadcast %483 : vector<1x256xf32> to vector<4x256xf32>
    %486 = arith.mulf %484, %485 : vector<4x256xf32>
    %487 = arith.addf %481, %486 : vector<4x256xf32>
    %488 = vector.extract_strided_slice %285 {offsets = [0, 29], sizes = [4, 1], strides = [1, 1]} : vector<4x36xf32> to vector<4x1xf32>
    %489 = vector.extract_strided_slice %449 {offsets = [1, 0], sizes = [1, 256], strides = [1, 1]} : vector<4x256xf32> to vector<1x256xf32>
    %490 = vector.broadcast %488 : vector<4x1xf32> to vector<4x256xf32>
    %491 = vector.broadcast %489 : vector<1x256xf32> to vector<4x256xf32>
    %492 = arith.mulf %490, %491 : vector<4x256xf32>
    %493 = arith.addf %487, %492 : vector<4x256xf32>
    %494 = vector.extract_strided_slice %285 {offsets = [0, 30], sizes = [4, 1], strides = [1, 1]} : vector<4x36xf32> to vector<4x1xf32>
    %495 = vector.extract_strided_slice %449 {offsets = [2, 0], sizes = [1, 256], strides = [1, 1]} : vector<4x256xf32> to vector<1x256xf32>
    %496 = vector.broadcast %494 : vector<4x1xf32> to vector<4x256xf32>
    %497 = vector.broadcast %495 : vector<1x256xf32> to vector<4x256xf32>
    %498 = arith.mulf %496, %497 : vector<4x256xf32>
    %499 = arith.addf %493, %498 : vector<4x256xf32>
    %500 = vector.extract_strided_slice %285 {offsets = [0, 31], sizes = [4, 1], strides = [1, 1]} : vector<4x36xf32> to vector<4x1xf32>
    %501 = vector.extract_strided_slice %449 {offsets = [3, 0], sizes = [1, 256], strides = [1, 1]} : vector<4x256xf32> to vector<1x256xf32>
    %502 = vector.broadcast %500 : vector<4x1xf32> to vector<4x256xf32>
    %503 = vector.broadcast %501 : vector<1x256xf32> to vector<4x256xf32>
    %504 = arith.mulf %502, %503 : vector<4x256xf32>
    %505 = arith.addf %499, %504 : vector<4x256xf32>
    %506 = vector.extract_strided_slice %285 {offsets = [0, 32], sizes = [4, 1], strides = [1, 1]} : vector<4x36xf32> to vector<4x1xf32>
    %507 = vector.extract_strided_slice %457 {offsets = [0, 0], sizes = [1, 256], strides = [1, 1]} : vector<4x256xf32> to vector<1x256xf32>
    %508 = vector.broadcast %506 : vector<4x1xf32> to vector<4x256xf32>
    %509 = vector.broadcast %507 : vector<1x256xf32> to vector<4x256xf32>
    %510 = arith.mulf %508, %509 : vector<4x256xf32>
    %511 = arith.addf %505, %510 : vector<4x256xf32>
    %512 = vector.extract_strided_slice %285 {offsets = [0, 33], sizes = [4, 1], strides = [1, 1]} : vector<4x36xf32> to vector<4x1xf32>
    %513 = vector.extract_strided_slice %457 {offsets = [1, 0], sizes = [1, 256], strides = [1, 1]} : vector<4x256xf32> to vector<1x256xf32>
    %514 = vector.broadcast %512 : vector<4x1xf32> to vector<4x256xf32>
    %515 = vector.broadcast %513 : vector<1x256xf32> to vector<4x256xf32>
    %516 = arith.mulf %514, %515 : vector<4x256xf32>
    %517 = arith.addf %511, %516 : vector<4x256xf32>
    %518 = vector.extract_strided_slice %285 {offsets = [0, 34], sizes = [4, 1], strides = [1, 1]} : vector<4x36xf32> to vector<4x1xf32>
    %519 = vector.extract_strided_slice %457 {offsets = [2, 0], sizes = [1, 256], strides = [1, 1]} : vector<4x256xf32> to vector<1x256xf32>
    %520 = vector.broadcast %518 : vector<4x1xf32> to vector<4x256xf32>
    %521 = vector.broadcast %519 : vector<1x256xf32> to vector<4x256xf32>
    %522 = arith.mulf %520, %521 : vector<4x256xf32>
    %523 = arith.addf %517, %522 : vector<4x256xf32>
    %524 = vector.extract_strided_slice %285 {offsets = [0, 35], sizes = [4, 1], strides = [1, 1]} : vector<4x36xf32> to vector<4x1xf32>
    %525 = vector.extract_strided_slice %457 {offsets = [3, 0], sizes = [1, 256], strides = [1, 1]} : vector<4x256xf32> to vector<1x256xf32>
    %526 = vector.broadcast %524 : vector<4x1xf32> to vector<4x256xf32>
    %527 = vector.broadcast %525 : vector<1x256xf32> to vector<4x256xf32>
    %528 = arith.mulf %526, %527 : vector<4x256xf32>
    %529 = arith.addf %523, %528 : vector<4x256xf32>
    %c0_56 = arith.constant 0 : index
    %c0_57 = arith.constant 0 : index
    %530 = vector.load %arg5[%c0_56, %c0_57] : memref<4x1xf32, #tpu.memory_space<vmem>>, vector<4x1xf32>
    %531 = vector.broadcast %530 : vector<4x1xf32> to vector<4x256xf32>
    %532 = arith.addf %529, %531 : vector<4x256xf32>
    %c0_58 = arith.constant 0 : index
    %533 = memref.load %arg10[%c0_58] : memref<2xf32, #tpu.memory_space<smem>>
    %c1_59 = arith.constant 1 : index
    %534 = memref.load %arg10[%c1_59] : memref<2xf32, #tpu.memory_space<smem>>
    %cst_60 = arith.constant dense<0.000000e+00> : vector<4xf32>
    %535 = vector.multi_reduction <add>, %532, %cst_60 [1] : vector<4x256xf32> to vector<4xf32>
    %536 = vector.shape_cast %535 : vector<4xf32> to vector<4x1xf32>
    %cst_61 = arith.constant 3.906250e-03 : f32
    %537 = vector.broadcast %cst_61 : f32 to vector<4x1xf32>
    %538 = arith.mulf %536, %537 : vector<4x1xf32>
    %c0_62 = arith.constant 0 : index
    %c0_63 = arith.constant 0 : index
    %539 = vector.load %arg6[%c0_62, %c0_63] : memref<4x2xf32, #tpu.memory_space<vmem>>, vector<4x2xf32>
    %540 = vector.broadcast %538 : vector<4x1xf32> to vector<4x2xf32>
    %541 = arith.mulf %539, %540 : vector<4x2xf32>
    %cst_64 = arith.constant dense<0.000000e+00> : vector<2xf32>
    %542 = vector.multi_reduction <add>, %541, %cst_64 [0] : vector<4x2xf32> to vector<2xf32>
    %543 = vector.shape_cast %542 : vector<2xf32> to vector<1x2xf32>
    %c0_65 = arith.constant 0 : index
    %c0_66 = arith.constant 0 : index
    %544 = vector.load %arg7[%c0_65, %c0_66] : memref<1x2xf32, #tpu.memory_space<vmem>>, vector<1x2xf32>
    %545 = arith.addf %543, %544 : vector<1x2xf32>
    %cst_67 = arith.constant 0.000000e+00 : f32
    %546 = vector.broadcast %cst_67 : f32 to vector<1x2xf32>
    %547 = arith.subf %546, %545 : vector<1x2xf32>
    %cst_68 = arith.constant 0.000000e+00 : f32
    %548 = vector.broadcast %cst_68 : f32 to vector<1x2xf32>
    %549 = arith.maximumf %547, %548 : vector<1x2xf32>
    %550 = arith.subf %545, %549 : vector<1x2xf32>
    %551 = vector.broadcast %533 : f32 to vector<1x2xf32>
    %552 = arith.mulf %551, %550 : vector<1x2xf32>
    %cst_69 = arith.constant 0.000000e+00 : f32
    %553 = vector.broadcast %cst_69 : f32 to vector<1x2xf32>
    %554 = arith.maximumf %545, %553 : vector<1x2xf32>
    %cst_70 = arith.constant 0.000000e+00 : f32
    %555 = arith.subf %cst_70, %534 : f32
    %556 = vector.broadcast %555 : f32 to vector<1x2xf32>
    %557 = arith.mulf %556, %545 : vector<1x2xf32>
    %cst_71 = arith.constant 0.000000e+00 : f32
    %558 = vector.broadcast %cst_71 : f32 to vector<1x2xf32>
    %559 = arith.maximumf %557, %558 : vector<1x2xf32>
    %560 = arith.subf %545, %559 : vector<1x2xf32>
    %561 = vector.broadcast %534 : f32 to vector<1x2xf32>
    %562 = arith.mulf %561, %560 : vector<1x2xf32>
    %563 = arith.negf %545 : vector<1x2xf32>
    %564 = math.exp %563 : vector<1x2xf32>
    %cst_72 = arith.constant 1.000000e+00 : f32
    %565 = vector.broadcast %cst_72 : f32 to vector<1x2xf32>
    %566 = arith.addf %565, %564 : vector<1x2xf32>
    %567 = arith.divf %565, %566 : vector<1x2xf32>
    %568 = arith.mulf %562, %567 : vector<1x2xf32>
    %569 = arith.addf %552, %554 : vector<1x2xf32>
    %570 = arith.addf %569, %568 : vector<1x2xf32>
    %c0_73 = arith.constant 0 : index
    %c0_74 = arith.constant 0 : index
    %571 = vector.load %arg8[%c0_73, %c0_74] : memref<4x2xf32, #tpu.memory_space<vmem>>, vector<4x2xf32>
    %572 = vector.broadcast %570 : vector<1x2xf32> to vector<4x2xf32>
    %573 = arith.mulf %571, %572 : vector<4x2xf32>
    %cst_75 = arith.constant dense<0.000000e+00> : vector<4xf32>
    %574 = vector.multi_reduction <add>, %573, %cst_75 [1] : vector<4x2xf32> to vector<4xf32>
    %575 = vector.shape_cast %574 : vector<4xf32> to vector<4x1xf32>
    %c0_76 = arith.constant 0 : index
    %c0_77 = arith.constant 0 : index
    %576 = vector.load %arg9[%c0_76, %c0_77] : memref<4x1xf32, #tpu.memory_space<vmem>>, vector<4x1xf32>
    %577 = arith.addf %575, %576 : vector<4x1xf32>
    %578 = arith.negf %577 : vector<4x1xf32>
    %579 = math.exp %578 : vector<4x1xf32>
    %cst_78 = arith.constant 1.000000e+00 : f32
    %580 = vector.broadcast %cst_78 : f32 to vector<4x1xf32>
    %581 = arith.addf %580, %579 : vector<4x1xf32>
    %582 = arith.divf %580, %581 : vector<4x1xf32>
    %583 = vector.broadcast %582 : vector<4x1xf32> to vector<4x256xf32>
    %584 = arith.mulf %532, %583 : vector<4x256xf32>
    %585 = arith.addf %1, %584 : vector<4x256xf32>
    %c0_79 = arith.constant 0 : index
    %c0_80 = arith.constant 0 : index
    %c0_81 = arith.constant 0 : index
    %586 = vector.load %arg11[%c0_79, %c0_80, %c0_81] : memref<1x4x256xf32, #tpu.memory_space<vmem>>, vector<1x4x256xf32>
    %587 = vector.shape_cast %586 : vector<1x4x256xf32> to vector<4x256xf32>
    %588 = vector.shape_cast %585 : vector<4x256xf32> to vector<1x4x256xf32>
    tpu.vector_store %arg11[%c0_79, %c0_80, %c0_81], %588 {strides = array<i32>} : memref<1x4x256xf32, #tpu.memory_space<vmem>>, vector<1x4x256xf32>,
    return
  }
  func.func @transform_0(%arg0: i32) -> (i32, i32, i32) {
    %c0_i32 = arith.constant 0 : i32
    %c0_i32_0 = arith.constant 0 : i32
    %c0_i32_1 = arith.constant 0 : i32
    return %arg0, %c0_i32, %c0_i32_0 : i32, i32, i32
  }
  func.func @transform_1(%arg0: i32) -> (i32, i32) {
    %c0_i32 = arith.constant 0 : i32
    %c0_i32_0 = arith.constant 0 : i32
    %c0_i32_1 = arith.constant 0 : i32
    return %c0_i32, %c0_i32_0 : i32, i32
  }
  func.func @transform_2(%arg0: i32) -> (i32, i32) {
    %c0_i32 = arith.constant 0 : i32
    %c0_i32_0 = arith.constant 0 : i32
    %c0_i32_1 = arith.constant 0 : i32
    return %c0_i32, %c0_i32_0 : i32, i32
  }
  func.func @transform_3(%arg0: i32) -> (i32, i32) {
    %c0_i32 = arith.constant 0 : i32
    %c0_i32_0 = arith.constant 0 : i32
    %c0_i32_1 = arith.constant 0 : i32
    return %c0_i32, %c0_i32_0 : i32, i32
  }
  func.func @transform_4(%arg0: i32) -> (i32, i32) {
    %c0_i32 = arith.constant 0 : i32
    %c0_i32_0 = arith.constant 0 : i32
    %c0_i32_1 = arith.constant 0 : i32
    return %c0_i32, %c0_i32_0 : i32, i32
  }
  func.func @transform_5(%arg0: i32) -> (i32, i32) {
    %c0_i32 = arith.constant 0 : i32
    %c0_i32_0 = arith.constant 0 : i32
    %c0_i32_1 = arith.constant 0 : i32
    return %c0_i32, %c0_i32_0 : i32, i32
  }
  func.func @transform_6(%arg0: i32) -> (i32, i32) {
    %c0_i32 = arith.constant 0 : i32
    %c0_i32_0 = arith.constant 0 : i32
    %c0_i32_1 = arith.constant 0 : i32
    return %c0_i32, %c0_i32_0 : i32, i32
  }
  func.func @transform_7(%arg0: i32) -> (i32, i32) {
    %c0_i32 = arith.constant 0 : i32
    %c0_i32_0 = arith.constant 0 : i32
    %c0_i32_1 = arith.constant 0 : i32
    return %c0_i32, %c0_i32_0 : i32, i32
  }
  func.func @transform_8(%arg0: i32) -> (i32, i32) {
    %c0_i32 = arith.constant 0 : i32
    %c0_i32_0 = arith.constant 0 : i32
    %c0_i32_1 = arith.constant 0 : i32
    return %c0_i32, %c0_i32_0 : i32, i32
  }
  func.func @transform_9(%arg0: i32) -> i32 {
    %c0_i32 = arith.constant 0 : i32
    %c0_i32_0 = arith.constant 0 : i32
    return %c0_i32 : i32
  }
  func.func @transform_10(%arg0: i32) -> (i32, i32, i32) {
    %c0_i32 = arith.constant 0 : i32
    %c0_i32_0 = arith.constant 0 : i32
    %c0_i32_1 = arith.constant 0 : i32
    return %arg0, %c0_i32, %c0_i32_0 : i32, i32, i32
  }
}

</mosaic_0001>

<bundles_post_ra>
// kernel: tpu_custom_call.1
= control target key start
LH: loop header
LB: loop body
LE: loop exit
PB: predicated region body
PF: predicated region fallthrough
CT: control target
= control target key end

     0   :  { %s4202_s0 = inlined_call_operand.hbm [shape: f32[2,4,256], index: 0, kind: input, shape index: {}]   ;;  %s4203_s1 = inlined_call_operand.vmem [shape: f32[4,36], index: 1, kind: input, shape index: {}]   ;;  %s4204_s2 = inlined_call_operand.vmem [shape: f32[4,1], index: 2, kind: input, shape index: {}]   ;;  %s4205_s3 = inlined_call_operand.vmem [shape: f32[4,36], index: 3, kind: input, shape index: {}]   ;;  %s4206_s4 = inlined_call_operand.vmem [shape: f32[4,1], index: 4, kind: input, shape index: {}]   ;;  %s4207_s5 = inlined_call_operand.vmem [shape: f32[4,2], index: 5, kind: input, shape index: {}]   ;;  %s4208_s6 = inlined_call_operand.vmem [shape: f32[1,2], index: 6, kind: input, shape index: {}]   ;;  %s4209_s7 = inlined_call_operand.vmem [shape: f32[4,2], index: 7, kind: input, shape index: {}]   ;;  %s4210_s8 = inlined_call_operand.vmem [shape: f32[4,1], index: 8, kind: input, shape index: {}]   ;;  %s4211_s9 = inlined_call_operand.vmem [shape: f32[2], index: 9, kind: input, shape index: {}]   ;;  %s4212_s10 = inlined_call_operand.hbm [shape: f32[2,4,256], index: 10, kind: output, shape index: {}]  }
   0x1   :  { %4263 = sst [smem:[#allocation23_spill]] %s4211_s9 }
   0x2   :  { %15 = vsyncpa [#allocation4], 0 }
   0x3   :  { %17 = vsyncpa [#allocation4 + $0x1], 0 }
   0x4   :  { %18 = vsyncpa [#allocation6], 0 }
   0x5   :  { %19 = vsyncpa [#allocation5], 0 }
   0x6   :  { %21 = vsyncpa [#allocation5 + $0x1], 0  ;;  %s2750_s13 = smov 0   ;;  %s2752_s14 = smov 0  }
   0x7   :  { %s2754_s15 = smov 0   ;;  %s2756_s16 = smov 0  }
   0x8 LB: > { %4264 = sst [smem:[#allocation12_spill]] %s2640_s15  ;;  %s2771_s17 = sadd.s32 4294967295, %s2644_s16   ;;  %s2644_s16 = sphi %s2756_s16, %s4346_s16   ;;  %s2640_s15 = sphi %s2754_s15, %s4348_s15   ;;  %s2636_s14 = sphi %s2752_s14, %s4350_s14   ;;  %s2632_s13 = sphi %s2750_s13, %s4349_s13  }
   0x9   : > { %s2318_s18 = sadd.s32 4294967294, %s2644_s16   ;;  %p47_p0 = scmp.ne.s32.totalorder %s2636_s14, %s2632_s13 }
   0xa   : > { %p48_p1 = scmp.eq.s32.totalorder %s2771_s17, 0  ;;  %p260_p2 = scmp.eq.s32.totalorder %s2771_s17, 1 }
   0xb   : > { %p266_p3 = scmp.eq.s32.totalorder %s2318_s18, 1  ;;  %p2319_p5 = scmp.ge.s32.totalorder %s2644_s16, 1 }
   0xc   : > { %p2780_p4 = por %p48_p1, %p47_p0  ;;  %p273_p7 = scmp.lt.s32.totalorder %s2644_s16, 3 }
   0xd   : > { %p2785_p6 = por %p266_p3, %p47_p0  ;;  %s4267_s9 = sld [smem:[#allocation23_spill]] }
   0xe   : > { %p2793_p8 = pnand %p2319_p5, %p273_p7  ;;  %s2801_s25 = sadd.s32 1, %s2644_s16  }
   0xf   : > { %4269 = sst [smem:[#allocation13_spill]] %s2801_s25  ;;  %s31_s26 = ssub.s32 %s2644_s16, %s2801_s25 }
  0x10   : > { %p2347_p10 = pneg %p2793_p8  ;;  %p32_p12 = scmp.eq.s32.totalorder %s31_s26, 0 }
  0x11   : > { %s34_s27 = sadd.s32 1, %s2640_s15  ;;  %p41_p13 = scmp.ne.s32.totalorder %s2640_s15, %s2636_s14 }
  0x12   : > { %p2348_p11 = pnand %p2347_p10, %p48_p1  ;;  %s2646_s28 = smov [#allocation7]  }
  0x13   : > { %s309_s23 = sshll.u32 %s4267_s9, 4  ;;  %p42_p0 = scmp.eq.s32.totalorder %s2644_s16, 0  ;;  %s310_s23 = int_to_ptr.vmem [resolvable:$true] %s309_s23 }
  0x14   : > { %2350 = dma.vmem_to_smem (!%p2348_p11), %s310_s23, 16, %s2646_s28, [#allocation6]  }
  0x15   : > { %s2811_s29 = scalar_select %p32_p12, %s2640_s15, %s34_s27  }
  0x16   : > { %p2816_p3 = por %p260_p2, %p41_p13  ;;  %s320_s11 = sand.u32 1, %s2640_s15  }
  0x17   : > { %4270 = sst [smem:[#allocation14_spill]] %s2811_s29  ;;  %p43_p5 = por %p42_p0, %p41_p13 }
  0x18   : > { %p2360_p7 = scmp.lt.s32.totalorder %s2644_s16, 2  ;;  %s2322_s12 = sshll.u32 %s320_s11, 3 }
  0x19   : > { %s2337_s18 = sshll.u32 %s2644_s16, 3  ;;  %s324_s25 = scalar_lea.vmem [#allocation3], %s2322_s12 }
  0x1a   : > { %s329_s26 = scalar_lea.hbm %s4202_s0, %s2337_s18  ;;  %s333_s23 = sshll.u32 %s324_s25, 4  ;;  %s334_s23 = int_to_ptr.vmem [resolvable:$true] %s333_s23 }
  0x1b   : > { %s331_s9 = sshll.u32 %s329_s26, 4  ;;  %p2826_p10 = pnand %p2360_p7, %p43_p5  ;;  %s332_s9 = int_to_ptr.hbm [resolvable:$true] %s331_s9 }
  0x1c   : > { %s321_s28 = scalar_lea.sflag [#allocation4], %s320_s11  ;;  %s2544_s29 = sshra.s32 %s332_s9, 4  ;;  %s2545_s29 = int_to_ptr.hbm [resolvable:$true] %s2544_s29 }
  0x1d   : > { %s2546_s15 = scalar_lea.hbm %s2545_s29, 8  ;;  %p2548_p11 = pneg %p2826_p10 }
  0x1e   : > { %p2547_p2 = scmp.ne.s32.totalorder %s2545_s29, %s2546_s15  ;;  %s2551_s25 = scalar_lea.hbm %s4202_s0, 16 }
  0x1f   : > { %p2552_p0 = scmp.lt.s32.totalorder %s2545_s29, %s4202_s0  ;;  %p2553_p5 = scmp.lt.s32.totalorder %s2551_s25, %s2546_s15 }
  0x20   : > { %p2549_p12 = pnand %p2548_p11, %p2547_p2 }
  0x21   : > { %p2554_p7 = por %p2553_p5, %p2552_p0 }
  0x22   : > { %p2550_p13 = pneg %p2549_p12 }
  0x24   : > { %p2555_p9 = pnand %p2554_p7, %p2550_p13 }
  0x26   : > { %2558 = shalt.err (!%p2555_p9)
}
  0x27   : > { %2354 = dma.hbm_to_vmem [thread:$0]  (!%p2826_p10), %s332_s9, 128, %s334_s23, %s321_s28  }
  0x28   : > { %342 = sbr.rel (%p2793_p8) target bundleno = 1859 (0x743), region = 60 }
  0x2d   : > { %s2843_s11 = sand.u32 1, %s2636_s14  }
  0x2e   : > { %s4255_s26 = sshll.u32 %s2843_s11, 3  ;;  %s345_s18 = scalar_lea.sflag [#allocation4], %s2843_s11 }
  0x2f   : > { %s2849_s15 = scalar_lea.vmem [#allocation3], %s4255_s26 }
  0x30   : > { %2619 = dma.done.wait (%p2780_p4), %s345_s18, 128  }
  0x31   : > { %2621 = vsyncadd (%p2780_p4), %s345_s18, 4294967168 }
  0x32   : > { %2623 = dma.done.wait (%p48_p1), [#allocation6], 16  }
  0x33   : > { %2625 = vsyncadd (%p48_p1), [#allocation6], 4294967280 }
  0x34   : > { %359 = sfence }
  0x35   : > { %v392_v0 = vld [vmem:[%s2849_s15] sm:$0xff]  ;;  %v4236_v2 = vmov 2   ;;  %s2648_s29 = smov 49   ;;  %s2649_s19 = smov 17   ;;  %v4238_v3 = vmov 1   ;;  %v4242_v4 = vmov 0  }
  0x36   : > { %v2863_v1 = vld [vmem:[%s4203_s1] sm:$0xf]  ;;  %2446 = vset.pattern.permute.xlu2 %v4236_v2  ;;  %446 = vrot.lane.b32.xlu1 %v392_v0, %s2648_s29  ;;  %s2652_s23 = smov 113   ;;  %v4234_v5 = vmov 4   ;;  %v4235_v6 = vmov 3   ;;  %v4232_v7 = vmov 6  }
  0x37   : > { %428 = vrot.lane.b32.xlu0 %v392_v0, %s2649_s19  ;;  %534 = vperm.xlu2 %2446, %v2863_v1   ;;  %v4230_v8 = vmov 5   ;;  %v4221_v9 = vmov 10   ;;  %v4228_v10 = vmov 8   ;;  %v4227_v11 = vmov 7   ;;  %s2670_s27 = smov 127   ;;  %s2671_s28 = smov 111  }
  0x38   : > { %2445 = vset.pattern.permute.xlu1 %v4238_v3  ;;  %2444 = vset.pattern.permute.xlu0 %v4242_v4  ;;  %v4220_v12 = vmov 12   ;;  %v4219_v13 = vmov 11   ;;  %v4216_v14 = vmov 15   ;;  %v4218_v15 = vmov 13   ;;  %s2672_s21 = smov 110   ;;  %s2674_s25 = smov 112  }
  0x39   : > { %v4224_v16 = vmov 17   ;;  %v4223_v17 = vmov 16   ;;  %v4222_v18 = vmov 18   ;;  %vm425_vm0 = vcmask 273408   ;;  %s2675_s12 = smov 126   ;;  %s4257_s22 = smov 94  }
  0x3a   : > { %v2667_v19 = vmov 0.0   ;;  %v4229_v22 = vmov 9   ;;  %v4217_v24 = vmov 14   ;;  %vm435_vm1 = vcmask 1043592   ;;  %s4259_s18 = smov 96   ;;  %s2688_s9 = smov 95  }
  0x3b   : > { %424 = vst [vmem:[#allocation2] sm:$0xff] %v2667_v19  ;;  %vm436_vm2 = vcmask 1047556   ;;  %vm431_vm3 = vcmask 138240   ;;  %vm439_vm4 = vcmask 134144   ;;  %v4273_v27 = vmov 0 }
  0x3c   : > { %426 = vst.msk [vmem:[#allocation2 + $0x8] sm:$0xf] %vm425_vm0, %v2667_v19  ;;  %vm2912_vm5 = vmor %vm436_vm2, %vm435_vm1  ;;  %vm450_vm6 = vcmask 265352   ;;  %vm444_vm7 = vcmask 134152   ;;  %vm473_vm8 = vcmask 1031168   ;;  %vm578_vm11 = vcmask 1039360  }
  0x3d   : > { %v4274_v27 = vsel %vm2912_vm5, 4294967295, %v4273_v27  ;;  %vm734_vm13 = vcmask 900096   ;;  %vm4256_vm14 = vcmask 916480   ;;  %vm857_vm0 = vcmask 908288  }
  0x3e   : > { %524 = vperm.xlu1 %2445, %v2863_v1   ;;  %4275 = vst [vmem:[#allocation15_spill] sm:$0xff] %v4274_v27  ;;  %vm1030_vm1 = vcmask 785408   ;;  %vm1013_vm2 = vcmask 769024  }
  0x3f   : > { %441 = vrot.lane.b32.xlu0 %v392_v0, %s2652_s23  ;;  %2448 = vset.pattern.permute.xlu2 %v4234_v5 }
  0x40   : > { %554 = vperm.xlu2 %2448, %v2863_v1  }
  0x46   : > { %2447 = vset.pattern.permute.xlu1 %v4235_v6 }
  0x47   : > { %514 = vperm.xlu0 %2444, %v2863_v1   ;;  %544 = vperm.xlu1 %2447, %v2863_v1  }
  0x48   : > { %2450 = vset.pattern.permute.xlu2 %v4232_v7 }
  0x49   : > { %617 = vperm.xlu2 %2450, %v2863_v1  }
  0x4f   : > { %2449 = vset.pattern.permute.xlu0 %v4230_v8  ;;  %2454 = vset.pattern.permute.xlu1 %v4221_v9 }
  0x50   : > { %586 = vperm.xlu0 %2449, %v2863_v1   ;;  %699 = vperm.xlu1 %2454, %v2863_v1  }
  0x51   : > { %2452 = vset.pattern.permute.xlu2 %v4228_v10 }
  0x52   : > { %679 = vperm.xlu2 %2452, %v2863_v1  }
  0x58   : > { %2451 = vset.pattern.permute.xlu0 %v4227_v11  ;;  %2456 = vset.pattern.permute.xlu1 %v4220_v12 }
  0x59   : > { %648 = vperm.xlu0 %2451, %v2863_v1   ;;  %793 = vperm.xlu1 %2456, %v2863_v1  }
  0x5a   : > { %2455 = vset.pattern.permute.xlu2 %v4219_v13 }
  0x5b   : > { %709 = vperm.xlu2 %2455, %v2863_v1  }
  0x61   : > { %2459 = vset.pattern.permute.xlu1 %v4216_v14  ;;  %2453 = vset.pattern.permute.xlu0 %v4229_v22 }
  0x62   : > { %823 = vperm.xlu1 %2459, %v2863_v1   ;;  %689 = vperm.xlu0 %2453, %v2863_v1  }
  0x63   : > { %2457 = vset.pattern.permute.xlu2 %v4218_v15 }
  0x64   : > { %803 = vperm.xlu2 %2457, %v2863_v1  }
  0x6a   : > { %2461 = vset.pattern.permute.xlu1 %v4224_v16  ;;  %2458 = vset.pattern.permute.xlu0 %v4217_v24 }
  0x6b   : > { %865 = vperm.xlu1 %2461, %v2863_v1   ;;  %813 = vperm.xlu0 %2458, %v2863_v1  }
  0x6c   : > { %2460 = vset.pattern.permute.xlu2 %v4223_v17 }
  0x6d   : > { %833 = vperm.xlu2 %2460, %v2863_v1  }
  0x75   : > { %2462 = vset.pattern.permute.xlu2 %v4222_v18 }
  0x76   : > { %896 = vperm.xlu2 %2462, %v2863_v1  }
  0x91   : > { %v2902_v20 = vpop.permute.xlu2 %534 }
  0x9a   : > { %v2904_v21 = vpop.permute.xlu2 %554 }
  0xa3   : > { %v2908_v23 = vpop.permute.xlu2 %617 }
  0xa8   : > { %v447_v25 = vpop.permute.xlu1 %446 }
  0xa9   : > { %v429_v26 = vpop.permute.xlu0 %428  ;;  %v448_v29 = vrot.slane %v447_v25, 4 }
  0xaa   : > { %v430_v28 = vrot.slane %v429_v26, 4 }
  0xac   : > { %v432_v30 = vsel %vm431_vm3, %v430_v28, %v429_v26  ;;  %440 = vst.msk [vmem:[#allocation2 + $0x8] sm:$0xf] %vm439_vm4, %v430_v28  ;;  %v2918_v31 = vpop.permute.xlu2 %679 }
  0xad   : > { %438 = vst.msk [vmem:[#allocation2] sm:$0xff] %vm2912_vm5, %v432_v30 }
  0xae   : > { %451 = vst.msk [vmem:[#allocation2 + $0x8] sm:$0xf] %vm450_vm6, %v448_v29 }
  0xb0   : > { %v2923_v32 = vpop.permute.xlu1 %524 }
  0xb1   : > { %v442_v33 = vpop.permute.xlu0 %441 }
  0xb2   : > { %445 = vst.msk [vmem:[#allocation2] sm:$0xf] %vm444_vm7, %v442_v33 }
  0xb5   : > { %v2926_v34 = vpop.permute.xlu2 %709  ;;  %v454_v35 = vld [vmem:[#allocation2 + $0x8] sm:$0xf] }
  0xb6   : > { %v559_v36 = vperm.slane %v454_v35, 0  ;;  %463 = vst [vmem:[#allocation1 + $0x10] ss:$2 sm:$0xff] %v454_v35  ;;  %v622_v42 = vperm.slane %v454_v35, 2  ;;  %v591_v43 = vperm.slane %v454_v35, 1  ;;  %v653_v58 = vperm.slane %v454_v35, 3 }
  0xb7   : > { %v2941_v47 = vld [vmem:[#allocation2 + $0x8] sm:$0xf] }
  0xb8   : > { %v565_v37 = vperm.slane %v559_v36, 0  ;;  %v628_v46 = vperm.slane %v622_v42, 2  ;;  %v597_v48 = vperm.slane %v591_v43, 1  ;;  %v838_v54 = vperm.slane %v2941_v47, 0 }
  0xb9   : > { %v2928_v38 = vld [vmem:[#allocation2] sm:$0xff]  ;;  %v2930_v39 = vpop.permute.xlu0 %514  ;;  %v2932_v40 = vpop.permute.xlu1 %544  ;;  %v659_v0 = vperm.slane %v653_v58, 3  ;;  %v901_v26 = vperm.slane %v2941_v47, 2  ;;  %v870_v58 = vperm.slane %v2941_v47, 1 }
  0xba   : > { %461 = vst [vmem:[#allocation1] ss:$2 sm:$0xff] %v2928_v38  ;;  %v568_v41 = vmul.f32 %v565_v37, %v2904_v21  ;;  %v631_v52 = vmul.f32 %v628_v46, %v2908_v23  ;;  %v844_v57 = vperm.slane %v838_v54, 0  ;;  %v557_v61 = vperm.slane %v2928_v38, 0 }
  0xbb   : > { %v907_v33 = vperm.slane %v901_v26, 2  ;;  %v620_v37 = vperm.slane %v2928_v38, 2  ;;  %v652_v26 = vperm.slane %v2928_v38, 7  ;;  %v589_v15 = vperm.slane %v2928_v38, 1 }
  0xbc   : > { %576 = vrot.lane.b32.xlu2 %v568_v41, %s2670_s27  ;;  %v2976_v29 = vperm.slane %v557_v61, 0  ;;  %v590_v41 = vperm.slane %v2928_v38, 5  ;;  %v621_v9 = vperm.slane %v2928_v38, 6 }
  0xbd   : > { %v2937_v44 = vld.sshfl [vmem:[#allocation1 + $0x10] sm:$0xff pattern:$0x75316420] }
  0xbe   : > { %496 = vst [vmem:[#allocation1 + $0x10] ss:$2 sm:$0xff] %v454_v35  ;;  %v2939_v45 = vpop.permute.xlu2 %803  ;;  %v566_v36 = vmul.f32 %v2976_v29, %v2904_v21 }
  0xc1   : > { %v2943_v49 = vld.sshfl [vmem:[#allocation1] sm:$0xff pattern:$0x75316420]  ;;  %v2945_v50 = vld.sshfl [vmem:[#allocation1 + $0x8] sm:$0xff pattern:$0x75316420] }
  0xc2   : > { %478 = vst [vmem:[#allocation1] ss:$2 sm:$0xff] %v2928_v38  ;;  %v2948_v51 = vpop.permute.xlu0 %586  ;;  %v2951_v53 = vpop.permute.xlu1 %699 }
  0xc3   : > { %v600_v55 = vmul.f32 %v597_v48, %v2948_v51 }
  0xc4   : > { %639 = vrot.lane.b32.xlu2 %v631_v52, %s2670_s27  ;;  %v2998_v52 = vperm.slane %v620_v37, 2 }
  0xc5   : > { %v2956_v56 = vld.sshfl [vmem:[#allocation1 + $0x10] sm:$0xff pattern:$0x75316420]  ;;  %608 = vrot.lane.b32.xlu1 %v600_v55, %s2670_s27  ;;  %v3002_v55 = vperm.slane %v590_v41, 1  ;;  %v558_v41 = vperm.slane %v2928_v38, 4 }
  0xc6   : > { %724 = vst [vmem:[#allocation1 + $0x10] ss:$2 sm:$0xff] %v2941_v47 }
  0xc7   : > { %v2960_v59 = vpop.permute.xlu2 %833  ;;  %4276 = vst [vmem:[#allocation16_spill] sm:$0xff] %v2998_v52 }
  0xc8   : > { %v847_v60 = vmul.f32 %v844_v57, %v2960_v59  ;;  %4277 = vst [vmem:[#allocation17_spill] sm:$0xff] %v3002_v55  ;;  %v629_v57 = vmul.f32 %v2998_v52, %v2908_v23 }
  0xc9   : > { %v2964_v62 = vld.sshfl [vmem:[#allocation1] sm:$0xff pattern:$0x75316420]  ;;  %v2966_v63 = vld.sshfl [vmem:[#allocation1 + $0x8] sm:$0xff pattern:$0x75316420] }
  0xca   : > { %489 = vst [vmem:[#allocation1] ss:$2 sm:$0xff] %v2928_v38  ;;  %855 = vrot.lane.b32.xlu0 %v847_v60, %s2671_s28 }
  0xcb   : > { %v2970_v19 = vpop.permute.xlu0 %648  ;;  %v2972_v25 = vpop.permute.xlu1 %793 }
  0xcc   : > { %v662_v28 = vmul.f32 %v659_v0, %v2970_v19  ;;  %v599_v0 = vmul.f32 %v3002_v55, %v2948_v51 }
  0xcd   : > { %v2978_v30 = vld.sshfl [vmem:[#allocation1 + $0x10] sm:$0xff pattern:$0x75316420] }
  0xce   : > { %741 = vst [vmem:[#allocation1 + $0x10] ss:$2 sm:$0xff] %v2941_v47  ;;  %670 = vrot.lane.b32.xlu1 %v662_v28, %s2670_s27  ;;  %v876_v28 = vperm.slane %v870_v58, 1 }
  0xd0   : > { %v2982_v35 = vpop.permute.xlu2 %896 }
  0xd1   : > { %v2988_v42 = vld.sshfl [vmem:[#allocation1] sm:$0xff pattern:$0x75316420]  ;;  %v2990_v43 = vld.sshfl [vmem:[#allocation1 + $0x8] sm:$0xff pattern:$0x75316420]  ;;  %v910_v46 = vmul.f32 %v907_v33, %v2982_v35  ;;  %v908_v13 = vmul.f32 %v2982_v35, %v2998_v52 }
  0xd2   : > { %494 = vst [vmem:[#allocation1] ss:$2 sm:$0xff] %v2928_v38  ;;  %572 = vrot.lane.b32.xlu0 %v566_v36, %s2670_s27 }
  0xd3   : > { %918 = vrot.lane.b32.xlu2 %v910_v46, %s2671_s28  ;;  %v3022_v46 = vperm.slane %v652_v26, 3  ;;  %v3037_v26 = vld [vmem:[#allocation2 + $0x8] sm:$0xf] }
  0xd4   : > { %v2996_v48 = vpop.permute.xlu1 %823 }
  0xd5   : > { %v3000_v54 = vld.sshfl [vmem:[#allocation1 + $0x10] sm:$0xff pattern:$0x75316420]  ;;  %4278 = vst [vmem:[#allocation18_spill] sm:$0xff] %v3022_v46  ;;  %v661_v58 = vmul.f32 %v3022_v46, %v2970_v19 }
  0xd6   : > { %760 = vst [vmem:[#allocation1 + $0x10] ss:$2 sm:$0xff] %v2941_v47 }
  0xd9   : > { %v3008_v60 = vld.sshfl [vmem:[#allocation1] sm:$0xff pattern:$0x75316420]  ;;  %v3010_v61 = vld.sshfl [vmem:[#allocation1 + $0x8] sm:$0xff pattern:$0x75316420] }
  0xda   : > { %722 = vst [vmem:[#allocation1] ss:$2 sm:$0xff] %v2928_v38  ;;  %635 = vrot.lane.b32.xlu0 %v629_v57, %s2670_s27 }
  0xdb   : > { %606 = vrot.lane.b32.xlu2 %v599_v0, %s2670_s27 }
  0xdd   : > { %v3018_v33 = vld.sshfl [vmem:[#allocation1 + $0x10] sm:$0xff pattern:$0x75316420]  ;;  %v866_v36 = vpop.permute.xlu1 %865 }
  0xde   : > { %776 = vst [vmem:[#allocation1 + $0x10] ss:$2 sm:$0xff] %v2941_v47  ;;  %v879_v37 = vmul.f32 %v876_v28, %v866_v36  ;;  %v878_v14 = vmul.f32 %v866_v36, %v3002_v55  ;;  %v3034_v28 = vperm.slane %v558_v41, 0 }
  0xe0   : > { %887 = vrot.lane.b32.xlu1 %v879_v37, %s2671_s28  ;;  %4279 = vst [vmem:[#allocation19_spill] sm:$0xff] %v3034_v28  ;;  %v567_v24 = vmul.f32 %v3034_v28, %v2904_v21  ;;  %v3054_v21 = vperm.slane %v589_v15, 1 }
  0xe1   : > { %v3026_v57 = vld.sshfl [vmem:[#allocation1] sm:$0xff pattern:$0x75316420]  ;;  %v3028_v0 = vld.sshfl [vmem:[#allocation1 + $0x8] sm:$0xff pattern:$0x75316420] }
  0xe2   : > { %739 = vst [vmem:[#allocation1] ss:$2 sm:$0xff] %v2928_v38  ;;  %885 = vrot.lane.b32.xlu0 %v878_v14, %s2671_s28  ;;  %v877_v18 = vmul.f32 %v866_v36, %v3054_v21  ;;  %v651_v36 = vperm.slane %v2928_v38, 3 }
  0xe3   : > { %668 = vrot.lane.b32.xlu2 %v661_v58, %s2670_s27  ;;  %v846_v58 = vmul.f32 %v2960_v59, %v3034_v28  ;;  %4280 = vst [vmem:[#allocation20_spill] sm:$0xff] %v3054_v21 }
  0xe5   : > { %v779_v37 = vld.sshfl [vmem:[#allocation1 + $0x10] sm:$0xff pattern:$0x75316420] }
  0xe6   : > { %1003 = vst [vmem:[#allocation1 + $0x10] ss:$2 sm:$0xff] %v3037_v26 }
  0xe8   : > { %574 = vrot.lane.b32.xlu1 %v567_v24, %s2670_s27  ;;  %v598_v24 = vmul.f32 %v3054_v21, %v2948_v51 }
  0xe9   : > { %v3046_v14 = vld.sshfl [vmem:[#allocation1] sm:$0xff pattern:$0x75316420]  ;;  %v3048_v41 = vld.sshfl [vmem:[#allocation1 + $0x8] sm:$0xff pattern:$0x75316420] }
  0xea   : > { %758 = vst [vmem:[#allocation1] ss:$2 sm:$0xff] %v2928_v38  ;;  %914 = vrot.lane.b32.xlu0 %v908_v13, %s2671_s28  ;;  %v3069_v13 = vperm.slane %v621_v9, 2 }
  0xeb   : > { %853 = vrot.lane.b32.xlu2 %v846_v58, %s2671_s28  ;;  %v4225_v58 = vmov 19  }
  0xec   : > { %4281 = vst [vmem:[#allocation21_spill] sm:$0xff] %v3069_v13  ;;  %v630_v51 = vmul.f32 %v3069_v13, %v2908_v23  ;;  %2463 = vset.pattern.permute.xlu0 %v4225_v58 }
  0xed   : > { %v1006_v12 = vld.sshfl [vmem:[#allocation1 + $0x10] sm:$0xff pattern:$0x75316420] }
  0xee   : > { %1020 = vst [vmem:[#allocation1 + $0x10] ss:$2 sm:$0xff] %v3037_v26 }
  0xf0   : > { %604 = vrot.lane.b32.xlu1 %v598_v24, %s2670_s27 }
  0xf1   : > { %v3063_v17 = vld.sshfl [vmem:[#allocation1] sm:$0xff pattern:$0x75316420]  ;;  %v3065_v16 = vld.sshfl [vmem:[#allocation1 + $0x8] sm:$0xff pattern:$0x75316420] }
  0xf2   : > { %732 = vrot.lane.b32.xlu0 %v2978_v30, %s2672_s21  ;;  %774 = vst [vmem:[#allocation1] ss:$2 sm:$0xff] %v2928_v38 }
  0xf3   : > { %883 = vrot.lane.b32.xlu2 %v877_v18, %s2671_s28  ;;  %v3088_v18 = vperm.slane %v651_v36, 3 }
  0xf5   : > { %v1023_v15 = vld.sshfl [vmem:[#allocation1 + $0x10] sm:$0xff pattern:$0x75316420]  ;;  %4282 = vst [vmem:[#allocation22_spill] sm:$0xff] %v3088_v18  ;;  %v660_v24 = vmul.f32 %v3088_v18, %v2970_v19 }
  0xf6   : > { %1039 = vst [vmem:[#allocation1 + $0x10] ss:$2 sm:$0xff] %v3037_v26 }
  0xf8   : > { %637 = vrot.lane.b32.xlu1 %v630_v51, %s2670_s27 }
  0xf9   : > { %v3079_v30 = vld.sshfl [vmem:[#allocation1] sm:$0xff pattern:$0x75316420]  ;;  %v3081_v9 = vld.sshfl [vmem:[#allocation1 + $0x8] sm:$0xff pattern:$0x75316420] }
  0xfa   : > { %749 = vrot.lane.b32.xlu0 %v3000_v54, %s2674_s25  ;;  %1001 = vst [vmem:[#allocation1] ss:$2 sm:$0xff] %v2928_v38 }
  0xfb   : > { %471 = vrot.lane.b32.xlu2 %v2937_v44, %s2675_s12  ;;  %v845_v44 = vmul.f32 %v2960_v59, %v2976_v29 }
  0xfd   : > { %v1042_v23 = vld.sshfl [vmem:[#allocation1 + $0x10] sm:$0xff pattern:$0x75316420] }
  0xfe   : > { %1055 = vst [vmem:[#allocation1 + $0x10] ss:$2 sm:$0xff] %v3037_v26 }
 0x100   : > { %666 = vrot.lane.b32.xlu1 %v660_v24, %s2670_s27 }
 0x101   : > { %v3094_v51 = vld.sshfl [vmem:[#allocation1] sm:$0xff pattern:$0x75316420]  ;;  %v3096_v58 = vld.sshfl [vmem:[#allocation1 + $0x8] sm:$0xff pattern:$0x75316420] }
 0x102   : > { %500 = vrot.lane.b32.xlu0 %v3008_v60, %s2675_s12  ;;  %1018 = vst [vmem:[#allocation1] ss:$2 sm:$0xff] %v2928_v38 }
 0x103   : > { %469 = vrot.lane.b32.xlu2 %v2945_v50, %s2675_s12  ;;  %v909_v50 = vmul.f32 %v2982_v35, %v3069_v13 }
 0x108   : > { %851 = vrot.lane.b32.xlu1 %v845_v44, %s2671_s28 }
 0x109   : > { %v3106_v19 = vld.sshfl [vmem:[#allocation1] sm:$0xff pattern:$0x75316420]  ;;  %v3108_v54 = vld.sshfl [vmem:[#allocation1 + $0x8] sm:$0xff pattern:$0x75316420] }
 0x10a   : > { %768 = vrot.lane.b32.xlu0 %v3018_v33, %s2674_s25  ;;  %1037 = vst [vmem:[#allocation1] ss:$2 sm:$0xff] %v2928_v38 }
 0x10b   : > { %504 = vrot.lane.b32.xlu2 %v2956_v56, %s2675_s12  ;;  %v4226_v56 = vmov 21  }
 0x110   : > { %916 = vrot.lane.b32.xlu1 %v909_v50, %s2671_s28  ;;  %v4233_v50 = vmov 22  }
 0x111   : > { %v3118_v59 = vld.sshfl [vmem:[#allocation1] sm:$0xff pattern:$0x75316420]  ;;  %v3120_v60 = vld.sshfl [vmem:[#allocation1 + $0x8] sm:$0xff pattern:$0x75316420]  ;;  %2466 = vset.pattern.permute.xlu1 %v4233_v50 }
 0x112   : > { %784 = vrot.lane.b32.xlu0 %v779_v37, %s2672_s21  ;;  %1053 = vst [vmem:[#allocation1] ss:$2 sm:$0xff] %v2928_v38  ;;  %v3135_v38 = vpop.permute.xlu0 %689  ;;  %v4237_v50 = vmov 26  }
 0x113   : > { %730 = vrot.lane.b32.xlu2 %v3028_v0, %s2672_s21 }
 0x116   : > { %v3162_v44 = vpop.permute.xlu2 %576 }
 0x118   : > { %467 = vrot.lane.b32.xlu1 %v2943_v49, %s2675_s12 }
 0x11a   : > { %927 = vperm.xlu0 %2463, %v2863_v1   ;;  %v3138_v35 = vpop.permute.xlu0 %813 }
 0x11e   : > { %v3169_v11 = vpop.permute.xlu2 %639 }
 0x120   : > { %502 = vrot.lane.b32.xlu1 %v3010_v61, %s2675_s12  ;;  %v1058_v61 = vld.sshfl [vmem:[#allocation1 + $0x10] sm:$0xff pattern:$0x75316420] }
 0x122   : > { %2465 = vset.pattern.permute.xlu0 %v4226_v56 }
 0x123   : > { %968 = vperm.xlu0 %2465, %v2863_v1  }
 0x128   : > { %728 = vrot.lane.b32.xlu1 %v3026_v57, %s2672_s21 }
 0x12b   : > { %1011 = vrot.lane.b32.xlu0 %v1006_v12, %s4257_s22 }
 0x12c   : > { %2470 = vset.pattern.permute.xlu0 %v4237_v50 }
 0x12d   : > { %v3176_v7 = vpop.permute.xlu2 %918 }
 0x133   : > { %1028 = vrot.lane.b32.xlu0 %v1023_v15, %s4259_s18 }
 0x137   : > { %v3167_v56 = vpop.permute.xlu1 %608 }
 0x13b   : > { %1047 = vrot.lane.b32.xlu0 %v1042_v23, %s4259_s18  ;;  %v4231_v23 = vmov 20  }
 0x13c   : > { %v3142_v49 = vpop.permute.xlu0 %855  ;;  %2464 = vset.pattern.permute.xlu2 %v4231_v23  ;;  %v932_v23 = vperm.slane %v2941_v47, 3 }
 0x13e   : > { %v938_v6 = vperm.slane %v932_v23, 3  ;;  %v4240_v23 = vmov 25  }
 0x140   : > { %v3179_v5 = vpop.permute.xlu1 %670 }
 0x143   : > { %1063 = vrot.lane.b32.xlu0 %v1058_v61, %s4257_s22 }
 0x144   : > { %v3145_v33 = vpop.permute.xlu0 %572 }
 0x14b   : > { %1092 = vperm.xlu0 %2470, %v2863_v1  }
 0x14c   : > { %v3147_v57 = vpop.permute.xlu0 %635 }
 0x152   : > { %v3184_v47 = vpop.permute.xlu1 %887 }
 0x154   : > { %v3149_v0 = vpop.permute.xlu0 %885 }
 0x15a   : > { %v3191_v50 = vpop.permute.xlu1 %574 }
 0x15c   : > { %v3151_v37 = vpop.permute.xlu0 %914 }
 0x164   : > { %v3153_v12 = vpop.permute.xlu0 %732 }
 0x16c   : > { %v3155_v36 = vpop.permute.xlu0 %749 }
 0x174   : > { %v3157_v15 = vpop.permute.xlu0 %500 }
 0x17c   : > { %v3160_v24 = vpop.permute.xlu0 %768 }
 0x184   : > { %v3165_v61 = vpop.permute.xlu0 %784 }
 0x18c   : > { %v928_v10 = vpop.permute.xlu0 %927 }
 0x18d   : > { %v939_v22 = vmul.f32 %v928_v10, %v3088_v18  ;;  %v940_v8 = vmul.f32 %v928_v10, %v3022_v46  ;;  %v941_v2 = vmul.f32 %v938_v6, %v928_v10 }
 0x18f   : > { %947 = vrot.lane.b32.xlu2 %v940_v8, %s2671_s28  ;;  %945 = vrot.lane.b32.xlu1 %v939_v22, %s2671_s28  ;;  %v3186_v8 = vpop.permute.xlu2 %606  ;;  %v4239_v22 = vmov 23  }
 0x197   : > { %958 = vperm.xlu2 %2464, %v2863_v1   ;;  %949 = vrot.lane.b32.xlu1 %v941_v2, %s2671_s28  ;;  %v3193_v3 = vpop.permute.xlu2 %668  ;;  %v3199_v2 = vpop.permute.xlu1 %604 }
 0x19f   : > { %2467 = vset.pattern.permute.xlu2 %v4239_v22  ;;  %978 = vperm.xlu1 %2466, %v2863_v1   ;;  %v3201_v6 = vpop.permute.xlu2 %853  ;;  %v3209_v10 = vpop.permute.xlu1 %637 }
 0x1a0   : > { %988 = vperm.xlu2 %2467, %v2863_v1  }
 0x1a7   : > { %745 = vrot.lane.b32.xlu1 %v3046_v14, %s2674_s25  ;;  %v3213_v14 = vpop.permute.xlu2 %883 }
 0x1a8   : > { %747 = vrot.lane.b32.xlu2 %v3048_v41, %s2674_s25  ;;  %v4241_v41 = vmov 24  }
 0x1a9   : > { %2468 = vset.pattern.permute.xlu1 %v4241_v41  ;;  %2469 = vset.pattern.permute.xlu2 %v4240_v23 }
 0x1af   : > { %764 = vrot.lane.b32.xlu1 %v3063_v17, %s2674_s25  ;;  %v472_v17 = vpop.permute.xlu2 %471 }
 0x1b0   : > { %766 = vrot.lane.b32.xlu2 %v3065_v16, %s2674_s25  ;;  %v3221_v16 = vpop.permute.xlu1 %666 }
 0x1b7   : > { %780 = vrot.lane.b32.xlu1 %v3079_v30, %s2672_s21  ;;  %v393_v30 = vlaneseq }
 0x1b8   : > { %782 = vrot.lane.b32.xlu2 %v3081_v9, %s2672_s21  ;;  %v3230_v23 = vpop.permute.xlu1 %851 }
 0x1b9   : > { %v3223_v22 = vand.u32 127, %v393_v30 }
 0x1bb   : > { %v395_v9 = vadd.s32 128, %v3223_v22 }
 0x1bd   : > { %v407_v41 = vand.u32 15, %v395_v9  ;;  %v1056_v9 = vld.sshfl [vmem:[#allocation1] sm:$0xff pattern:$0x75316420] }
 0x1bf   : > { %1007 = vrot.lane.b32.xlu1 %v3094_v51, %s4257_s22  ;;  %v470_v51 = vpop.permute.xlu2 %469  ;;  %vm3236_vm9 = vcmp.eq.s32.totalorder %v407_v41, 0  ;;  %vm3276_vm12 = vcmp.eq.s32.totalorder %v407_v41, 15 }
 0x1c0   : > { %1009 = vrot.lane.b32.xlu2 %v3096_v58, %s4257_s22  ;;  %v3244_v30 = vpop.permute.xlu1 %916 }
 0x1c7   : > { %1024 = vrot.lane.b32.xlu1 %v3106_v19, %s4259_s18  ;;  %v475_v19 = vsel %vm473_vm8, %v470_v51, %v472_v17  ;;  %v505_v4 = vpop.permute.xlu2 %504 }
 0x1c8   : > { %1026 = vrot.lane.b32.xlu2 %v3108_v54, %s4259_s18  ;;  %v484_v54 = vsel %vm3236_vm9, %v475_v19, %v2966_v63  ;;  %v468_v13 = vpop.permute.xlu1 %467 }
 0x1c9   : > { %v528_v27 = vperm.slane %v484_v54, 1  ;;  %v538_v17 = vperm.slane %v484_v54, 2  ;;  %v548_v52 = vperm.slane %v484_v54, 3 }
 0x1cb   : > { %v530_v18 = vmul.f32 %v528_v27, %v2923_v32  ;;  %v550_v21 = vmul.f32 %v548_v52, %v2932_v40 }
 0x1cf   : > { %1043 = vrot.lane.b32.xlu1 %v3118_v59, %s4259_s18  ;;  %v1057_v59 = vld.sshfl [vmem:[#allocation1 + $0x8] sm:$0xff pattern:$0x75316420]  ;;  %v3252_v19 = vpop.permute.xlu2 %730 }
 0x1d0   : > { %1045 = vrot.lane.b32.xlu2 %v3120_v60, %s4259_s18  ;;  %v518_v60 = vperm.slane %v484_v54, 0 }
 0x1d2   : > { %v520_v46 = vmul.f32 %v518_v60, %v2930_v39  ;;  %v4251_v60 = vmov 27  }
 0x1d4   : > { %v532_v63 = vadd.f32 %v530_v18, %v520_v46  ;;  %v474_v46 = vsel %vm473_vm8, %v468_v13, %v470_v51  ;;  %v4252_v18 = vmov 28   ;;  %v580_v13 = vsel %vm578_vm11, %v3191_v50, %v3162_v44 }
 0x1d7   : > { %1059 = vrot.lane.b32.xlu1 %v1056_v9, %s4257_s22  ;;  %v540_v9 = vmul.f32 %v538_v17, %v2902_v20  ;;  %v503_v17 = vpop.permute.xlu1 %502 }
 0x1d8   : > { %1061 = vrot.lane.b32.xlu2 %v1057_v59, %s4257_s22  ;;  %v4253_v59 = vand.u32 15, %v3223_v22  ;;  %s2329_s22 = sld [smem:[#allocation7 + $0x1]] }
 0x1d9   : > { %v542_v55 = vadd.f32 %v540_v9, %v532_v63 }
 0x1da   : > { %vm3260_vm10 = vcmp.eq.s32.totalorder %v4253_v59, 0 }
 0x1db   : > { %v552_v54 = vadd.f32 %v550_v21, %v542_v55  ;;  %v483_v63 = vsel %vm3260_vm10, %v474_v46, %v2964_v62  ;;  %v507_v55 = vsel %vm473_vm8, %v503_v17, %v505_v4  ;;  %v642_v4 = vsel %vm578_vm11, %v3209_v10, %v3169_v11 }
 0x1dc   : > { %v527_v21 = vperm.slane %v483_v63, 1  ;;  %v511_v62 = vsel %vm3276_vm12, %v2990_v43, %v507_v55  ;;  %v673_v43 = vsel %vm578_vm11, %v3193_v3, %v3179_v5  ;;  %v579_v5 = vsel %vm578_vm11, %v3145_v33, %v3191_v50 }
 0x1dd   : > { %v584_v51 = vadd.f32 %v580_v13, %v552_v54  ;;  %v683_v54 = vperm.slane %v511_v62, 0  ;;  %v537_v13 = vperm.slane %v483_v63, 2  ;;  %v693_v55 = vperm.slane %v511_v62, 1 }
 0x1de   : > { %v529_v41 = vmul.f32 %v527_v21, %v2923_v32  ;;  %v610_v33 = vsel %vm578_vm11, %v3199_v2, %v3186_v8  ;;  %s2149_s18 = ssub.f32 0.0, %s2329_s22 }
 0x1df   : > { %1072 = vperm.xlu1 %2468, %v2863_v1   ;;  %v3299_v32 = vpop.permute.xlu1 %728 }
 0x1e0   : > { %1082 = vperm.xlu2 %2469, %v2863_v1  }
 0x1e7   : > { %2471 = vset.pattern.permute.xlu1 %v4251_v60  ;;  %v611_v60 = vsel %vm578_vm11, %v3186_v8, %v3167_v56  ;;  %v685_v56 = vmul.f32 %v683_v54, %v2918_v31  ;;  %v641_v8 = vsel %vm578_vm11, %v3147_v57, %v3209_v10  ;;  %v672_v57 = vsel %vm578_vm11, %v3221_v16, %v3193_v3 }
 0x1e8   : > { %2472 = vset.pattern.permute.xlu2 %v4252_v18  ;;  %1102 = vperm.xlu1 %2471, %v2863_v1   ;;  %v615_v46 = vadd.f32 %v611_v60, %v584_v51  ;;  %v539_v60 = vmul.f32 %v537_v13, %v2902_v20  ;;  %v547_v51 = vperm.slane %v483_v63, 3 }
 0x1e9   : > { %1112 = vperm.xlu2 %2472, %v2863_v1   ;;  %v3268_v52 = vpop.permute.xlu2 %947  ;;  %v517_v1 = vperm.slane %v483_v63, 0 }
 0x1ea   : > { %v646_v59 = vadd.f32 %v642_v4, %v615_v46  ;;  %v549_v46 = vmul.f32 %v547_v51, %v2932_v40  ;;  %v736_v40 = vsel %vm734_vm13, %v3252_v19, %v3153_v12 }
 0x1eb   : > { %v519_v44 = vmul.f32 %v517_v1, %v2930_v39 }
 0x1ec   : > { %v677_v39 = vadd.f32 %v673_v43, %v646_v59  ;;  %v713_v59 = vperm.slane %v511_v62, 3 }
 0x1ed   : > { %v531_v28 = vadd.f32 %v529_v41, %v519_v44  ;;  %v695_v44 = vmul.f32 %v693_v55, %v3135_v38  ;;  %v703_v41 = vperm.slane %v511_v62, 2  ;;  %v4289_v55 = vand.u32 15, %v3223_v22 }
 0x1ee   : > { %v687_v11 = vadd.f32 %v685_v56, %v677_v39  ;;  %v715_v50 = vmul.f32 %v713_v59, %v2926_v34 }
 0x1ef   : > { %v541_v1 = vadd.f32 %v539_v60, %v531_v28  ;;  %v705_v20 = vmul.f32 %v703_v41, %v2951_v53  ;;  %vm3324_vm15 = vcmp.eq.s32.totalorder %v4289_v55, 15 }
 0x1f0   : > { %v697_v4 = vadd.f32 %v695_v44, %v687_v11 }
 0x1f1   : > { %v3287_v18 = vpop.permute.xlu2 %958  ;;  %v551_v54 = vadd.f32 %v549_v46, %v541_v1 }
 0x1f2   : > { %v707_v56 = vadd.f32 %v705_v20, %v697_v4 }
 0x1f3   : > { %v583_v63 = vadd.f32 %v579_v5, %v551_v54 }
 0x1f4   : > { %v717_v1 = vadd.f32 %v715_v50, %v707_v56  ;;  %v890_v50 = vsel %vm857_vm0, %v3149_v0, %v3184_v47 }
 0x1f5   : > { %v614_v39 = vadd.f32 %v610_v33, %v583_v63 }
 0x1f7   : > { %v645_v4 = vadd.f32 %v641_v8, %v614_v39 }
 0x1f9   : > { %v676_v59 = vadd.f32 %v672_v57, %v645_v4 }
 0x1fa   : > { %v3301_v21 = vpop.permute.xlu2 %988 }
 0x201   : > { %v3309_v28 = vpop.permute.xlu1 %945 }
 0x202   : > { %v748_v13 = vpop.permute.xlu2 %747 }
 0x203   : > { %v753_v43 = vsel %vm4256_vm14, %v748_v13, %v3155_v36  ;;  %v506_v36 = vsel %vm473_vm8, %v3157_v15, %v503_v17 }
 0x204   : > { %v757_v60 = vsel %vm3236_vm9, %v736_v40, %v753_v43  ;;  %v510_v2 = vsel %vm3324_vm15, %v2988_v42, %v506_v36  ;;  %v859_v40 = vsel %vm857_vm0, %v3201_v6, %v3142_v49 }
 0x205   : > { %v797_v62 = vperm.slane %v757_v60, 0  ;;  %v807_v51 = vperm.slane %v757_v60, 1  ;;  %v817_v46 = vperm.slane %v757_v60, 2  ;;  %v827_v41 = vperm.slane %v757_v60, 3 }
 0x206   : > { %v682_v20 = vperm.slane %v510_v2, 0  ;;  %v692_v43 = vperm.slane %v510_v2, 1  ;;  %v702_v39 = vperm.slane %v510_v2, 2  ;;  %v712_v49 = vperm.slane %v510_v2, 3 }
 0x207   : > { %v799_v11 = vmul.f32 %v797_v62, %v2972_v25  ;;  %v809_v44 = vmul.f32 %v807_v51, %v2939_v45  ;;  %v819_v5 = vmul.f32 %v817_v46, %v3138_v35  ;;  %v829_v42 = vmul.f32 %v827_v41, %v2996_v48 }
 0x208   : > { %v684_v56 = vmul.f32 %v682_v20, %v2918_v31  ;;  %v694_v51 = vmul.f32 %v692_v43, %v3135_v38  ;;  %v704_v36 = vmul.f32 %v702_v39, %v2951_v53  ;;  %v714_v38 = vmul.f32 %v712_v49, %v2926_v34 }
 0x209   : > { %v801_v22 = vadd.f32 %v799_v11, %v717_v1  ;;  %v3338_v54 = vpop.permute.xlu1 %949  ;;  %v735_v11 = vsel %vm734_vm13, %v3299_v32, %v3252_v19  ;;  %v858_v34 = vsel %vm857_vm0, %v3230_v23, %v3201_v6  ;;  %v969_v6 = vpop.permute.xlu0 %968 }
 0x20a   : > { %v3340_v15 = vpop.permute.xlu2 %766  ;;  %v686_v3 = vadd.f32 %v684_v56, %v676_v59  ;;  %v2687_v56 = vmov 29  }
 0x20b   : > { %v811_v17 = vadd.f32 %v809_v44, %v801_v22  ;;  %2473 = vset.pattern.permute.xlu1 %v2687_v56 }
 0x20c   : > { %v696_v55 = vadd.f32 %v694_v51, %v686_v3 }
 0x20d   : > { %v821_v10 = vadd.f32 %v819_v5, %v811_v17 }
 0x20e   : > { %v706_v31 = vadd.f32 %v704_v36, %v696_v55 }
 0x20f   : > { %v831_v63 = vadd.f32 %v829_v42, %v821_v10 }
 0x210   : > { %v716_v41 = vadd.f32 %v714_v38, %v706_v31 }
 0x211   : > { %v863_v60 = vadd.f32 %v859_v40, %v831_v63  ;;  %v3351_v33 = vpop.permute.xlu1 %978  ;;  %v1012_v49 = vpop.permute.xlu0 %1011 }
 0x212   : > { %v783_v16 = vpop.permute.xlu2 %782 }
 0x213   : > { %v894_v62 = vadd.f32 %v890_v50, %v863_v60  ;;  %v787_v23 = vsel %vm734_vm13, %v783_v16, %v3165_v61  ;;  %v921_v61 = vsel %vm857_vm0, %v3244_v30, %v3176_v7 }
 0x219   : > { %v746_v1 = vpop.permute.xlu1 %745 }
 0x21a   : > { %v752_v46 = vsel %vm4256_vm14, %v746_v1, %v748_v13  ;;  %v3362_v8 = vpop.permute.xlu2 %1009  ;;  %v952_v1 = vsel %vm857_vm0, %v3268_v52, %v3338_v54 }
 0x21b   : > { %v756_v47 = vsel %vm3260_vm10, %v735_v11, %v752_v46 }
 0x21c   : > { %v796_v22 = vperm.slane %v756_v47, 0  ;;  %v806_v44 = vperm.slane %v756_v47, 1  ;;  %v816_v2 = vperm.slane %v756_v47, 2  ;;  %v826_v5 = vperm.slane %v756_v47, 3 }
 0x21e   : > { %v798_v53 = vmul.f32 %v796_v22, %v2972_v25  ;;  %v808_v17 = vmul.f32 %v806_v44, %v2939_v45  ;;  %v818_v13 = vmul.f32 %v816_v2, %v3138_v35  ;;  %v828_v42 = vmul.f32 %v826_v5, %v2996_v48  ;;  %v1029_v5 = vpop.permute.xlu0 %1028 }
 0x21f   : > { %v889_v25 = vsel %vm857_vm0, %v3213_v14, %v3149_v0  ;;  %v920_v35 = vsel %vm857_vm0, %v3151_v37, %v3244_v30  ;;  %v771_v14 = vsel %vm4256_vm14, %v3340_v15, %v3160_v24  ;;  %v1117_v24 = vperm.slane %v3037_v26, 0 }
 0x220   : > { %v800_v4 = vadd.f32 %v798_v53, %v716_v41  ;;  %v791_v37 = vsel %vm3276_vm12, %v771_v14, %v787_v23  ;;  %v4292_v41 = vld [vmem:[#allocation19_spill] sm:$0xff] }
 0x221   : > { %v765_v19 = vpop.permute.xlu1 %764  ;;  %v962_v55 = vperm.slane %v791_v37, 0  ;;  %v1123_v30 = vperm.slane %v1117_v24, 0  ;;  %v972_v47 = vperm.slane %v791_v37, 1 }
 0x222   : > { %v810_v32 = vadd.f32 %v808_v17, %v800_v4  ;;  %v1027_v20 = vpop.permute.xlu2 %1026  ;;  %v770_v3 = vsel %vm4256_vm14, %v765_v19, %v3340_v15  ;;  %v951_v15 = vsel %vm857_vm0, %v3309_v28, %v3268_v52  ;;  %v982_v28 = vperm.slane %v791_v37, 2 }
 0x223   : > { %v964_v11 = vmul.f32 %v962_v55, %v3287_v18  ;;  %vm4261_vm14 = vcmask 777216  }
 0x224   : > { %v820_v57 = vadd.f32 %v818_v13, %v810_v32  ;;  %v1032_v32 = vsel %vm1030_vm1, %v1027_v20, %v1029_v5  ;;  %v4294_v5 = vld [vmem:[#allocation17_spill] sm:$0xff] }
 0x226   : > { %v830_v10 = vadd.f32 %v828_v42, %v820_v57  ;;  %v984_v42 = vmul.f32 %v982_v28, %v3351_v33 }
 0x228   : > { %v862_v59 = vadd.f32 %v858_v34, %v830_v10  ;;  %v992_v10 = vperm.slane %v791_v37, 3  ;;  %v1015_v34 = vsel %vm1013_vm2, %v3362_v8, %v1012_v49 }
 0x229   : > { %v781_v45 = vpop.permute.xlu1 %780 }
 0x22a   : > { %v893_v63 = vadd.f32 %v889_v25, %v862_v59  ;;  %v3377_v40 = vpop.permute.xlu2 %1045  ;;  %v786_v0 = vsel %vm734_vm13, %v781_v45, %v783_v16  ;;  %v925_v16 = vadd.f32 %v921_v61, %v894_v62 }
 0x22b   : > { %v790_v39 = vsel %vm3324_vm15, %v770_v3, %v786_v0 }
 0x22c   : > { %v924_v48 = vadd.f32 %v920_v35, %v893_v63  ;;  %v961_v36 = vperm.slane %v790_v39, 0  ;;  %v956_v31 = vadd.f32 %v952_v1, %v925_v16  ;;  %v971_v22 = vperm.slane %v790_v39, 1 }
 0x22d   : > { %v981_v17 = vperm.slane %v790_v39, 2  ;;  %v991_v59 = vperm.slane %v790_v39, 3  ;;  %v3430_v63 = vsel %vm3236_vm9, %v1015_v34, %v1032_v32 }
 0x22e   : > { %v963_v7 = vmul.f32 %v961_v36, %v3287_v18  ;;  %v955_v62 = vadd.f32 %v951_v15, %v924_v48  ;;  %v966_v2 = vadd.f32 %v964_v11, %v956_v31  ;;  %v974_v18 = vmul.f32 %v972_v47, %v969_v6  ;;  %v3446_v15 = vpop.permute.xlu0 %1047 }
 0x22f   : > { %v973_v4 = vmul.f32 %v971_v22, %v969_v6  ;;  %v983_v45 = vmul.f32 %v981_v17, %v3351_v33  ;;  %v3437_v6 = vld [vmem:[%s4203_s1] sm:$0xf]  ;;  %v993_v33 = vmul.f32 %v991_v59, %v3301_v21  ;;  %v1076_v0 = vperm.slane %v3430_v63, 0 }
 0x230   : > { %v965_v52 = vadd.f32 %v963_v7, %v955_v62  ;;  %v976_v19 = vadd.f32 %v974_v18, %v966_v2  ;;  %v1086_v37 = vperm.slane %v3430_v63, 1  ;;  %v2690_v31 = vmov 30   ;;  %v4295_v59 = vld [vmem:[#allocation16_spill] sm:$0xff] }
 0x231   : > { %v1008_v43 = vpop.permute.xlu1 %1007  ;;  %2474 = vset.pattern.permute.xlu2 %v2690_v31 }
 0x232   : > { %v3383_v60 = vpop.permute.xlu2 %1061  ;;  %v975_v57 = vadd.f32 %v973_v4, %v965_v52  ;;  %v1014_v25 = vsel %vm1013_vm2, %v1008_v43, %v3362_v8  ;;  %v986_v35 = vadd.f32 %v984_v42, %v976_v19  ;;  %v994_v8 = vmul.f32 %v992_v10, %v3301_v21  ;;  %v4293_v4 = vld [vmem:[#allocation20_spill] sm:$0xff] }
 0x233   : > { %v2689_v21 = vmov 31   ;;  %v1149_v52 = vperm.slane %v3037_v26, 1  ;;  %v2692_v42 = vmov 33   ;;  %v2693_v10 = vmov 32  }
 0x234   : > { %v985_v48 = vadd.f32 %v983_v45, %v975_v57  ;;  %2475 = vset.pattern.permute.xlu0 %v2689_v21  ;;  %v2691_v57 = vmov 34   ;;  %v4296_v45 = vld [vmem:[#allocation21_spill] sm:$0xff] }
 0x235   : > { %v1155_v28 = vperm.slane %v1149_v52, 1  ;;  %v4303_v52 = vmov 4  }
 0x236   : > { %v995_v3 = vadd.f32 %v993_v33, %v985_v48  ;;  %v3450_v11 = vpop.permute.xlu0 %1063  ;;  %v1096_v48 = vperm.slane %v3430_v63, 2 }
 0x239   : > { %v1025_v50 = vpop.permute.xlu1 %1024 }
 0x23a   : > { %v3395_v51 = vpop.permute.xlu2 %1082  ;;  %v1031_v13 = vsel %vm1030_vm1, %v1025_v50, %v1027_v20  ;;  %v996_v50 = vadd.f32 %v994_v8, %v986_v35  ;;  %v1180_v35 = vperm.slane %v3037_v26, 2  ;;  %v1106_v8 = vperm.slane %v3430_v63, 3 }
 0x23b   : > { %v1035_v20 = vsel %vm3260_vm10, %v1014_v25, %v1031_v13  ;;  %v1088_v55 = vmul.f32 %v1086_v37, %v3395_v51 }
 0x23c   : > { %v1085_v43 = vperm.slane %v1035_v20, 1  ;;  %v1075_v23 = vperm.slane %v1035_v20, 0  ;;  %v1095_v7 = vperm.slane %v1035_v20, 2  ;;  %v1105_v62 = vperm.slane %v1035_v20, 3 }
 0x23d   : > { %v1186_v33 = vperm.slane %v1180_v35, 2  ;;  %v1066_v35 = vsel %vm1013_vm2, %v3383_v60, %v3450_v11 }
 0x23e   : > { %v1087_v16 = vmul.f32 %v1085_v43, %v3395_v51  ;;  %v1093_v47 = vpop.permute.xlu0 %1092 }
 0x241   : > { %v3410_v46 = vpop.permute.xlu1 %1043 }
 0x243   : > { %v1113_v38 = vpop.permute.xlu2 %1112 }
 0x244   : > { %v1124_v44 = vmul.f32 %v1113_v38, %v2976_v29  ;;  %v1125_v54 = vmul.f32 %v1113_v38, %v4292_v41  ;;  %v1126_v53 = vmul.f32 %v1123_v30, %v1113_v38  ;;  %v1097_v38 = vmul.f32 %v1095_v7, %v1093_v47 }
 0x246   : > { %1134 = vrot.lane.b32.xlu0 %v1126_v53, %s2688_s9  ;;  %1132 = vrot.lane.b32.xlu2 %v1125_v54, %s2688_s9 }
 0x247   : > { %1130 = vrot.lane.b32.xlu1 %v1124_v44, %s2688_s9 }
 0x249   : > { %v3418_v29 = vpop.permute.xlu1 %1059 }
 0x24f   : > { %1144 = vperm.xlu1 %2473, %v3437_v6  }
 0x251   : > { %v1073_v14 = vpop.permute.xlu1 %1072 }
 0x252   : > { %v1077_v39 = vmul.f32 %v1075_v23, %v1073_v14  ;;  %v1078_v61 = vmul.f32 %v1076_v0, %v1073_v14  ;;  %v1098_v23 = vmul.f32 %v1096_v48, %v1093_v47  ;;  %v4298_v47 = vld [vmem:[#allocation18_spill] sm:$0xff]  ;;  %v1050_v48 = vsel %vm1030_vm1, %v3377_v40, %v3446_v15 }
 0x253   : > { %v1049_v15 = vsel %vm1030_vm1, %v3410_v46, %v3377_v40 }
 0x254   : > { %v1079_v36 = vadd.f32 %v1077_v39, %v995_v3  ;;  %v1080_v24 = vadd.f32 %v1078_v61, %v996_v50 }
 0x256   : > { %v1089_v49 = vadd.f32 %v1087_v16, %v1079_v36  ;;  %v1090_v1 = vadd.f32 %v1088_v55, %v1080_v24 }
 0x257   : > { %2478 = vset.pattern.permute.xlu1 %v2691_v57 }
 0x258   : > { %v1099_v22 = vadd.f32 %v1097_v38, %v1089_v49  ;;  %v1100_v50 = vadd.f32 %v1098_v23, %v1090_v1  ;;  %v1211_v49 = vperm.slane %v3037_v26, 3  ;;  %v1276_v26 = vld [vmem:[%s4204_s2] sm:$0xf] }
 0x25a   : > { %v1103_v30 = vpop.permute.xlu1 %1102  ;;  %v1217_v7 = vperm.slane %v1211_v49, 3 }
 0x25b   : > { %v1107_v51 = vmul.f32 %v1105_v62, %v1103_v30  ;;  %v1108_v0 = vmul.f32 %v1106_v8, %v1103_v30  ;;  %v4297_v30 = vld [vmem:[#allocation22_spill] sm:$0xff]  ;;  %v1070_v8 = vsel %vm3276_vm12, %v1050_v48, %v1066_v35  ;;  %v4316_v48 = vmov 11  }
 0x25c   : > { %v1251_v49 = vperm.slane %v1070_v8, 1 }
 0x25d   : > { %v1109_v44 = vadd.f32 %v1107_v51, %v1099_v22  ;;  %v1110_v3 = vadd.f32 %v1108_v0, %v1100_v50  ;;  %v4299_v22 = vmov 0   ;;  %v1241_v0 = vperm.slane %v1070_v8, 0 }
 0x2a0   : > { %v1133_v41 = vpop.permute.xlu2 %1132 }
 0x2b8   : > { %v1135_v43 = vpop.permute.xlu0 %1134 }
 0x2b9   : > { %v1131_v54 = vpop.permute.xlu1 %1130  ;;  %v1138_v37 = vsel %vm4261_vm14, %v1133_v41, %v1135_v43  ;;  %v1065_v43 = vsel %vm1013_vm2, %v3418_v29, %v3383_v60 }
 0x2ba   : > { %v1137_v53 = vsel %vm4261_vm14, %v1131_v54, %v1133_v41  ;;  %v1142_v39 = vadd.f32 %v1138_v37, %v1110_v3  ;;  %v4262_v41 = vmov 35   ;;  %v4301_v54 = vmov 2  }
 0x2bb   : > { %v1141_v2 = vadd.f32 %v1137_v53, %v1109_v44  ;;  %v4300_v44 = vmov 1   ;;  %v3500_v53 = vld [vmem:[%s4205_s3] sm:$0xf]  ;;  %v1069_v37 = vsel %vm3324_vm15, %v1049_v15, %v1065_v43  ;;  %v4319_v43 = vmov 15  }
 0x2bc   : > { %v4325_v15 = vmov 23  }
 0x2c1   : > { %v1145_v18 = vpop.permute.xlu1 %1144 }
 0x2c2   : > { %v1156_v17 = vmul.f32 %v1145_v18, %v4293_v4  ;;  %v1157_v19 = vmul.f32 %v1145_v18, %v4294_v5  ;;  %v1158_v32 = vmul.f32 %v1155_v28, %v1145_v18  ;;  %v4305_v28 = vmov 5  }
 0x2c3   : > { %v4306_v18 = vmov 9   ;;  %v4307_v4 = vmov 8   ;;  %v4309_v5 = vmov 17  }
 0x2c4   : > { %1166 = vrot.lane.b32.xlu1 %v1158_v32, %s2688_s9  ;;  %1164 = vrot.lane.b32.xlu0 %v1157_v19, %s2688_s9  ;;  %v4310_v19 = vmov 16   ;;  %v4311_v32 = vmov 28  }
 0x2c5   : > { %1162 = vrot.lane.b32.xlu2 %v1156_v17, %s2688_s9  ;;  %v4308_v17 = vmov 7  }
 0x2cc   : > { %1206 = vperm.xlu0 %2475, %v3437_v6  }
 0x2cd   : > { %1175 = vperm.xlu2 %2474, %v3437_v6  }
 0x2d4   : > { %2477 = vset.pattern.permute.xlu0 %v2692_v42 }
 0x2d5   : > { %2476 = vset.pattern.permute.xlu2 %v2693_v10 }
 0x31f   : > { %v1163_v13 = vpop.permute.xlu2 %1162 }
 0x327   : > { %v1176_v34 = vpop.permute.xlu2 %1175 }
 0x328   : > { %v1187_v25 = vmul.f32 %v1176_v34, %v4295_v59  ;;  %v1188_v20 = vmul.f32 %v1176_v34, %v4296_v45  ;;  %v1189_v14 = vmul.f32 %v1186_v33, %v1176_v34  ;;  %v4313_v34 = vmov 10  }
 0x32a   : > { %1195 = vrot.lane.b32.xlu2 %v1188_v20, %s2688_s9  ;;  %1193 = vrot.lane.b32.xlu1 %v1187_v25, %s2688_s9 }
 0x332   : > { %1197 = vrot.lane.b32.xlu1 %v1189_v14, %s2688_s9 }
 0x336   : > { %v1167_v61 = vpop.permute.xlu1 %1166  ;;  %v1165_v16 = vpop.permute.xlu0 %1164 }
 0x337   : > { %v1168_v55 = vsel %vm4261_vm14, %v1163_v13, %v1165_v16  ;;  %v1169_v36 = vsel %vm4261_vm14, %v1165_v16, %v1167_v61  ;;  %v4312_v13 = vmov 18   ;;  %v1240_v16 = vperm.slane %v1069_v37, 0 }
 0x338   : > { %v3475_v24 = vadd.f32 %v1168_v55, %v1141_v2  ;;  %v3477_v63 = vadd.f32 %v1169_v36, %v1142_v39  ;;  %v4302_v2 = vmov 3  }
 0x33e   : > { %v1207_v1 = vpop.permute.xlu0 %1206 }
 0x33f   : > { %v1218_v62 = vmul.f32 %v1207_v1, %v4297_v30  ;;  %v1219_v38 = vmul.f32 %v1207_v1, %v4298_v47  ;;  %v1220_v51 = vmul.f32 %v1217_v7, %v1207_v1  ;;  %v1261_v7 = vperm.slane %v1070_v8, 2 }
 0x340   : > { %v1260_v30 = vperm.slane %v1069_v37, 2 }
 0x341   : > { %1228 = vrot.lane.b32.xlu1 %v1220_v51, %s2688_s9  ;;  %1226 = vrot.lane.b32.xlu0 %v1219_v38, %s2688_s9  ;;  %v1270_v38 = vperm.slane %v1069_v37, 3  ;;  %v1271_v51 = vperm.slane %v1070_v8, 3  ;;  %v4317_v8 = vmov 13  }
 0x342   : > { %1224 = vrot.lane.b32.xlu2 %v1218_v62, %s2688_s9 }
 0x349   : > { %1257 = vperm.xlu1 %2478, %v3437_v6   ;;  %1247 = vperm.xlu0 %2477, %v3437_v6  }
 0x34a   : > { %1237 = vperm.xlu2 %2476, %v3437_v6  }
 0x351   : > { %2480 = vset.pattern.permute.xlu1 %v4299_v22  ;;  %2482 = vset.pattern.permute.xlu0 %v4300_v44 }
 0x352   : > { %2479 = vset.pattern.permute.xlu2 %v4262_v41  ;;  %1279 = vperm.xlu1 %2480, %v1276_v26  }
 0x353   : > { %1267 = vperm.xlu2 %2479, %v3437_v6   ;;  %1370 = vperm.xlu0 %2482, %v3500_v53   ;;  %v4304_v6 = vmov 6  }
 0x35a   : > { %2483 = vset.pattern.permute.xlu1 %v4301_v54 }
 0x35b   : > { %2481 = vset.pattern.permute.xlu2 %v4299_v22  ;;  %1380 = vperm.xlu1 %2483, %v3500_v53  }
 0x35c   : > { %1360 = vperm.xlu2 %2481, %v3500_v53   ;;  %2487 = vset.pattern.permute.xlu0 %v4304_v6 }
 0x35d   : > { %1462 = vperm.xlu0 %2487, %v3500_v53  }
 0x363   : > { %2485 = vset.pattern.permute.xlu1 %v4303_v52 }
 0x364   : > { %2484 = vset.pattern.permute.xlu2 %v4302_v2  ;;  %1400 = vperm.xlu1 %2485, %v3500_v53  }
 0x365   : > { %1390 = vperm.xlu2 %2484, %v3500_v53   ;;  %2489 = vset.pattern.permute.xlu0 %v4307_v4 }
 0x36c   : > { %2490 = vset.pattern.permute.xlu1 %v4306_v18 }
 0x36d   : > { %2486 = vset.pattern.permute.xlu2 %v4305_v28  ;;  %1534 = vperm.xlu1 %2490, %v3500_v53  }
 0x36e   : > { %1431 = vperm.xlu2 %2486, %v3500_v53  }
 0x375   : > { %2492 = vset.pattern.permute.xlu1 %v4309_v5 }
 0x376   : > { %2488 = vset.pattern.permute.xlu2 %v4308_v17  ;;  %1707 = vperm.xlu1 %2492, %v3500_v53  }
 0x377   : > { %1493 = vperm.xlu2 %2488, %v3500_v53  }
 0x37e   : > { %2495 = vset.pattern.permute.xlu1 %v4311_v32 }
 0x37f   : > { %2491 = vset.pattern.permute.xlu2 %v4310_v19  ;;  %1952 = vperm.xlu1 %2495, %v3500_v53  }
 0x380   : > { %1676 = vperm.xlu2 %2491, %v3500_v53  }
 0x384   : > { %v1196_v59 = vpop.permute.xlu2 %1195 }
 0x387   : > { %2497 = vset.pattern.permute.xlu1 %v4313_v34 }
 0x388   : > { %2493 = vset.pattern.permute.xlu2 %v4312_v13 }
 0x389   : > { %1738 = vperm.xlu2 %2493, %v3500_v53  }
 0x391   : > { %2496 = vset.pattern.permute.xlu2 %v2687_v56 }
 0x392   : > { %1983 = vperm.xlu2 %2496, %v3500_v53  }
 0x39a   : > { %2498 = vset.pattern.permute.xlu2 %v2690_v31 }
 0x39c   : > { %v1194_v25 = vpop.permute.xlu1 %1193  ;;  %v1225_v45 = vpop.permute.xlu2 %1224 }
 0x39d   : > { %v1199_v33 = vsel %vm4261_vm14, %v1194_v25, %v1196_v59 }
 0x39e   : > { %v1203_v39 = vadd.f32 %v1199_v33, %v3475_v24  ;;  %v4321_v33 = vmov 20  }
 0x3a4   : > { %v1198_v20 = vpop.permute.xlu1 %1197  ;;  %v1238_v31 = vpop.permute.xlu2 %1237 }
 0x3a5   : > { %v1200_v56 = vsel %vm4261_vm14, %v1196_v59, %v1198_v20  ;;  %v1243_v3 = vmul.f32 %v1241_v0, %v1238_v31  ;;  %v1242_v36 = vmul.f32 %v1240_v16, %v1238_v31  ;;  %v4315_v20 = vmov 12  }
 0x3a6   : > { %v1204_v23 = vadd.f32 %v1200_v56, %v3477_v63  ;;  %v1250_v63 = vperm.slane %v1069_v37, 1  ;;  %v4320_v31 = vmov 22   ;;  %v4322_v0 = vmov 21  }
 0x3ad   : > { %v1268_v26 = vpop.permute.xlu2 %1267 }
 0x3ae   : > { %v1272_v52 = vmul.f32 %v1270_v38, %v1268_v26  ;;  %v1273_v6 = vmul.f32 %v1271_v51, %v1268_v26 }
 0x3b3   : > { %v1229_v11 = vpop.permute.xlu1 %1228  ;;  %v1227_v14 = vpop.permute.xlu0 %1226 }
 0x3b4   : > { %v1231_v50 = vsel %vm4261_vm14, %v1227_v14, %v1229_v11  ;;  %v1230_v60 = vsel %vm4261_vm14, %v1225_v45, %v1227_v14  ;;  %vm1289_vm14 = vcmask 1043456   ;;  %v4314_v45 = vmov 19  }
 0x3b5   : > { %v1235_v29 = vadd.f32 %v1231_v50, %v1204_v23  ;;  %v1234_v55 = vadd.f32 %v1230_v60, %v1203_v39  ;;  %v4323_v11 = vmov 24   ;;  %v4324_v14 = vmov 25  }
 0x3b6   : > { %v3565_v35 = vpop.permute.xlu2 %1360 }
 0x3b7   : > { %v1245_v61 = vadd.f32 %v1243_v3, %v1235_v29  ;;  %v1244_v46 = vadd.f32 %v1242_v36, %v1234_v55 }
 0x3bb   : > { %v1258_v1 = vpop.permute.xlu1 %1257  ;;  %v1248_v40 = vpop.permute.xlu0 %1247 }
 0x3bc   : > { %v1252_v62 = vmul.f32 %v1250_v63, %v1248_v40  ;;  %v1253_v47 = vmul.f32 %v1251_v49, %v1248_v40  ;;  %v1262_v44 = vmul.f32 %v1260_v30, %v1258_v1  ;;  %v1263_v54 = vmul.f32 %v1261_v7, %v1258_v1 }
 0x3be   : > { %v1254_v2 = vadd.f32 %v1252_v62, %v1244_v46  ;;  %v1255_v24 = vadd.f32 %v1253_v47, %v1245_v61 }
 0x3bf   : > { %v3573_v56 = vpop.permute.xlu2 %1390 }
 0x3c0   : > { %v1264_v28 = vadd.f32 %v1262_v44, %v1254_v2  ;;  %v1265_v18 = vadd.f32 %v1263_v54, %v1255_v24 }
 0x3c2   : > { %v1274_v4 = vadd.f32 %v1272_v52, %v1264_v28  ;;  %v1275_v17 = vadd.f32 %v1273_v6, %v1265_v18 }
 0x3c4   : > { %v1280_v5 = vpop.permute.xlu1 %1279 }
 0x3c5   : > { %v1282_v19 = vadd.f32 %v1280_v5, %v1274_v4  ;;  %v1283_v32 = vadd.f32 %v1280_v5, %v1275_v17  ;;  %v3604_v63 = vpop.permute.xlu0 %1370 }
 0x3c7   : > { %v1284_v13 = vmax.f32 %v1282_v19, 0.0  ;;  %v1285_v34 = vmax.f32 %v1283_v32, 0.0 }
 0x3c8   : > { %v3581_v23 = vpop.permute.xlu2 %1431 }
 0x3c9   : > { %v1288_v59 = vrot.slane %v1285_v34, 4  ;;  %1303 = vrot.lane.b32.xlu1 %v1285_v34, %s2648_s29  ;;  %1299 = vrot.lane.b32.xlu0 %v1284_v13, %s2652_s23  ;;  %s4329_s29 = smov 96   ;;  %s2338_s23 = sshll.u32 %s2771_s17, 3 }
 0x3ca   : > { %s2220_s17 = scalar_lea.sflag [#allocation5], %s2843_s11 }
 0x3cb   : > { %v1290_v25 = vsel %vm1289_vm14, %v1284_v13, %v1288_v59 }
 0x3cc   : > { %1291 = vrot.lane.b32.xlu2 %v1290_v25, %s2649_s19  ;;  %s4330_s19 = smov 94  }
 0x3cd   : > { %v3592_v3 = vpop.permute.xlu1 %1380 }
 0x3cf   : > { %v3612_v40 = vpop.permute.xlu0 %1462 }
 0x3d1   : > { %1544 = vperm.xlu1 %2497, %v3500_v53   ;;  %1524 = vperm.xlu0 %2489, %v3500_v53   ;;  %v3588_v50 = vpop.permute.xlu2 %1493 }
 0x3d4   : > { %2014 = vperm.xlu2 %2498, %v3500_v53  }
 0x3d6   : > { %v3596_v29 = vpop.permute.xlu1 %1400 }
 0x3d9   : > { %2500 = vset.pattern.permute.xlu1 %v2689_v21  ;;  %2494 = vset.pattern.permute.xlu0 %v4314_v45  ;;  %v4318_v21 = vmov 14  }
 0x3da   : > { %2045 = vperm.xlu1 %2500, %v3500_v53   ;;  %1769 = vperm.xlu0 %2494, %v3500_v53   ;;  %v3590_v37 = vpop.permute.xlu2 %1676 }
 0x3dc   : > { %2501 = vset.pattern.permute.xlu2 %v4315_v20 }
 0x3dd   : > { %1636 = vperm.xlu2 %2501, %v3500_v53  }
 0x3df   : > { %v3600_v61 = vpop.permute.xlu1 %1534 }
 0x3e2   : > { %2499 = vset.pattern.permute.xlu0 %v4316_v48  ;;  %2502 = vset.pattern.permute.xlu1 %v4317_v8 }
 0x3e3   : > { %1554 = vperm.xlu0 %2499, %v3500_v53   ;;  %1646 = vperm.xlu1 %2502, %v3500_v53   ;;  %v3594_v60 = vpop.permute.xlu2 %1738 }
 0x3e5   : > { %2503 = vset.pattern.permute.xlu2 %v4318_v21 }
 0x3e6   : > { %1656 = vperm.xlu2 %2503, %v3500_v53  }
 0x3e8   : > { %v3602_v36 = vpop.permute.xlu1 %1707 }
 0x3eb   : > { %2504 = vset.pattern.permute.xlu0 %v4319_v43  ;;  %2507 = vset.pattern.permute.xlu1 %v4320_v31 }
 0x3ec   : > { %1666 = vperm.xlu0 %2504, %v3500_v53   ;;  %1820 = vperm.xlu1 %2507, %v3500_v53   ;;  %v3598_v39 = vpop.permute.xlu2 %1983 }
 0x3ee   : > { %2505 = vset.pattern.permute.xlu2 %v4321_v33 }
 0x3ef   : > { %1800 = vperm.xlu2 %2505, %v3500_v53  }
 0x3f1   : > { %v3610_v1 = vpop.permute.xlu1 %1952 }
 0x3f4   : > { %2506 = vset.pattern.permute.xlu0 %v4322_v0  ;;  %2509 = vset.pattern.permute.xlu1 %v4323_v11 }
 0x3f5   : > { %1810 = vperm.xlu0 %2506, %v3500_v53  }
 0x3f7   : > { %2510 = vset.pattern.permute.xlu2 %v4324_v14 }
 0x3fd   : > { %2508 = vset.pattern.permute.xlu0 %v4325_v15 }
 0x426   : > { %v1292_v16 = vpop.permute.xlu2 %1291 }
 0x427   : > { %v1293_v55 = vrot.slane %v1292_v16, 4 }
 0x429   : > { %v1294_v49 = vsel %vm431_vm3, %v1293_v55, %v1292_v16  ;;  %1298 = vst.msk [vmem:[#allocation2 + $0x8] sm:$0xf] %vm439_vm4, %v1293_v55  ;;  %vm4331_vm3 = vcmask 916480  }
 0x42a   : > { %1297 = vst.msk [vmem:[#allocation2] sm:$0xff] %vm2912_vm5, %v1294_v49  ;;  %vm4333_vm4 = vmmov %vm4331_vm3 }
 0x42b   : > { %vm4334_vm5 = vmmov %vm4331_vm3 }
 0x42e   : > { %v3623_v2 = vpop.permute.xlu2 %2014 }
 0x43b   : > { %v1304_v46 = vpop.permute.xlu1 %1303  ;;  %v1300_v30 = vpop.permute.xlu0 %1299 }
 0x43c   : > { %1306 = vst.msk [vmem:[#allocation2 + $0x8] sm:$0xf] %vm450_vm6, %v1304_v46  ;;  %vm4335_vm6 = vmmov %vm4331_vm3 }
 0x43d   : > { %1302 = vst.msk [vmem:[#allocation2] sm:$0xf] %vm444_vm7, %v1300_v30  ;;  %vm4336_vm7 = vcmask 777216  }
 0x443   : > { %v3616_v62 = vpop.permute.xlu1 %1544  ;;  %v1309_v47 = vld [vmem:[#allocation2 + $0x8] sm:$0xf] }
 0x444   : > { %v3618_v38 = vld [vmem:[#allocation2] sm:$0xff]  ;;  %v1436_v51 = vperm.slane %v1309_v47, 1  ;;  %1314 = vst [vmem:[#allocation1 + $0x10] ss:$2 sm:$0xff] %v1309_v47  ;;  %v1405_v26 = vperm.slane %v1309_v47, 0  ;;  %v1498_v13 = vperm.slane %v1309_v47, 3 }
 0x445   : > { %1312 = vst [vmem:[#allocation1] ss:$2 sm:$0xff] %v3618_v38  ;;  %v2018_v44 = vperm.slane %v3618_v38, 6  ;;  %v1404_v54 = vperm.slane %v3618_v38, 4  ;;  %v2049_v18 = vperm.slane %v3618_v38, 7  ;;  %v1467_v34 = vperm.slane %v1309_v47, 2 }
 0x446   : > { %v1442_v24 = vperm.slane %v1436_v51, 1  ;;  %v1411_v52 = vperm.slane %v1405_v26, 0  ;;  %v3640_v32 = vld [vmem:[#allocation2 + $0x8] sm:$0xf]  ;;  %v1434_v25 = vperm.slane %v3618_v38, 1  ;;  %v1504_v43 = vperm.slane %v1498_v13, 3 }
 0x447   : > { %v3625_v6 = vperm.slane %v2018_v44, 2  ;;  %v3627_v28 = vperm.slane %v1404_v54, 0  ;;  %v3643_v59 = vperm.slane %v2049_v18, 3  ;;  %v1473_v31 = vperm.slane %v1467_v34, 2 }
 0x448   : > { %v1445_v4 = vmul.f32 %v1442_v24, %v3581_v23  ;;  %v1414_v17 = vmul.f32 %v1411_v52, %v3596_v29  ;;  %v3659_v33 = vperm.slane %v1434_v25, 1  ;;  %v1681_v0 = vperm.slane %v3640_v32, 0 }
 0x449   : > { %v3634_v5 = vmul.f32 %v3625_v6, %v3623_v2  ;;  %v1413_v19 = vmul.f32 %v3627_v28, %v3596_v29  ;;  %v1403_v11 = vperm.slane %v3618_v38, 0  ;;  %v1507_v14 = vmul.f32 %v1504_v43, %v3588_v50 }
 0x44a   : > { %1453 = vrot.lane.b32.xlu2 %v1445_v4, %s2670_s27  ;;  %1422 = vrot.lane.b32.xlu1 %v1414_v17, %s2670_s27  ;;  %v1476_v15 = vmul.f32 %v1473_v31, %v3612_v40  ;;  %v1711_v16 = vperm.slane %v3618_v38, 5  ;;  %v2048_v55 = vperm.slane %v3618_v38, 3  ;;  %v1443_v49 = vmul.f32 %v3659_v33, %v3581_v23 }
 0x44b   : > { %1420 = vrot.lane.b32.xlu0 %v1413_v19, %s2670_s27  ;;  %v3646_v45 = vld.sshfl [vmem:[#allocation1 + $0x10] sm:$0xff pattern:$0x75316420]  ;;  %v1687_v46 = vperm.slane %v1681_v0, 0  ;;  %v3674_v30 = vperm.slane %v1403_v11, 0  ;;  %v3682_v26 = vmul.f32 %v3598_v39, %v3659_v33  ;;  %v3691_v24 = vmul.f32 %v3610_v1, %v3627_v28 }
 0x44c   : > { %v3648_v20 = vld.sshfl [vmem:[#allocation1] sm:$0xff pattern:$0x75316420]  ;;  %v3650_v48 = vld.sshfl [vmem:[#allocation1 + $0x8] sm:$0xff pattern:$0x75316420]  ;;  %v3652_v8 = vpop.permute.xlu1 %2045  ;;  %v1475_v0 = vmul.f32 %v3625_v6, %v3612_v40 }
 0x44d   : > { %1328 = vst [vmem:[#allocation1] ss:$2 sm:$0xff] %v3618_v38  ;;  %v3657_v21 = vmul.f32 %v3643_v59, %v3652_v8  ;;  %v3671_v7 = vperm.slane %v1711_v16, 1  ;;  %v3685_v44 = vperm.slane %v2048_v55, 3  ;;  %v1712_v18 = vperm.slane %v3640_v32, 1 }
 0x44e   : > { %1342 = vst [vmem:[#allocation1 + $0x10] ss:$2 sm:$0xff] %v1309_v47  ;;  %v1690_v4 = vmul.f32 %v1687_v46, %v3590_v37  ;;  %v1412_v17 = vmul.f32 %v3674_v30, %v3596_v29  ;;  %v1743_v29 = vperm.slane %v3640_v32, 2 }
 0x44f   : > { %v3695_v52 = vmul.f32 %v3598_v39, %v3671_v7  ;;  %v1505_v19 = vmul.f32 %v3685_v44, %v3588_v50  ;;  %v1718_v13 = vperm.slane %v1712_v18, 1  ;;  %v1720_v11 = vmul.f32 %v3671_v7, %v3602_v36 }
 0x450   : > { %v1689_v18 = vmul.f32 %v3590_v37, %v3627_v28 }
 0x451   : > { %v1721_v31 = vmul.f32 %v1718_v13, %v3602_v36 }
 0x452   : > { %1515 = vrot.lane.b32.xlu2 %v1507_v14, %s2670_s27  ;;  %1484 = vrot.lane.b32.xlu1 %v1476_v15, %s2670_s27  ;;  %v3723_v14 = vpop.permute.xlu0 %1524  ;;  %v1749_v15 = vperm.slane %v1743_v29, 2 }
 0x453   : > { %1449 = vrot.lane.b32.xlu0 %v1443_v49, %s2670_s27 }
 0x454   : > { %v3676_v47 = vld.sshfl [vmem:[#allocation1] sm:$0xff pattern:$0x75316420]  ;;  %v3678_v51 = vld.sshfl [vmem:[#allocation1 + $0x8] sm:$0xff pattern:$0x75316420]  ;;  %v1752_v46 = vmul.f32 %v1749_v15, %v3594_v60 }
 0x455   : > { %1335 = vst [vmem:[#allocation1] ss:$2 sm:$0xff] %v3618_v38  ;;  %v3687_v54 = vld.sshfl [vmem:[#allocation1 + $0x10] sm:$0xff pattern:$0x75316420] }
 0x456   : > { %1569 = vst [vmem:[#allocation1 + $0x10] ss:$2 sm:$0xff] %v3640_v32 }
 0x45a   : > { %1698 = vrot.lane.b32.xlu1 %v1690_v4, %s2671_s28  ;;  %1418 = vrot.lane.b32.xlu2 %v1412_v17, %s2670_s27  ;;  %v1751_v4 = vmul.f32 %v3625_v6, %v3594_v60  ;;  %v1774_v17 = vperm.slane %v3640_v32, 3  ;;  %v1770_v29 = vpop.permute.xlu0 %1769  ;;  %v2017_v6 = vperm.slane %v3618_v38, 2 }
 0x45b   : > { %1511 = vrot.lane.b32.xlu0 %v1505_v19, %s2670_s27  ;;  %v1782_v15 = vmul.f32 %v3643_v59, %v1770_v29 }
 0x45c   : > { %v3707_v34 = vld.sshfl [vmem:[#allocation1] sm:$0xff pattern:$0x75316420]  ;;  %v3709_v25 = vld.sshfl [vmem:[#allocation1 + $0x8] sm:$0xff pattern:$0x75316420] }
 0x45d   : > { %1340 = vst [vmem:[#allocation1] ss:$2 sm:$0xff] %v3618_v38  ;;  %v3712_v43 = vld.sshfl [vmem:[#allocation1 + $0x10] sm:$0xff pattern:$0x75316420]  ;;  %v1780_v28 = vperm.slane %v1774_v17, 3 }
 0x45e   : > { %1585 = vst [vmem:[#allocation1 + $0x10] ss:$2 sm:$0xff] %v3640_v32 }
 0x462   : > { %1729 = vrot.lane.b32.xlu1 %v1721_v31, %s2671_s28  ;;  %1482 = vrot.lane.b32.xlu2 %v1475_v0, %s2670_s27  ;;  %v1783_v0 = vmul.f32 %v1780_v28, %v1770_v29 }
 0x463   : > { %1727 = vrot.lane.b32.xlu0 %v1720_v11, %s2671_s28  ;;  %v1719_v11 = vmul.f32 %v3602_v36, %v3659_v33  ;;  %v1444_v36 = vmul.f32 %v3671_v7, %v3581_v23  ;;  %v1781_v23 = vmul.f32 %v3685_v44, %v1770_v29  ;;  %v1964_v29 = vmul.f32 %v3610_v1, %v3674_v30 }
 0x464   : > { %v3726_v16 = vld.sshfl [vmem:[#allocation1] sm:$0xff pattern:$0x75316420]  ;;  %v3728_v55 = vld.sshfl [vmem:[#allocation1 + $0x8] sm:$0xff pattern:$0x75316420] }
 0x465   : > { %1567 = vst [vmem:[#allocation1] ss:$2 sm:$0xff] %v3618_v38  ;;  %v3731_v49 = vld.sshfl [vmem:[#allocation1 + $0x10] sm:$0xff pattern:$0x75316420] }
 0x466   : > { %1603 = vst [vmem:[#allocation1 + $0x10] ss:$2 sm:$0xff] %v3640_v32 }
 0x46a   : > { %1760 = vrot.lane.b32.xlu1 %v1752_v46, %s2671_s28  ;;  %1696 = vrot.lane.b32.xlu2 %v1689_v18, %s2671_s28  ;;  %v3755_v46 = vld [vmem:[#allocation2 + $0x8] sm:$0xf]  ;;  %v3757_v18 = vperm.slane %v2017_v6, 2 }
 0x46b   : > { %1758 = vrot.lane.b32.xlu0 %v1751_v4, %s2671_s28  ;;  %v2019_v41 = vperm.slane %v3755_v46, 2 }
 0x46c   : > { %v3743_v19 = vld.sshfl [vmem:[#allocation1] sm:$0xff pattern:$0x75316420]  ;;  %v1571_v13 = vld.sshfl [vmem:[#allocation1 + $0x8] sm:$0xff pattern:$0x75316420]  ;;  %v1750_v33 = vmul.f32 %v3757_v18, %v3594_v60  ;;  %v1474_v60 = vmul.f32 %v3757_v18, %v3612_v40  ;;  %v1506_v40 = vmul.f32 %v3643_v59, %v3588_v50  ;;  %v1688_v50 = vmul.f32 %v3590_v37, %v3674_v30 }
 0x46d   : > { %1583 = vst [vmem:[#allocation1] ss:$2 sm:$0xff] %v3618_v38  ;;  %v3746_v31 = vld.sshfl [vmem:[#allocation1 + $0x10] sm:$0xff pattern:$0x75316420] }
 0x46e   : > { %1619 = vst [vmem:[#allocation1 + $0x10] ss:$2 sm:$0xff] %v3640_v32 }
 0x472   : > { %1791 = vrot.lane.b32.xlu1 %v1783_v0, %s2671_s28  ;;  %1725 = vrot.lane.b32.xlu2 %v1719_v11, %s2671_s28 }
 0x473   : > { %1789 = vrot.lane.b32.xlu0 %v1782_v15, %s2671_s28  ;;  %v3791_v15 = vpop.permute.xlu2 %1636 }
 0x474   : > { %v3760_v4 = vld.sshfl [vmem:[#allocation1] sm:$0xff pattern:$0x75316420]  ;;  %v1587_v32 = vld.sshfl [vmem:[#allocation1 + $0x8] sm:$0xff pattern:$0x75316420] }
 0x475   : > { %1601 = vst [vmem:[#allocation1] ss:$2 sm:$0xff] %v3618_v38  ;;  %v3763_v17 = vld.sshfl [vmem:[#allocation1 + $0x10] sm:$0xff pattern:$0x75316420] }
 0x476   : > { %1845 = vst [vmem:[#allocation1 + $0x10] ss:$2 sm:$0xff] %v3755_v46 }
 0x47a   : > { %1451 = vrot.lane.b32.xlu1 %v1444_v36, %s2670_s27  ;;  %1756 = vrot.lane.b32.xlu2 %v1750_v33, %s2671_s28 }
 0x47b   : > { %1320 = vrot.lane.b32.xlu0 %v3650_v48, %s2675_s12  ;;  %v3813_v59 = vpop.permute.xlu2 %1656 }
 0x47c   : > { %v3774_v28 = vld.sshfl [vmem:[#allocation1] sm:$0xff pattern:$0x75316420]  ;;  %v1605_v6 = vld.sshfl [vmem:[#allocation1 + $0x8] sm:$0xff pattern:$0x75316420] }
 0x47d   : > { %1617 = vst [vmem:[#allocation1] ss:$2 sm:$0xff] %v3618_v38  ;;  %v3777_v0 = vld.sshfl [vmem:[#allocation1 + $0x10] sm:$0xff pattern:$0x75316420] }
 0x47e   : > { %1861 = vst [vmem:[#allocation1 + $0x10] ss:$2 sm:$0xff] %v3755_v46 }
 0x482   : > { %1480 = vrot.lane.b32.xlu1 %v1474_v60, %s2670_s27  ;;  %1787 = vrot.lane.b32.xlu2 %v1781_v23, %s2671_s28  ;;  %v4327_v60 = vmov 27  }
 0x483   : > { %1830 = vperm.xlu0 %2508, %v3500_v53   ;;  %v3825_v37 = vpop.permute.xlu2 %1800 }
 0x484   : > { %v3786_v48 = vld.sshfl [vmem:[#allocation1] sm:$0xff pattern:$0x75316420]  ;;  %v1621_v7 = vld.sshfl [vmem:[#allocation1 + $0x8] sm:$0xff pattern:$0x75316420] }
 0x485   : > { %1843 = vst [vmem:[#allocation1] ss:$2 sm:$0xff] %v3618_v38  ;;  %v3789_v11 = vld.sshfl [vmem:[#allocation1 + $0x10] sm:$0xff pattern:$0x75316420] }
 0x486   : > { %1879 = vst [vmem:[#allocation1 + $0x10] ss:$2 sm:$0xff] %v3755_v46 }
 0x48a   : > { %1513 = vrot.lane.b32.xlu1 %v1506_v40, %s2670_s27  ;;  %1318 = vrot.lane.b32.xlu2 %v3648_v20, %s2675_s12 }
 0x48b   : > { %1970 = vrot.lane.b32.xlu0 %v1964_v29, %s2688_s9 }
 0x48c   : > { %v3802_v36 = vld.sshfl [vmem:[#allocation1] sm:$0xff pattern:$0x75316420]  ;;  %v3804_v33 = vld.sshfl [vmem:[#allocation1 + $0x8] sm:$0xff pattern:$0x75316420]  ;;  %2513 = vset.pattern.permute.xlu0 %v2693_v10 }
 0x48d   : > { %1859 = vst [vmem:[#allocation1] ss:$2 sm:$0xff] %v3618_v38  ;;  %v3808_v23 = vld.sshfl [vmem:[#allocation1 + $0x10] sm:$0xff pattern:$0x75316420] }
 0x48e   : > { %1895 = vst [vmem:[#allocation1 + $0x10] ss:$2 sm:$0xff] %v3755_v46 }
 0x492   : > { %1694 = vrot.lane.b32.xlu1 %v1688_v50, %s2671_s28  ;;  %1922 = vperm.xlu2 %2510, %v3500_v53   ;;  %v4328_v50 = vmov 26  }
 0x493   : > { %1348 = vrot.lane.b32.xlu0 %v3728_v55, %s2675_s12  ;;  %v3832_v55 = vpop.permute.xlu0 %1554 }
 0x494   : > { %v1862_v20 = vld.sshfl [vmem:[#allocation1] sm:$0xff pattern:$0x75316420]  ;;  %v3819_v10 = vld.sshfl [vmem:[#allocation1 + $0x8] sm:$0xff pattern:$0x75316420] }
 0x495   : > { %1877 = vst [vmem:[#allocation1] ss:$2 sm:$0xff] %v3618_v38 }
 0x49a   : > { %1322 = vrot.lane.b32.xlu1 %v3646_v45, %s2675_s12  ;;  %2512 = vset.pattern.permute.xlu2 %v4327_v60 }
 0x49b   : > { %1575 = vrot.lane.b32.xlu0 %v1571_v13, %s2672_s21  ;;  %1942 = vperm.xlu2 %2512, %v3500_v53   ;;  %v3841_v13 = vpop.permute.xlu1 %1646  ;;  %v3843_v29 = vpop.permute.xlu0 %1666 }
 0x49c   : > { %v3829_v30 = vld.sshfl [vmem:[#allocation1 + $0x8] sm:$0xff pattern:$0x75316420]  ;;  %v1880_v40 = vld.sshfl [vmem:[#allocation1] sm:$0xff pattern:$0x75316420] }
 0x49d   : > { %1893 = vst [vmem:[#allocation1] ss:$2 sm:$0xff] %v3618_v38  ;;  %v1957_v38 = vperm.slane %v3755_v46, 0 }
 0x4a2   : > { %1912 = vperm.xlu1 %2509, %v3500_v53  }
 0x4a3   : > { %1591 = vrot.lane.b32.xlu0 %v1587_v32, %s2674_s25  ;;  %1346 = vrot.lane.b32.xlu2 %v3726_v16, %s2675_s12  ;;  %v1963_v32 = vperm.slane %v1957_v38, 0  ;;  %v3854_v60 = vpop.permute.xlu1 %1820 }
 0x4a4   : > { %v3838_v45 = vpop.permute.xlu2 %1453  ;;  %2515 = vset.pattern.permute.xlu2 %v2691_v57 }
 0x4a5   : > { %v1966_v57 = vmul.f32 %v1963_v32, %v3610_v1 }
 0x4aa   : > { %2511 = vset.pattern.permute.xlu1 %v4328_v50  ;;  %v3859_v50 = vpop.permute.xlu0 %1810 }
 0x4ab   : > { %1609 = vrot.lane.b32.xlu0 %v1605_v6, %s2674_s25  ;;  %1932 = vperm.xlu1 %2511, %v3500_v53  }
 0x4ac   : > { %1573 = vrot.lane.b32.xlu2 %v3743_v19, %s2672_s21  ;;  %v3851_v16 = vpop.permute.xlu2 %1515 }
 0x4b3   : > { %1625 = vrot.lane.b32.xlu0 %v1621_v7, %s2672_s21  ;;  %1350 = vrot.lane.b32.xlu1 %v3687_v54, %s2675_s12 }
 0x4b4   : > { %1974 = vrot.lane.b32.xlu2 %v1966_v57, %s2688_s9  ;;  %v1419_v6 = vpop.permute.xlu2 %1418  ;;  %2514 = vset.pattern.permute.xlu1 %v2692_v42  ;;  %v1896_v57 = vld.sshfl [vmem:[#allocation1] sm:$0xff pattern:$0x75316420] }
 0x4bb   : > { %2001 = vrot.lane.b32.xlu0 %v3682_v26, %s2688_s9  ;;  %1577 = vrot.lane.b32.xlu1 %v3712_v43, %s2672_s21 }
 0x4bc   : > { %1589 = vrot.lane.b32.xlu2 %v3760_v4, %s2674_s25  ;;  %v1423_v1 = vpop.permute.xlu1 %1422  ;;  %v3869_v19 = vpop.permute.xlu2 %1482 }
 0x4bd   : > { %v1421_v54 = vpop.permute.xlu0 %1420 }
 0x4be   : > { %v3872_v7 = vsel %vm578_vm11, %v1419_v6, %v1421_v54  ;;  %v3875_v38 = vsel %vm578_vm11, %v1421_v54, %v1423_v1  ;;  %v2026_v54 = vmul.f32 %v3757_v18, %v3623_v2  ;;  %v2057_v18 = vmul.f32 %v3685_v44, %v3652_v8 }
 0x4c3   : > { %1865 = vrot.lane.b32.xlu0 %v1862_v20, %s4329_s29  ;;  %1593 = vrot.lane.b32.xlu1 %v3731_v49, %s2674_s25 }
 0x4c4   : > { %1853 = vrot.lane.b32.xlu2 %v3777_v0, %s4330_s19  ;;  %v1485_v42 = vpop.permute.xlu1 %1484  ;;  %v3882_v26 = vpop.permute.xlu2 %1696 }
 0x4c5   : > { %v3886_v43 = vsel %vm578_vm11, %v3869_v19, %v1485_v42  ;;  %v1450_v4 = vpop.permute.xlu0 %1449 }
 0x4cb   : > { %1883 = vrot.lane.b32.xlu0 %v1880_v40, %s4329_s29  ;;  %1611 = vrot.lane.b32.xlu1 %v3746_v31, %s2674_s25 }
 0x4cc   : > { %1607 = vrot.lane.b32.xlu2 %v3774_v28, %s2674_s25  ;;  %v1699_v49 = vpop.permute.xlu1 %1698  ;;  %v1726_v20 = vpop.permute.xlu2 %1725  ;;  %s4344_s25 = sshll.u32 %s2843_s11, 3 }
 0x4cd   : > { %v3895_v0 = vsel %vm857_vm0, %v3882_v26, %v1699_v49  ;;  %v3897_v32 = vpop.permute.xlu0 %1511  ;;  %s391_s12 = scalar_lea.vmem [#allocation8], %s4344_s25 }
 0x4d3   : > { %1899 = vrot.lane.b32.xlu0 %v1896_v57, %s4330_s19  ;;  %1627 = vrot.lane.b32.xlu1 %v3763_v17, %s2672_s21  ;;  %v1988_v57 = vperm.slane %v3755_v46, 1 }
 0x4d4   : > { %1869 = vrot.lane.b32.xlu2 %v3789_v11, %s4329_s29  ;;  %v1730_v31 = vpop.permute.xlu1 %1729  ;;  %v1757_v40 = vpop.permute.xlu2 %1756 }
 0x4d5   : > { %v1728_v28 = vpop.permute.xlu0 %1727  ;;  %v1994_v44 = vperm.slane %v1988_v57, 1 }
 0x4d6   : > { %v3905_v6 = vsel %vm857_vm0, %v1726_v20, %v1728_v28  ;;  %v3908_v1 = vsel %vm857_vm0, %v1728_v28, %v1730_v31 }
 0x4db   : > { %2032 = vrot.lane.b32.xlu0 %v2026_v54, %s2688_s9  ;;  %1972 = vrot.lane.b32.xlu1 %v3691_v24, %s2688_s9  ;;  %v1997_v54 = vmul.f32 %v1994_v44, %v3598_v39 }
 0x4dc   : > { %1623 = vrot.lane.b32.xlu2 %v3786_v48, %s2672_s21  ;;  %v1761_v17 = vpop.permute.xlu1 %1760  ;;  %v1788_v11 = vpop.permute.xlu2 %1787  ;;  %s2231_s21 = scalar_lea.hbm %s4212_s10, %s2338_s23 }
 0x4dd   : > { %v1759_v42 = vpop.permute.xlu0 %1758 }
 0x4de   : > { %v3918_v49 = vsel %vm857_vm0, %v1757_v40, %v1759_v42  ;;  %v3921_v20 = vsel %vm857_vm0, %v1759_v42, %v1761_v17 }
 0x4e3   : > { %2063 = vrot.lane.b32.xlu0 %v2057_v18, %s2688_s9  ;;  %2003 = vrot.lane.b32.xlu1 %v3695_v52, %s2688_s9 }
 0x4e4   : > { %1849 = vrot.lane.b32.xlu2 %v3802_v36, %s4330_s19  ;;  %v1792_v24 = vpop.permute.xlu1 %1791  ;;  %v1319_v48 = vpop.permute.xlu2 %1318 }
 0x4e5   : > { %v1790_v31 = vpop.permute.xlu0 %1789 }
 0x4e6   : > { %v3932_v40 = vsel %vm857_vm0, %v1788_v11, %v1790_v31  ;;  %v3935_v28 = vsel %vm857_vm0, %v1790_v31, %v1792_v24 }
 0x4eb   : > { %1851 = vrot.lane.b32.xlu1 %v3804_v33, %s4330_s19  ;;  %2076 = vperm.xlu0 %2513, %v3500_v53  }
 0x4ec   : > { %2005 = vrot.lane.b32.xlu2 %v1997_v54, %s2688_s9  ;;  %v3942_v52 = vpop.permute.xlu1 %1451  ;;  %v3944_v36 = vpop.permute.xlu2 %1922 }
 0x4ed   : > { %v1455_v17 = vsel %vm578_vm11, %v1450_v4, %v3942_v52  ;;  %v1321_v11 = vpop.permute.xlu0 %1320 }
 0x4ee   : > { %v1324_v42 = vsel %vm473_vm8, %v1319_v48, %v1321_v11 }
 0x4ef   : > { %v1333_v39 = vsel %vm3260_vm10, %v1324_v42, %v3676_v47 }
 0x4f0   : > { %v1363_v18 = vperm.slane %v1333_v39, 0  ;;  %v1373_v33 = vperm.slane %v1333_v39, 1  ;;  %v1383_v57 = vperm.slane %v1333_v39, 2  ;;  %v1393_v44 = vperm.slane %v1333_v39, 3 }
 0x4f2   : > { %v1365_v24 = vmul.f32 %v1363_v18, %v3565_v35  ;;  %v1375_v31 = vmul.f32 %v1373_v33, %v3604_v63  ;;  %v1385_v48 = vmul.f32 %v1383_v57, %v3592_v3  ;;  %v1395_v39 = vmul.f32 %v1393_v44, %v3573_v56  ;;  %v1898_v57 = vld.sshfl [vmem:[#allocation1 + $0x10] sm:$0xff pattern:$0x75316420] }
 0x4f3   : > { %1867 = vrot.lane.b32.xlu1 %v3819_v10, %s4329_s29  ;;  %2518 = vset.pattern.permute.xlu0 %v4299_v22 }
 0x4f4   : > { %v1377_v4 = vadd.f32 %v1375_v31, %v1365_v24  ;;  %1887 = vrot.lane.b32.xlu2 %v3808_v23, %s4329_s29  ;;  %v1481_v47 = vpop.permute.xlu1 %1480 }
 0x4f5   : > { %v1486_v54 = vsel %vm578_vm11, %v1481_v47, %v3869_v19  ;;  %v3962_v42 = vpop.permute.xlu0 %1830  ;;  %v3964_v18 = vpop.permute.xlu2 %1942 }
 0x4f6   : > { %v1387_v33 = vadd.f32 %v1385_v48, %v1377_v4  ;;  %v2025_v48 = vperm.slane %v2019_v41, 2 }
 0x4f8   : > { %v1397_v10 = vadd.f32 %v1395_v39, %v1387_v33  ;;  %v1897_v33 = vld.sshfl [vmem:[#allocation1 + $0x8] sm:$0xff pattern:$0x75316420] }
 0x4fa   : > { %v1428_v24 = vadd.f32 %v3872_v7, %v1397_v10  ;;  %v2028_v7 = vmul.f32 %v2025_v48, %v3623_v2 }
 0x4fb   : > { %1885 = vrot.lane.b32.xlu1 %v3829_v30, %s4329_s29  ;;  %v2050_v30 = vperm.slane %v3755_v46, 3 }
 0x4fc   : > { %v1459_v23 = vadd.f32 %v1455_v17, %v1428_v24  ;;  %1903 = vrot.lane.b32.xlu2 %v1898_v57, %s4330_s19  ;;  %v3972_v19 = vpop.permute.xlu1 %1513 }
 0x4fd   : > { %v1517_v31 = vsel %vm578_vm11, %v3897_v32, %v3972_v19  ;;  %v3977_v44 = vpop.permute.xlu0 %1970  ;;  %v1347_v4 = vpop.permute.xlu2 %1346  ;;  %v2056_v24 = vperm.slane %v2050_v30, 3 }
 0x4fe   : > { %v1490_v47 = vadd.f32 %v1486_v54, %v1459_v23 }
 0x4ff   : > { %v2059_v46 = vmul.f32 %v2056_v24, %v3652_v8 }
 0x500   : > { %v1521_v39 = vadd.f32 %v1517_v31, %v1490_v47 }
 0x503   : > { %1901 = vrot.lane.b32.xlu1 %v1897_v33, %s4330_s19  ;;  %s2594_s19 = scalar_lea.hbm %s4212_s10, 16 }
 0x504   : > { %2036 = vrot.lane.b32.xlu2 %v2028_v7, %s2688_s9  ;;  %v1695_v17 = vpop.permute.xlu1 %1694 }
 0x505   : > { %v3985_v10 = vsel %vm857_vm0, %v1695_v17, %v3882_v26  ;;  %v3987_v32 = vpop.permute.xlu0 %1348  ;;  %vm4342_vm0 = vmmov %vm4336_vm7 }
 0x506   : > { %v1352_v41 = vsel %vm473_vm8, %v1347_v4, %v3987_v32  ;;  %v1574_v54 = vpop.permute.xlu2 %1573 }
 0x507   : > { %v1356_v2 = vsel %vm3324_vm15, %v3707_v34, %v1352_v41 }
 0x508   : > { %v1527_v57 = vperm.slane %v1356_v2, 0  ;;  %v1537_v31 = vperm.slane %v1356_v2, 1  ;;  %v1547_v17 = vperm.slane %v1356_v2, 2 }
 0x50a   : > { %v1529_v23 = vmul.f32 %v1527_v57, %v3723_v14 }
 0x50b   : > { %2034 = vrot.lane.b32.xlu1 %v3634_v5, %s2688_s9  ;;  %v1539_v5 = vmul.f32 %v1537_v31, %v3600_v61 }
 0x50c   : > { %2067 = vrot.lane.b32.xlu2 %v2059_v46, %s2688_s9  ;;  %v1323_v26 = vpop.permute.xlu1 %1322  ;;  %v1531_v8 = vadd.f32 %v1529_v23, %v1521_v39  ;;  %v1549_v39 = vmul.f32 %v1547_v17, %v3616_v62  ;;  %v1557_v23 = vperm.slane %v1356_v2, 3 }
 0x50d   : > { %v1325_v4 = vsel %vm473_vm8, %v1321_v11, %v1323_v26  ;;  %v4000_v48 = vpop.permute.xlu0 %1575 }
 0x50e   : > { %v1334_v34 = vsel %vm3236_vm9, %v1325_v4, %v3678_v51  ;;  %v4005_v47 = vpop.permute.xlu2 %1974  ;;  %v1541_v57 = vadd.f32 %v1539_v5, %v1531_v8 }
 0x50f   : > { %v1364_v7 = vperm.slane %v1334_v34, 0  ;;  %v1374_v33 = vperm.slane %v1334_v34, 1  ;;  %v1384_v30 = vperm.slane %v1334_v34, 2  ;;  %v1394_v11 = vperm.slane %v1334_v34, 3 }
 0x510   : > { %v1551_v34 = vadd.f32 %v1549_v39, %v1541_v57 }
 0x511   : > { %v1366_v41 = vmul.f32 %v1364_v7, %v3565_v35  ;;  %v1376_v24 = vmul.f32 %v1374_v33, %v3604_v63  ;;  %v1386_v26 = vmul.f32 %v1384_v30, %v3592_v3  ;;  %v1396_v35 = vmul.f32 %v1394_v11, %v3573_v56 }
 0x512   : > { %v1579_v3 = vsel %vm734_vm13, %v1574_v54, %v4000_v48  ;;  %v1559_v33 = vmul.f32 %v1557_v23, %v3832_v55  ;;  %v1456_v56 = vsel %vm578_vm11, %v3942_v52, %v3838_v45  ;;  %v1518_v45 = vsel %vm578_vm11, %v3972_v19, %v3851_v16  ;;  %v2115_v16 = vld [vmem:[%s4206_s4] sm:$0xf]  ;;  %vm4340_vm11 = vmmov %vm4336_vm7 }
 0x513   : > { %v1378_v46 = vadd.f32 %v1376_v24, %v1366_v41  ;;  %2065 = vrot.lane.b32.xlu1 %v3657_v21, %s2688_s9  ;;  %s2123_s9 = sld [smem:[#allocation7]] }
 0x514   : > { %v4013_v51 = vpop.permute.xlu1 %1912  ;;  %2096 = vperm.xlu2 %2515, %v3500_v53   ;;  %v1561_v5 = vadd.f32 %v1559_v33, %v1551_v34 }
 0x515   : > { %v1388_v31 = vadd.f32 %v1386_v26, %v1378_v46  ;;  %v1592_v4 = vpop.permute.xlu0 %1591 }
 0x516   : > { %v1590_v63 = vpop.permute.xlu2 %1589 }
 0x517   : > { %v1398_v8 = vadd.f32 %v1396_v35, %v1388_v31  ;;  %v1595_v7 = vsel %vm4331_vm3, %v1590_v63, %v1592_v4  ;;  %v4332_v63 = vmov 35  }
 0x518   : > { %v1599_v21 = vsel %vm3260_vm10, %v1579_v3, %v1595_v7 }
 0x519   : > { %v1429_v30 = vadd.f32 %v3875_v38, %v1398_v8  ;;  %v1639_v2 = vperm.slane %v1599_v21, 0  ;;  %v1649_v17 = vperm.slane %v1599_v21, 1  ;;  %v1659_v54 = vperm.slane %v1599_v21, 2 }
 0x51a   : > { %v1669_v46 = vperm.slane %v1599_v21, 3 }
 0x51b   : > { %v1460_v41 = vadd.f32 %v1456_v56, %v1429_v30  ;;  %v1641_v24 = vmul.f32 %v1639_v2, %v3791_v15  ;;  %2086 = vperm.xlu1 %2514, %v3500_v53   ;;  %v1651_v57 = vmul.f32 %v1649_v17, %v3841_v13  ;;  %v1661_v39 = vmul.f32 %v1659_v54, %v3813_v59 }
 0x51c   : > { %2517 = vset.pattern.permute.xlu2 %v4299_v22  ;;  %v1671_v35 = vmul.f32 %v1669_v46, %v3843_v29 }
 0x51d   : > { %v1643_v11 = vadd.f32 %v1641_v24, %v1561_v5  ;;  %v4032_v38 = vpop.permute.xlu1 %1932  ;;  %v1491_v26 = vadd.f32 %v3886_v43, %v1460_v41  ;;  %2118 = vperm.xlu2 %2517, %v2115_v16  }
 0x51e   : > { %v4057_v30 = vpop.permute.xlu2 %1853 }
 0x51f   : > { %v1653_v52 = vadd.f32 %v1651_v57, %v1643_v11  ;;  %v1522_v23 = vadd.f32 %v1518_v45, %v1491_v26 }
 0x521   : > { %v1663_v31 = vadd.f32 %v1661_v39, %v1653_v52 }
 0x523   : > { %v1673_v22 = vadd.f32 %v1671_v35, %v1663_v31  ;;  %2516 = vset.pattern.permute.xlu1 %v4332_v63 }
 0x524   : > { %2106 = vperm.xlu1 %2516, %v3500_v53  }
 0x525   : > { %v1704_v34 = vadd.f32 %v3985_v10, %v1673_v22  ;;  %v1351_v8 = vpop.permute.xlu1 %1350 }
 0x526   : > { %v1353_v43 = vsel %vm473_vm8, %v3987_v32, %v1351_v8  ;;  %v1608_v11 = vpop.permute.xlu2 %1607  ;;  %vm4337_vm8 = vmmov %vm4336_vm7 }
 0x527   : > { %v1735_v19 = vadd.f32 %v3905_v6, %v1704_v34  ;;  %v1357_v3 = vsel %vm3276_vm12, %v3709_v25, %v1353_v43 }
 0x528   : > { %v1528_v7 = vperm.slane %v1357_v3, 0  ;;  %v1538_v32 = vperm.slane %v1357_v3, 1  ;;  %v1548_v17 = vperm.slane %v1357_v3, 2  ;;  %v1558_v5 = vperm.slane %v1357_v3, 3 }
 0x529   : > { %v1766_v53 = vadd.f32 %v3918_v49, %v1735_v19 }
 0x52a   : > { %v1530_v10 = vmul.f32 %v1528_v7, %v3723_v14  ;;  %v1540_v6 = vmul.f32 %v1538_v32, %v3600_v61  ;;  %v1550_v25 = vmul.f32 %v1548_v17, %v3616_v62  ;;  %v1560_v54 = vmul.f32 %v1558_v5, %v3832_v55 }
 0x52b   : > { %v4055_v21 = vadd.f32 %v3932_v40, %v1766_v53 }
 0x52c   : > { %v1532_v2 = vadd.f32 %v1530_v10, %v1522_v23 }
 0x52d   : > { %v1578_v33 = vpop.permute.xlu1 %1577 }
 0x52e   : > { %v1542_v56 = vadd.f32 %v1540_v6, %v1532_v2  ;;  %v1580_v14 = vsel %vm734_vm13, %v4000_v48, %v1578_v33  ;;  %v1610_v48 = vpop.permute.xlu0 %1609  ;;  %v1870_v55 = vpop.permute.xlu2 %1869 }
 0x52f   : > { %v1613_v32 = vsel %vm4335_vm6, %v1608_v11, %v1610_v48 }
 0x530   : > { %v1552_v24 = vadd.f32 %v1550_v25, %v1542_v56 }
 0x532   : > { %v1562_v46 = vadd.f32 %v1560_v54, %v1552_v24 }
 0x535   : > { %v1594_v41 = vpop.permute.xlu1 %1593 }
 0x536   : > { %v1596_v49 = vsel %vm4333_vm4, %v1592_v4, %v1594_v41  ;;  %v1626_v43 = vpop.permute.xlu0 %1625  ;;  %v1624_v19 = vpop.permute.xlu2 %1623 }
 0x537   : > { %v1600_v40 = vsel %vm3236_vm9, %v1580_v14, %v1596_v49 }
 0x538   : > { %v1640_v57 = vperm.slane %v1600_v40, 0  ;;  %v1650_v61 = vperm.slane %v1600_v40, 1  ;;  %v1660_v62 = vperm.slane %v1600_v40, 2  ;;  %v1670_v39 = vperm.slane %v1600_v40, 3 }
 0x53a   : > { %v1642_v26 = vmul.f32 %v1640_v57, %v3791_v15  ;;  %v1652_v52 = vmul.f32 %v1650_v61, %v3841_v13  ;;  %v1662_v4 = vmul.f32 %v1660_v62, %v3813_v59  ;;  %v1672_v22 = vmul.f32 %v1670_v39, %v3843_v29 }
 0x53c   : > { %v1644_v45 = vadd.f32 %v1642_v26, %v1562_v46 }
 0x53d   : > { %v1612_v23 = vpop.permute.xlu1 %1611 }
 0x53e   : > { %v1654_v31 = vadd.f32 %v1652_v52, %v1644_v45  ;;  %v4078_v7 = vpop.permute.xlu0 %2001  ;;  %v1614_v29 = vsel %vm4334_vm5, %v1610_v48, %v1612_v23 }
 0x540   : > { %v1664_v35 = vadd.f32 %v1662_v4, %v1654_v31 }
 0x542   : > { %v1674_v63 = vadd.f32 %v1672_v22, %v1664_v35 }
 0x544   : > { %v1705_v34 = vadd.f32 %v3895_v0, %v1674_v63 }
 0x545   : > { %v1628_v8 = vpop.permute.xlu1 %1627 }
 0x546   : > { %v1736_v15 = vadd.f32 %v3908_v1, %v1705_v34  ;;  %v1630_v59 = vsel %vm734_vm13, %v1626_v43, %v1628_v8  ;;  %v1850_v1 = vpop.permute.xlu2 %1849  ;;  %v1866_v33 = vpop.permute.xlu0 %1865 }
 0x547   : > { %v1634_v0 = vsel %vm3276_vm12, %v1614_v29, %v1630_v59 }
 0x548   : > { %v1767_v16 = vadd.f32 %v3921_v20, %v1736_v15  ;;  %v1804_v10 = vperm.slane %v1634_v0, 0  ;;  %v1629_v20 = vsel %vm734_vm13, %v1624_v19, %v1626_v43  ;;  %v1814_v6 = vperm.slane %v1634_v0, 1  ;;  %vm4341_vm13 = vmmov %vm4336_vm7 }
 0x549   : > { %v1633_v2 = vsel %vm3324_vm15, %v1613_v32, %v1629_v20  ;;  %v1824_v41 = vperm.slane %v1634_v0, 2  ;;  %v1834_v54 = vperm.slane %v1634_v0, 3 }
 0x54a   : > { %v1798_v13 = vadd.f32 %v3935_v28, %v1767_v16  ;;  %v1806_v28 = vmul.f32 %v1804_v10, %v3825_v37  ;;  %v1803_v25 = vperm.slane %v1633_v2, 0  ;;  %v1816_v5 = vmul.f32 %v1814_v6, %v3859_v50 }
 0x54b   : > { %v1826_v40 = vmul.f32 %v1824_v41, %v3854_v60  ;;  %v1813_v11 = vperm.slane %v1633_v2, 1  ;;  %v1823_v4 = vperm.slane %v1633_v2, 2  ;;  %v1833_v16 = vperm.slane %v1633_v2, 3 }
 0x54c   : > { %v1808_v56 = vadd.f32 %v1806_v28, %v1798_v13  ;;  %v1805_v49 = vmul.f32 %v1803_v25, %v3825_v37  ;;  %v1836_v37 = vmul.f32 %v1834_v54, %v3962_v42 }
 0x54d   : > { %v4075_v3 = vpop.permute.xlu1 %1972  ;;  %v1815_v31 = vmul.f32 %v1813_v11, %v3859_v50  ;;  %v1825_v43 = vmul.f32 %v1823_v4, %v3854_v60  ;;  %v1835_v10 = vmul.f32 %v1833_v16, %v3962_v42 }
 0x54e   : > { %v4091_v24 = vpop.permute.xlu2 %2005  ;;  %v1818_v14 = vadd.f32 %v1816_v5, %v1808_v56  ;;  %v1884_v61 = vpop.permute.xlu0 %1883  ;;  %v1807_v45 = vadd.f32 %v1805_v49, %v4055_v21  ;;  %v1977_v60 = vsel %vm4336_vm7, %v4075_v3, %v4005_v47  ;;  %v1976_v47 = vsel %vm4337_vm8, %v3977_v44, %v4075_v3 }
 0x550   : > { %v1828_v46 = vadd.f32 %v1826_v40, %v1818_v14  ;;  %v1817_v34 = vadd.f32 %v1815_v31, %v1807_v45 }
 0x552   : > { %v1838_v22 = vadd.f32 %v1836_v37, %v1828_v46  ;;  %v1827_v29 = vadd.f32 %v1825_v43, %v1817_v34 }
 0x554   : > { %v1837_v32 = vadd.f32 %v1835_v10, %v1827_v29 }
 0x555   : > { %v4083_v53 = vpop.permute.xlu1 %2003 }
 0x556   : > { %v1900_v0 = vpop.permute.xlu0 %1899 }
 0x55d   : > { %v1852_v17 = vpop.permute.xlu1 %1851 }
 0x55e   : > { %v1856_v26 = vsel %vm1013_vm2, %v1852_v17, %v4057_v30  ;;  %v1855_v35 = vsel %vm1013_vm2, %v1850_v1, %v1852_v17  ;;  %v1888_v30 = vpop.permute.xlu2 %1887  ;;  %v2033_v14 = vpop.permute.xlu0 %2032 }
 0x565   : > { %v1868_v57 = vpop.permute.xlu1 %1867 }
 0x566   : > { %v1872_v62 = vsel %vm1030_vm1, %v1868_v57, %v1870_v55  ;;  %v1871_v52 = vsel %vm1030_vm1, %v1866_v33, %v1868_v57  ;;  %v1904_v2 = vpop.permute.xlu2 %1903  ;;  %v2064_v46 = vpop.permute.xlu0 %2063 }
 0x567   : > { %v1876_v39 = vsel %vm3236_vm9, %v1856_v26, %v1872_v62  ;;  %v1875_v55 = vsel %vm3260_vm10, %v1855_v35, %v1871_v52  ;;  %vm4338_vm9 = vmmov %vm4336_vm7 }
 0x568   : > { %v1916_v23 = vperm.slane %v1876_v39, 0  ;;  %v1926_v48 = vperm.slane %v1876_v39, 1  ;;  %v1936_v63 = vperm.slane %v1876_v39, 2  ;;  %v1946_v15 = vperm.slane %v1876_v39, 3  ;;  %vm4339_vm10 = vmmov %vm4336_vm7 }
 0x569   : > { %v1915_v50 = vperm.slane %v1875_v55, 0  ;;  %v1925_v33 = vperm.slane %v1875_v55, 1  ;;  %v1935_v5 = vperm.slane %v1875_v55, 2  ;;  %v1945_v49 = vperm.slane %v1875_v55, 3 }
 0x56a   : > { %v1918_v21 = vmul.f32 %v1916_v23, %v4013_v51  ;;  %v1928_v8 = vmul.f32 %v1926_v48, %v3944_v36  ;;  %v1938_v59 = vmul.f32 %v1936_v63, %v4032_v38  ;;  %v1948_v27 = vmul.f32 %v1946_v15, %v3964_v18 }
 0x56b   : > { %v1917_v20 = vmul.f32 %v1915_v50, %v4013_v51  ;;  %v1927_v25 = vmul.f32 %v1925_v33, %v3944_v36  ;;  %v1937_v42 = vmul.f32 %v1935_v5, %v4032_v38  ;;  %v1947_v11 = vmul.f32 %v1945_v49, %v3964_v18 }
 0x56c   : > { %v1920_v58 = vadd.f32 %v1918_v21, %v1838_v22  ;;  %v2007_v38 = vsel %vm4338_vm9, %v4078_v7, %v4083_v53  ;;  %v2008_v18 = vsel %vm4339_vm10, %v4083_v53, %v4091_v24 }
 0x56d   : > { %v1886_v13 = vpop.permute.xlu1 %1885  ;;  %v1919_v17 = vadd.f32 %v1917_v20, %v1837_v32 }
 0x56e   : > { %v1930_v19 = vadd.f32 %v1928_v8, %v1920_v58  ;;  %v2037_v54 = vpop.permute.xlu2 %2036  ;;  %v1889_v52 = vsel %vm1030_vm1, %v1884_v61, %v1886_v13  ;;  %v1890_v39 = vsel %vm1030_vm1, %v1886_v13, %v1888_v30  ;;  %v2077_v30 = vpop.permute.xlu0 %2076 }
 0x56f   : > { %v1929_v41 = vadd.f32 %v1927_v25, %v1919_v17 }
 0x570   : > { %v1940_v1 = vadd.f32 %v1938_v59, %v1930_v19 }
 0x571   : > { %v1939_v40 = vadd.f32 %v1937_v42, %v1929_v41  ;;  %v2131_v42 = vld [vmem:[%s4207_s5] sm:$0xf] }
 0x572   : > { %v1950_v28 = vadd.f32 %v1948_v27, %v1940_v1 }
 0x573   : > { %v1949_v57 = vadd.f32 %v1947_v11, %v1939_v40 }
 0x574   : > { %v1981_v6 = vadd.f32 %v1977_v60, %v1950_v28 }
 0x575   : > { %v1902_v56 = vpop.permute.xlu1 %1901  ;;  %v1980_v62 = vadd.f32 %v1976_v47, %v1949_v57 }
 0x576   : > { %v1905_v26 = vsel %vm1013_vm2, %v1900_v0, %v1902_v56  ;;  %v1906_v36 = vsel %vm1013_vm2, %v1902_v56, %v1904_v2  ;;  %v2068_v44 = vpop.permute.xlu2 %2067  ;;  %v2012_v31 = vadd.f32 %v2008_v18, %v1981_v6  ;;  %vm4343_vm2 = vmmov %vm4342_vm0 }
 0x577   : > { %v1909_v3 = vsel %vm3324_vm15, %v1889_v52, %v1905_v26  ;;  %v1910_v37 = vsel %vm3276_vm12, %v1890_v39, %v1906_v36  ;;  %v2011_v7 = vadd.f32 %v2007_v38, %v1980_v62  ;;  %vm2133_vm12 = vcmask 11264   ;;  %v2141_v36 = vld [vmem:[%s4208_s6] sm:$0x1] }
 0x578   : > { %v2079_v24 = vperm.slane %v1909_v3, 0  ;;  %v2080_v61 = vperm.slane %v1910_v37, 0  ;;  %v2089_v21 = vperm.slane %v1909_v3, 1  ;;  %v2090_v63 = vperm.slane %v1910_v37, 1 }
 0x579   : > { %v2099_v16 = vperm.slane %v1909_v3, 2  ;;  %v2100_v50 = vperm.slane %v1910_v37, 2  ;;  %v2109_v1 = vperm.slane %v1909_v3, 3  ;;  %v2110_v10 = vperm.slane %v1910_v37, 3 }
 0x57a   : > { %v2081_v34 = vmul.f32 %v2079_v24, %v2077_v30  ;;  %v2082_v58 = vmul.f32 %v2080_v61, %v2077_v30  ;;  %v2150_v39 = vstv %s2149_s18  ;;  %v2154_v30 = vstv %s2329_s22  ;;  %s2233_s22 = sshll.u32 %s391_s12, 4  ;;  %s2235_s18 = sshll.u32 %s2231_s21, 4  ;;  %s2234_s22 = int_to_ptr.vmem [resolvable:$true] %s2233_s22  ;;  %s2236_s18 = int_to_ptr.hbm [resolvable:$true] %s2235_s18 }
 0x57d   : > { %v2035_v51 = vpop.permute.xlu1 %2034 }
 0x57e   : > { %v2038_v23 = vsel %vm4340_vm11, %v2033_v14, %v2035_v51  ;;  %v2039_v48 = vsel %vm4341_vm13, %v2035_v51, %v2037_v54  ;;  %v2097_v43 = vpop.permute.xlu2 %2096 }
 0x57f   : > { %v2042_v35 = vadd.f32 %v2038_v23, %v2011_v7  ;;  %v2043_v22 = vadd.f32 %v2039_v48, %v2012_v31  ;;  %v2101_v0 = vmul.f32 %v2099_v16, %v2097_v43  ;;  %v2102_v27 = vmul.f32 %v2100_v50, %v2097_v43  ;;  %v2178_v16 = vld [vmem:[%s4209_s7] sm:$0xf] }
 0x585   : > { %v2066_v45 = vpop.permute.xlu1 %2065 }
 0x586   : > { %v2069_v4 = vsel %vm4342_vm0, %v2064_v46, %v2066_v45  ;;  %v2070_v53 = vsel %vm4343_vm2, %v2066_v45, %v2068_v44  ;;  %v2119_v2 = vpop.permute.xlu2 %2118 }
 0x587   : > { %v2073_v12 = vadd.f32 %v2069_v4, %v2042_v35  ;;  %v2074_v55 = vadd.f32 %v2070_v53, %v2043_v22  ;;  %v2146_v53 = vstv %s2123_s9  ;;  %s2588_s9 = sshra.s32 %s2236_s18, 4  ;;  %s2589_s9 = int_to_ptr.hbm [resolvable:$true] %s2588_s9 }
 0x588   : > { %s2590_s26 = scalar_lea.hbm %s2589_s9, 8  ;;  %p2595_p9 = scmp.lt.s32.totalorder %s2589_s9, %s4212_s10 }
 0x589   : > { %v2083_v13 = vadd.f32 %v2081_v34, %v2073_v12  ;;  %v2084_v19 = vadd.f32 %v2082_v58, %v2074_v55  ;;  %p2591_p1 = scmp.ne.s32.totalorder %s2589_s9, %s2590_s26  ;;  %p2596_p10 = scmp.lt.s32.totalorder %s2594_s19, %s2590_s26 }
 0x58b   : > { %p2592_p4 = pnand %p2591_p1, %p2816_p3  ;;  %p2597_p2 = por %p2596_p10, %p2595_p9 }
 0x58d   : > { %v2087_v9 = vpop.permute.xlu1 %2086  ;;  %p2593_p8 = pneg %p2592_p4 }
 0x58e   : > { %v2091_v8 = vmul.f32 %v2089_v21, %v2087_v9  ;;  %v2092_v15 = vmul.f32 %v2090_v63, %v2087_v9 }
 0x58f   : > { %p2598_p11 = pnand %p2597_p2, %p2593_p8 }
 0x590   : > { %v2093_v59 = vadd.f32 %v2091_v8, %v2083_v13  ;;  %v2094_v29 = vadd.f32 %v2092_v15, %v2084_v19 }
 0x592   : > { %v2103_v60 = vadd.f32 %v2101_v0, %v2093_v59  ;;  %v2104_v33 = vadd.f32 %v2102_v27, %v2094_v29  ;;  %v2184_v59 = vld [vmem:[%s4210_s8] sm:$0xf] }
 0x596   : > { %v2107_v20 = vpop.permute.xlu1 %2106 }
 0x597   : > { %v2111_v28 = vmul.f32 %v2109_v1, %v2107_v20  ;;  %v2112_v32 = vmul.f32 %v2110_v10, %v2107_v20 }
 0x599   : > { %v2113_v6 = vadd.f32 %v2111_v28, %v2103_v60  ;;  %v2114_v17 = vadd.f32 %v2112_v32, %v2104_v33 }
 0x59b   : > { %v4141_v56 = vadd.f32 %v2119_v2, %v2113_v6  ;;  %v4143_v25 = vadd.f32 %v2119_v2, %v2114_v17 }
 0x59d   : > { %v2125_v5 = vsel %vm1289_vm14, %v4141_v56, 0.0  ;;  %v2126_v41 = vsel %vm1289_vm14, %v4143_v25, 0.0 }
 0x59e   : > { %v2127_v14 = vadd.f32 %v2126_v41, %v2125_v5 }
 0x5a0   : > { %2128 = vadd.xlane.f32.xlu0 %v2127_v14 }
 0x613   : > { %v2129_v49 = vpop.xlane.xlu0 %2128 }
 0x614   : > { %v2130_v51 = vmul.f32 0.00390625, %v2129_v49 }
 0x616   : > { %v2132_v40 = vmul.f32 %v2131_v42, %v2130_v51 }
 0x618   : > { %v2134_v54 = vsel %vm2133_vm12, %v2132_v40, 0.0 }
 0x619   : > { %v2135_v11 = vrot.slane %v2134_v54, 4 }
 0x61b   : > { %v2136_v57 = vadd.f32 %v2135_v11, %v2134_v54  ;;  %v2528_v54 = vld [vmem:[%s2849_s15] sm:$0xff] }
 0x61d   : > { %v2137_v47 = vrot.slane %v2136_v57, 2 }
 0x61f   : > { %v2138_v46 = vadd.f32 %v2137_v47, %v2136_v57 }
 0x621   : > { %v2139_v26 = vrot.slane %v2138_v46, 1 }
 0x623   : > { %v2140_v62 = vadd.f32 %v2139_v26, %v2138_v46 }
 0x625   : > { %v2142_v45 = vadd.f32 %v2141_v36, %v2140_v62 }
 0x627   : > { %v2330_v38 = vmul.f32 -1.442695, %v2142_v45  ;;  %v2143_v44 = vsub.f32 0.0, %v2142_v45  ;;  %v2151_v3 = vmul.f32 %v2150_v39, %v2142_v45  ;;  %v2148_v9 = vmax.f32 %v2142_v45, 0.0 }
 0x629   : > { %2519 = vpow2.f32 %v2330_v38  ;;  %v2144_v37 = vmax.f32 %v2143_v44, 0.0  ;;  %v2152_v48 = vmax.f32 %v2151_v3, 0.0 }
 0x62b   : > { %v2145_v31 = vsub.f32 %v2142_v45, %v2144_v37  ;;  %v2153_v61 = vsub.f32 %v2142_v45, %v2152_v48 }
 0x62d   : > { %v2147_v12 = vmul.f32 %v2146_v53, %v2145_v31  ;;  %v2155_v63 = vmul.f32 %v2154_v30, %v2153_v61 }
 0x62f   : > { %v2520_v18 = vpop.eup %2519  ;;  %v2176_v15 = vadd.f32 %v2148_v9, %v2147_v12 }
 0x630   : > { %v2159_v52 = vadd.f32 1.0, %v2520_v18 }
 0x632   : > { %2521 = vrcp.f32 %v2159_v52  ;;  %v2171_v24 = vand.u32 2147483648, %v2159_v52  ;;  %v2169_v22 = vand.u32 2147483647, %v2159_v52  ;;  %vm2165_vm1 = vweird.f32 %v2159_v52 }
 0x634   : > { %v2172_v21 = vor.u32 1.1754944e-38, %v2171_v24  ;;  %vm2170_vm4 = vcmp.eq.f32.partialorder %v2169_v22, 8.507059e+37 }
 0x638   : > { %v2522_v23 = vpop.eup %2521 }
 0x639   : > { %v2161_v7 = vmul.f32 %v2522_v23, %v2159_v52  ;;  %vm2166_vm15 = vweird.f32 %v2522_v23 }
 0x63a   : > { %vm2167_vm3 = vmor %vm2165_vm1, %vm2166_vm15 }
 0x63b   : > { %v2162_v4 = vsub.f32 1.0, %v2161_v7 }
 0x63d   : > { %v2163_v35 = vmul.f32 %v2522_v23, %v2162_v4 }
 0x63f   : > { %v2164_v55 = vadd.f32 %v2522_v23, %v2163_v35 }
 0x641   : > { %v2168_v34 = vsel %vm2167_vm3, %v2522_v23, %v2164_v55 }
 0x642   : > { %v2173_v58 = vsel %vm2170_vm4, %v2172_v21, %v2168_v34 }
 0x643   : > { %v2175_v8 = vmul.f32 %v2173_v58, %v2155_v63 }
 0x645   : > { %v2177_v43 = vadd.f32 %v2176_v15, %v2175_v8 }
 0x647   : > { %v2179_v50 = vperm.slane %v2177_v43, 0 }
 0x649   : > { %v2180_v13 = vmul.f32 %v2179_v50, %v2178_v16 }
 0x64b   : > { %v2181_v19 = vsel %vm2133_vm12, %v2180_v13, 0.0 }
 0x64c   : > { %2182 = vadd.xlane.f32.xlu1 %v2181_v19 }
 0x6bf   : > { %v2183_v29 = vpop.xlane.xlu1 %2182 }
 0x6c0   : > { %v2185_v0 = vadd.f32 %v2184_v59, %v2183_v29 }
 0x6c2   : > { %v2331_v27 = vmul.f32 -1.442695, %v2185_v0 }
 0x6c4   : > { %2523 = vpow2.f32 %v2331_v27 }
 0x6ca   : > { %v2524_v1 = vpop.eup %2523 }
 0x6cb   : > { %v2189_v10 = vadd.f32 1.0, %v2524_v1 }
 0x6cd   : > { %2525 = vrcp.f32 %v2189_v10  ;;  %v2201_v60 = vand.u32 2147483648, %v2189_v10  ;;  %v2199_v2 = vand.u32 2147483647, %v2189_v10  ;;  %vm2195_vm6 = vweird.f32 %v2189_v10 }
 0x6cf   : > { %v2202_v17 = vor.u32 1.1754944e-38, %v2201_v60  ;;  %vm2200_vm8 = vcmp.eq.f32.partialorder %v2199_v2, 8.507059e+37 }
 0x6d3   : > { %v2526_v20 = vpop.eup %2525 }
 0x6d4   : > { %v2191_v28 = vmul.f32 %v2526_v20, %v2189_v10  ;;  %vm2196_vm5 = vweird.f32 %v2526_v20 }
 0x6d5   : > { %vm2197_vm7 = vmor %vm2195_vm6, %vm2196_vm5 }
 0x6d6   : > { %v2192_v32 = vsub.f32 1.0, %v2191_v28 }
 0x6d8   : > { %v2193_v33 = vmul.f32 %v2526_v20, %v2192_v32 }
 0x6da   : > { %v2194_v6 = vadd.f32 %v2526_v20, %v2193_v33 }
 0x6dc   : > { %v2198_v5 = vsel %vm2197_vm7, %v2526_v20, %v2194_v6 }
 0x6dd   : > { %v2203_v41 = vsel %vm2200_vm8, %v2202_v17, %v2198_v5 }
 0x6de   : > { %2207 = vperm.xlu2 %2517, %v2203_v41  }
 0x738   : > { %v2208_v14 = vpop.permute.xlu2 %2207 }
 0x739   : > { %v2211_v42 = vmul.f32 %v2208_v14, %v4143_v25  ;;  %v2210_v49 = vmul.f32 %v2208_v14, %v4141_v56 }
 0x73b   : > { %v2214_v51 = vrot.slane %v2211_v42, 4 }
 0x73d   : > { %v2215_v40 = vsel %vm1289_vm14, %v2210_v49, %v2214_v51 }
 0x73e   : > { %v2217_v11 = vadd.f32 %v2528_v54, %v2215_v40 }
 0x740   : > { %2218 = vst [vmem:[%s391_s12] sm:$0xff] %v2217_v11 }
 0x741   : > { %2601 = shalt.err (!%p2598_p11)
}
 0x742   : > { %2345 = dma.vmem_to_hbm [thread:$0]  (%p2816_p3), %s2234_s22, 128, %s2236_s18, %s2220_s17  }
 0x743 PF: > { %s2247_s11 = sand.u32 1, %s2632_s13   ;;  %p4345_p12 = scmp.ge.s32.totalorder %s2644_s16, 2 }
 0x744   : > { %s2248_s15 = scalar_lea.sflag [#allocation5], %s2247_s11 }
 0x745   : > { %p2356_p13 = pnand %p4345_p12, %p2785_p6 }
 0x747   : > { %p2357_p0 = pneg %p2356_p13 }
 0x749   : > { %2627 = dma.done.wait (%p2357_p0), %s2248_s15, 128  }
 0x74a   : > { %2629 = vsyncadd (%p2357_p0), %s2248_s15, 4294967168  ;;  %s4346_s16 = sld [smem:[#allocation13_spill]]  ;;  %s4349_s13 = smov %s2636_s14 }
 0x74b   : > { %s4347_s28 = sld [smem:[#allocation12_spill]] }
 0x74c   : > { %s4348_s15 = sld [smem:[#allocation14_spill]] }
 0x750   : > { %p24_p5 = scmp.ge.s32.totalorder %s4346_s16, 4  }
 0x751   : > { %s4350_s14 = smov %s4347_s28 }
 0x752   :  { %26 = sbr.rel (!%p24_p5) target bundleno = 8 (0x8), region = 130 }
 0x757   :  { %2254 = vsyncpa [#allocation4], 1 }
 0x758   :  { %2256 = vsyncpa [#allocation4 + $0x1], 1 }
 0x759   :  { %2257 = vsyncpa [#allocation5], 1 }
 0x75a   :  { %2259 = vsyncpa [#allocation5 + $0x1], 1 }
 0x75b   :  { %2260 = vsyncpa [#allocation6], 1 }
 0x75c   :  { %2262 = vsyncpa [#allocation6 + $0x1], 1 }

</bundles_post_ra>
